<compile_context>
chip_gen: v5e
topology: v5e:2x2
jax: 0.10.0
libtpu: 0.0.40
codegen_flags: <defaults>
</compile_context>

<pallas_src>
import functools

import numpy as np
import jax
import jax.numpy as jnp
from jax import lax
from jax.experimental import pallas as pl
from jax.experimental.pallas import tpu as pltpu


def _round_up(x, m):
    return (x + m - 1) // m * m


# ----------------------------------------------------------------------------
# Fused kernel: stage-1 conv (k=2,s=2) + ReLU + BN0  ->  stage-2 conv (k=3,p=1)
#               + LeakyReLU + BN2  +  (avgpool3 s2 p1 -> 1x1 conv) residual.
# All activations are (channels, flat_spatial): lane axis = spatial (dense).
# ----------------------------------------------------------------------------
def _fused_kernel(p1_ref, mask_ref, w1_ref, w2_ref, w3_ref, coef_ref, out_ref,
                  *, tap_offsets, pool_offsets, l_out):
    # p1_ref  : (1, K1, P_in)    bf16  stage-1 2x2x2 patches, padded-flat columns
    # mask_ref: (1, P_in)        f32   1.0 on interior columns, 0.0 on the zero ring
    # w1_ref  : (Cout, K1)       bf16  conv_down weights (im2col rows, transposed)
    # w2_ref  : (27, Cout, Cout) bf16  conv2 per-tap weights (transposed)
    # w3_ref  : (8, Cout, K1)    bf16  pooled-residual per-neighbour weights (w3/27)
    # coef_ref: (6, Cout, 1)     f32   b_down, scale0, shift0, b2, scale2, shift2+b3
    # out_ref : (1, Cout, L)     f32
    p1 = p1_ref[0]                                           # (K1, P_in) bf16
    b1, scale0, shift0 = coef_ref[0], coef_ref[1], coef_ref[2]
    b2, scale2, c2 = coef_ref[3], coef_ref[4], coef_ref[5]

    # Stage 1: conv_down -> ReLU -> BN0 in padded-flat layout.  The mask zeroes the
    # padding ring so conv2's zero padding (and the pool padding) is honoured.
    z1 = jnp.dot(w1_ref[...], p1, preferred_element_type=jnp.float32)   # (Cout, P_in)
    y1 = (scale0 * jnp.maximum(z1 + b1, 0.0) + shift0) * mask_ref[...]
    y1 = y1.astype(jnp.bfloat16)                             # bf16 operand for the MXU

    # Stage 2: conv2 (k=3, p=1) as 27 shifted contiguous lane slices of y1, each
    # contracted against its (Cout, Cout) tap matrix (f32 accumulate).
    acc2 = jnp.zeros(out_ref.shape[1:], jnp.float32)         # (Cout, L)
    for t, off in enumerate(tap_offsets):
        acc2 = acc2 + jnp.dot(w2_ref[t], y1[:, off:off + l_out],
                              preferred_element_type=jnp.float32)

    # Residual: AvgPool3d(3, s=2, p=1) + 1x1 conv == 8 shifted dots against the raw
    # stage-1 patch columns (each pool window is covered by the 8 neighbouring 2x2x2
    # blocks; out-of-range neighbours hit the zero ring, matching the pool padding).
    acc3 = jnp.zeros(out_ref.shape[1:], jnp.float32)
    for e, off in enumerate(pool_offsets):
        acc3 = acc3 + jnp.dot(w3_ref[e], p1[:, off:off + l_out],
                              preferred_element_type=jnp.float32)

    z2 = acc2 + b2
    y2 = jnp.where(z2 >= 0.0, z2, 0.01 * z2)                 # LeakyReLU(0.01)
    out_ref[0] = (y2 * scale2 + c2 + acc3).astype(out_ref.dtype)


# ----------------------------------------------------------------------------
# Wrapper: weight / layout preparation (1:1 reorder of x, no patch duplication)
# ----------------------------------------------------------------------------
def subnetdown_forward(x, params, *, eps=1e-5):
    """x: (N, Cin, D, H, W) float32 (NCDHW, as in PyTorch).  Returns NCDHW output."""
    N, Cin, D, H, W = x.shape
    Cout = params["w_down"].shape[0]
    # The main (k=2,s=2) and residual (k=3,s=2,p=1) branches only agree in shape for
    # even spatial dims (as in the original module's intended use).
    assert D % 2 == 0 and H % 2 == 0 and W % 2 == 0, "SubNetdown needs even D/H/W"
    d, h, w = D // 2, H // 2, W // 2
    Dp, Hp, Wp = d + 2, h + 2, w + 2                   # +1 zero ring on each side
    P = Dp * Hp * Wp                                   # padded-flat spatial size
    C0 = Hp * Wp + Wp + 1                              # flat offset of coord (1,1,1)
    L = d * Hp * Wp                                    # output columns computed in-kernel
    P_in = _round_up(L + 2 * C0, 128)                  # lane-aligned input width
    K1 = 8 * Cin

    # --- stage-1 patches, transposed to (K1, padded-flat spatial) -------------------
    p1 = x.reshape(N, Cin, d, 2, h, 2, w, 2)
    p1 = jnp.transpose(p1, (0, 3, 5, 7, 1, 2, 4, 6))   # (N, kd, kh, kw, Cin, d, h, w)
    p1 = p1.reshape(N, K1, d, h, w)
    p1 = jnp.pad(p1, ((0, 0), (0, 0), (1, 1), (1, 1), (1, 1)))
    p1 = p1.reshape(N, K1, P)
    p1 = jnp.pad(p1, ((0, 0), (0, 0), (0, P_in - P))).astype(jnp.bfloat16)

    # --- weights --------------------------------------------------------------------
    w1t = jnp.transpose(params["w_down"], (0, 2, 3, 4, 1)).reshape(Cout, K1)
    w1t = w1t.astype(jnp.bfloat16)
    w2t = jnp.transpose(params["w2"], (2, 3, 4, 0, 1)).reshape(27, Cout, Cout)
    w2t = w2t.astype(jnp.bfloat16)

    # Pooled residual: the 3x3x3/s2/p1 window of output (a,b,c) is covered by blocks
    # (a-ed, b-eh, c-ew), e in {0,1}^3: taps {0,1} from the same block, tap {1} from the
    # previous block along each axis.  Spread w3/27 over the selected patch rows.
    w3m = params["w3"].reshape(Cout, Cin) / 27.0
    sel = np.zeros((8, 2, 2, 2), np.float32)
    pool_offsets = []
    i = 0
    for ed in (0, 1):
        for eh in (0, 1):
            for ew in (0, 1):
                for kd in ((0, 1) if ed == 0 else (1,)):
                    for kh in ((0, 1) if eh == 0 else (1,)):
                        for kw in ((0, 1) if ew == 0 else (1,)):
                            sel[i, kd, kh, kw] = 1.0
                pool_offsets.append(C0 - (ed * Hp * Wp + eh * Wp + ew))
                i += 1
    w3e = (jnp.asarray(sel)[:, None, :, :, :, None]
           * w3m[None, :, None, None, None, :])               # (8, Cout, 2,2,2, Cin)
    w3e = w3e.reshape(8, Cout, K1).astype(jnp.bfloat16)

    tap_offsets = [kd * Hp * Wp + kh * Wp + kw
                   for kd in range(3) for kh in range(3) for kw in range(3)]

    # --- eval BatchNorm as per-channel scale/shift; b3 folded into the final shift ---
    scale0 = params["gamma0"] / jnp.sqrt(params["var0"] + eps)
    shift0 = params["beta0"] - params["mean0"] * scale0
    scale2 = params["gamma2"] / jnp.sqrt(params["var2"] + eps)
    shift2 = params["beta2"] - params["mean2"] * scale2
    coef = jnp.stack([params["b_down"], scale0, shift0,
                      params["b2"], scale2, shift2 + params["b3"]], axis=0)
    coef = coef.reshape(6, Cout, 1).astype(jnp.float32)

    # Interior mask over padded-flat columns (zeroes the padding ring of y1).
    q = jnp.arange(P_in)
    qa, qr = q // (Hp * Wp), q % (Hp * Wp)
    qb, qc = qr // Wp, qr % Wp
    interior = ((q < P) & (qa >= 1) & (qa <= d) & (qb >= 1) & (qb <= h)
                & (qc >= 1) & (qc <= w))
    mask = interior.astype(jnp.float32).reshape(1, P_in)

    kernel = functools.partial(_fused_kernel,
                               tap_offsets=tuple(tap_offsets),
                               pool_offsets=tuple(pool_offsets),
                               l_out=L)

    out = pl.pallas_call(
        kernel,
        out_shape=jax.ShapeDtypeStruct((N, Cout, L), jnp.float32),
        grid=(N,),  # one step per batch element; N=2 -> both v7x TCs get work
        in_specs=[
            pl.BlockSpec((1, K1, P_in), lambda n: (n, 0, 0)),      # patches (per batch)
            pl.BlockSpec((1, P_in), lambda n: (0, 0)),             # interior mask
            pl.BlockSpec((Cout, K1), lambda n: (0, 0)),            # conv_down weights
            pl.BlockSpec((27, Cout, Cout), lambda n: (0, 0, 0)),   # conv2 tap weights
            pl.BlockSpec((8, Cout, K1), lambda n: (0, 0, 0)),      # pooled-residual wts
            pl.BlockSpec((6, Cout, 1), lambda n: (0, 0, 0)),       # fused coefficients
        ],
        out_specs=pl.BlockSpec((1, Cout, L), lambda n: (n, 0, 0)),
        compiler_params=pltpu.CompilerParams(
            dimension_semantics=("parallel",),
            vmem_limit_bytes=32 * 1024 * 1024,   # explicit; working set is < 1 MiB
        ),
    )(p1, mask, w1t, w2t, w3e, coef)

    # Kernel columns j = a*Hp*Wp + b*Wp + c; keeping b < h, c < w yields NCDHW directly.
    out = out.reshape(N, Cout, d, Hp, Wp)[:, :, :, :h, :w]
    return out


# ----------------------------------------------------------------------------
# Pure-JAX reference (correctness check only)
# ----------------------------------------------------------------------------
def subnetdown_reference(x, p, eps=1e-5):
    dn = ("NCDHW", "OIDHW", "NCDHW")

    def bn(y, g, b, m, v):
        sh = (1, -1, 1, 1, 1)
        return (y - m.reshape(sh)) / jnp.sqrt(v.reshape(sh) + eps) * g.reshape(sh) \
            + b.reshape(sh)

    y = lax.conv_general_dilated(x, p["w_down"], (2, 2, 2), "VALID",
                                 dimension_numbers=dn)
    y = y + p["b_down"].reshape(1, -1, 1, 1, 1)
    y = jnp.maximum(y, 0.0)
    y = bn(y, p["gamma0"], p["beta0"], p["mean0"], p["var0"])
    y = lax.conv_general_dilated(y, p["w2"], (1, 1, 1), [(1, 1)] * 3,
                                 dimension_numbers=dn)
    y = y + p["b2"].reshape(1, -1, 1, 1, 1)
    y = jnp.where(y >= 0.0, y, 0.01 * y)
    y = bn(y, p["gamma2"], p["beta2"], p["mean2"], p["var2"])
    s = lax.reduce_window(x, 0.0, lax.add, (1, 1, 3, 3, 3), (1, 1, 2, 2, 2),
                          [(0, 0), (0, 0), (1, 1), (1, 1), (1, 1)])
    x_pool = s / 27.0
    x_end = lax.conv_general_dilated(x_pool, p["w3"], (1, 1, 1), "VALID",
                                     dimension_numbers=dn)
    x_end = x_end + p["b3"].reshape(1, -1, 1, 1, 1)
    return y + x_end


if __name__ == "__main__":
    Cin, Cout = 4, 8
    N, D, H, W = 2, 16, 16, 16

    key = jax.random.PRNGKey(0)
    ks = jax.random.split(key, 17)
    params = dict(
        w_down=0.1 * jax.random.normal(ks[0], (Cout, Cin, 2, 2, 2), jnp.float32),
        b_down=0.1 * jax.random.normal(ks[1], (Cout,), jnp.float32),
        w2=0.1 * jax.random.normal(ks[2], (Cout, Cout, 3, 3, 3), jnp.float32),
        b2=0.1 * jax.random.normal(ks[3], (Cout,), jnp.float32),
        w3=0.1 * jax.random.normal(ks[4], (Cout, Cin, 1, 1, 1), jnp.float32),
        b3=0.1 * jax.random.normal(ks[5], (Cout,), jnp.float32),
        gamma0=1.0 + 0.1 * jax.random.normal(ks[6], (Cout,), jnp.float32),
        beta0=0.1 * jax.random.normal(ks[7], (Cout,), jnp.float32),
        mean0=0.1 * jax.random.normal(ks[8], (Cout,), jnp.float32),
        var0=jax.random.uniform(ks[9], (Cout,), jnp.float32, 0.5, 1.5),
        gamma2=1.0 + 0.1 * jax.random.normal(ks[10], (Cout,), jnp.float32),
        beta2=0.1 * jax.random.normal(ks[11], (Cout,), jnp.float32),
        mean2=0.1 * jax.random.normal(ks[12], (Cout,), jnp.float32),
        var2=jax.random.uniform(ks[13], (Cout,), jnp.float32, 0.5, 1.5),
    )
    x = jax.random.normal(ks[16], (N, Cin, D, H, W), jnp.float32)

    out = jax.block_until_ready(jax.jit(subnetdown_forward)(x, params))
    ref = jax.block_until_ready(subnetdown_reference(x, params))

    assert out.shape == (N, Cout, D // 2, H // 2, W // 2), out.shape
    # bf16 MXU operands -> loose tolerance vs the f32 reference.
    assert jnp.allclose(out, ref, atol=5e-2, rtol=5e-2), float(
        jnp.max(jnp.abs(out - ref)))

    print("KERNEL_OK")
</pallas_src>

<mosaic_0001>
module attributes {stable_mosaic.version = 11 : i64} {
  func.func @_fused_kernel(%arg0: i32, %arg1: memref<1x32x1024xbf16, #tpu.memory_space<vmem>>, %arg2: memref<1x1024xf32, #tpu.memory_space<vmem>>, %arg3: memref<8x32xbf16, #tpu.memory_space<vmem>>, %arg4: memref<27x8x8xbf16, #tpu.memory_space<vmem>>, %arg5: memref<8x8x32xbf16, #tpu.memory_space<vmem>>, %arg6: memref<6x8x1xf32, #tpu.memory_space<vmem>>, %arg7: memref<1x8x800xf32, #tpu.memory_space<vmem>>) attributes {dimension_semantics = [#tpu.dimension_semantics<parallel>], iteration_bounds = array<i64: 2>, scalar_prefetch = 0 : i64, scratch_operands = 0 : i64, tpu.core_type = #tpu.core_type<tc>, window_params = [{transform_indices = @transform_0, window_bounds = array<i64: 1, 32, 1024>}, {pipeline_mode = #tpu.pipeline_mode<synchronous>, transform_indices = @transform_1, window_bounds = array<i64: 1, 1024>}, {pipeline_mode = #tpu.pipeline_mode<synchronous>, transform_indices = @transform_2, window_bounds = array<i64: 8, 32>}, {pipeline_mode = #tpu.pipeline_mode<synchronous>, transform_indices = @transform_3, window_bounds = array<i64: 27, 8, 8>}, {pipeline_mode = #tpu.pipeline_mode<synchronous>, transform_indices = @transform_4, window_bounds = array<i64: 8, 8, 32>}, {pipeline_mode = #tpu.pipeline_mode<synchronous>, transform_indices = @transform_5, window_bounds = array<i64: 6, 8, 1>}, {transform_indices = @transform_6, window_bounds = array<i64: 1, 8, 800>}]} {
    %c0 = arith.constant 0 : index
    %c0_0 = arith.constant 0 : index
    %c0_1 = arith.constant 0 : index
    %0 = vector.load %arg1[%c0, %c0_0, %c0_1] : memref<1x32x1024xbf16, #tpu.memory_space<vmem>>, vector<1x32x1024xbf16>
    %1 = vector.shape_cast %0 : vector<1x32x1024xbf16> to vector<32x1024xbf16>
    %c0_2 = arith.constant 0 : index
    %c0_3 = arith.constant 0 : index
    %c0_4 = arith.constant 0 : index
    %2 = vector.load %arg6[%c0_2, %c0_3, %c0_4] : memref<6x8x1xf32, #tpu.memory_space<vmem>>, vector<1x8x1xf32>
    %3 = vector.shape_cast %2 : vector<1x8x1xf32> to vector<8x1xf32>
    %c1 = arith.constant 1 : index
    %c0_5 = arith.constant 0 : index
    %c0_6 = arith.constant 0 : index
    %4 = vector.load %arg6[%c1, %c0_5, %c0_6] : memref<6x8x1xf32, #tpu.memory_space<vmem>>, vector<1x8x1xf32>
    %5 = vector.shape_cast %4 : vector<1x8x1xf32> to vector<8x1xf32>
    %c2 = arith.constant 2 : index
    %c0_7 = arith.constant 0 : index
    %c0_8 = arith.constant 0 : index
    %6 = vector.load %arg6[%c2, %c0_7, %c0_8] : memref<6x8x1xf32, #tpu.memory_space<vmem>>, vector<1x8x1xf32>
    %7 = vector.shape_cast %6 : vector<1x8x1xf32> to vector<8x1xf32>
    %c3 = arith.constant 3 : index
    %c0_9 = arith.constant 0 : index
    %c0_10 = arith.constant 0 : index
    %8 = vector.load %arg6[%c3, %c0_9, %c0_10] : memref<6x8x1xf32, #tpu.memory_space<vmem>>, vector<1x8x1xf32>
    %9 = vector.shape_cast %8 : vector<1x8x1xf32> to vector<8x1xf32>
    %c4 = arith.constant 4 : index
    %c0_11 = arith.constant 0 : index
    %c0_12 = arith.constant 0 : index
    %10 = vector.load %arg6[%c4, %c0_11, %c0_12] : memref<6x8x1xf32, #tpu.memory_space<vmem>>, vector<1x8x1xf32>
    %11 = vector.shape_cast %10 : vector<1x8x1xf32> to vector<8x1xf32>
    %c5 = arith.constant 5 : index
    %c0_13 = arith.constant 0 : index
    %c0_14 = arith.constant 0 : index
    %12 = vector.load %arg6[%c5, %c0_13, %c0_14] : memref<6x8x1xf32, #tpu.memory_space<vmem>>, vector<1x8x1xf32>
    %13 = vector.shape_cast %12 : vector<1x8x1xf32> to vector<8x1xf32>
    %c0_15 = arith.constant 0 : index
    %c0_16 = arith.constant 0 : index
    %14 = vector.load %arg3[%c0_15, %c0_16] : memref<8x32xbf16, #tpu.memory_space<vmem>>, vector<8x32xbf16>
    %cst = arith.constant dense<0.000000e+00> : vector<8x1024xf32>
    %15 = tpu.matmul %14, %1, %cst {dimension_numbers = #tpu.dot_dimension_numbers<[1], [0], [0], [1], [0, 0, 1, 1], [], []>} : vector<8x32xbf16>, vector<32x1024xbf16>, vector<8x1024xf32> -> vector<8x1024xf32>
    %16 = vector.broadcast %3 : vector<8x1xf32> to vector<8x1024xf32>
    %17 = arith.addf %15, %16 : vector<8x1024xf32>
    %cst_17 = arith.constant 0.000000e+00 : f32
    %18 = vector.broadcast %cst_17 : f32 to vector<8x1024xf32>
    %19 = arith.maximumf %17, %18 : vector<8x1024xf32>
    %20 = vector.broadcast %5 : vector<8x1xf32> to vector<8x1024xf32>
    %21 = arith.mulf %20, %19 : vector<8x1024xf32>
    %22 = vector.broadcast %7 : vector<8x1xf32> to vector<8x1024xf32>
    %23 = arith.addf %21, %22 : vector<8x1024xf32>
    %c0_18 = arith.constant 0 : index
    %c0_19 = arith.constant 0 : index
    %24 = vector.load %arg2[%c0_18, %c0_19] : memref<1x1024xf32, #tpu.memory_space<vmem>>, vector<1x1024xf32>
    %25 = vector.broadcast %24 : vector<1x1024xf32> to vector<8x1024xf32>
    %26 = arith.mulf %23, %25 : vector<8x1024xf32>
    %27 = arith.truncf %26 : vector<8x1024xf32> to vector<8x1024xbf16>
    %cst_20 = arith.constant 0.000000e+00 : f32
    %28 = vector.broadcast %cst_20 : f32 to vector<8x800xf32>
    %c0_21 = arith.constant 0 : index
    %c0_22 = arith.constant 0 : index
    %c0_23 = arith.constant 0 : index
    %29 = vector.load %arg4[%c0_21, %c0_22, %c0_23] : memref<27x8x8xbf16, #tpu.memory_space<vmem>>, vector<1x8x8xbf16>
    %30 = vector.shape_cast %29 : vector<1x8x8xbf16> to vector<8x8xbf16>
    %31 = vector.extract_strided_slice %27 {offsets = [0, 0], sizes = [8, 800], strides = [1, 1]} : vector<8x1024xbf16> to vector<8x800xbf16>
    %cst_24 = arith.constant dense<0.000000e+00> : vector<8x800xf32>
    %32 = tpu.matmul %30, %31, %cst_24 {dimension_numbers = #tpu.dot_dimension_numbers<[1], [0], [0], [1], [0, 0, 1, 1], [], []>} : vector<8x8xbf16>, vector<8x800xbf16>, vector<8x800xf32> -> vector<8x800xf32>
    %33 = arith.addf %28, %32 : vector<8x800xf32>
    %c1_25 = arith.constant 1 : index
    %c0_26 = arith.constant 0 : index
    %c0_27 = arith.constant 0 : index
    %34 = vector.load %arg4[%c1_25, %c0_26, %c0_27] : memref<27x8x8xbf16, #tpu.memory_space<vmem>>, vector<1x8x8xbf16>
    %35 = vector.shape_cast %34 : vector<1x8x8xbf16> to vector<8x8xbf16>
    %36 = vector.extract_strided_slice %27 {offsets = [0, 1], sizes = [8, 800], strides = [1, 1]} : vector<8x1024xbf16> to vector<8x800xbf16>
    %cst_28 = arith.constant dense<0.000000e+00> : vector<8x800xf32>
    %37 = tpu.matmul %35, %36, %cst_28 {dimension_numbers = #tpu.dot_dimension_numbers<[1], [0], [0], [1], [0, 0, 1, 1], [], []>} : vector<8x8xbf16>, vector<8x800xbf16>, vector<8x800xf32> -> vector<8x800xf32>
    %38 = arith.addf %33, %37 : vector<8x800xf32>
    %c2_29 = arith.constant 2 : index
    %c0_30 = arith.constant 0 : index
    %c0_31 = arith.constant 0 : index
    %39 = vector.load %arg4[%c2_29, %c0_30, %c0_31] : memref<27x8x8xbf16, #tpu.memory_space<vmem>>, vector<1x8x8xbf16>
    %40 = vector.shape_cast %39 : vector<1x8x8xbf16> to vector<8x8xbf16>
    %41 = vector.extract_strided_slice %27 {offsets = [0, 2], sizes = [8, 800], strides = [1, 1]} : vector<8x1024xbf16> to vector<8x800xbf16>
    %cst_32 = arith.constant dense<0.000000e+00> : vector<8x800xf32>
    %42 = tpu.matmul %40, %41, %cst_32 {dimension_numbers = #tpu.dot_dimension_numbers<[1], [0], [0], [1], [0, 0, 1, 1], [], []>} : vector<8x8xbf16>, vector<8x800xbf16>, vector<8x800xf32> -> vector<8x800xf32>
    %43 = arith.addf %38, %42 : vector<8x800xf32>
    %c3_33 = arith.constant 3 : index
    %c0_34 = arith.constant 0 : index
    %c0_35 = arith.constant 0 : index
    %44 = vector.load %arg4[%c3_33, %c0_34, %c0_35] : memref<27x8x8xbf16, #tpu.memory_space<vmem>>, vector<1x8x8xbf16>
    %45 = vector.shape_cast %44 : vector<1x8x8xbf16> to vector<8x8xbf16>
    %46 = vector.extract_strided_slice %27 {offsets = [0, 10], sizes = [8, 800], strides = [1, 1]} : vector<8x1024xbf16> to vector<8x800xbf16>
    %cst_36 = arith.constant dense<0.000000e+00> : vector<8x800xf32>
    %47 = tpu.matmul %45, %46, %cst_36 {dimension_numbers = #tpu.dot_dimension_numbers<[1], [0], [0], [1], [0, 0, 1, 1], [], []>} : vector<8x8xbf16>, vector<8x800xbf16>, vector<8x800xf32> -> vector<8x800xf32>
    %48 = arith.addf %43, %47 : vector<8x800xf32>
    %c4_37 = arith.constant 4 : index
    %c0_38 = arith.constant 0 : index
    %c0_39 = arith.constant 0 : index
    %49 = vector.load %arg4[%c4_37, %c0_38, %c0_39] : memref<27x8x8xbf16, #tpu.memory_space<vmem>>, vector<1x8x8xbf16>
    %50 = vector.shape_cast %49 : vector<1x8x8xbf16> to vector<8x8xbf16>
    %51 = vector.extract_strided_slice %27 {offsets = [0, 11], sizes = [8, 800], strides = [1, 1]} : vector<8x1024xbf16> to vector<8x800xbf16>
    %cst_40 = arith.constant dense<0.000000e+00> : vector<8x800xf32>
    %52 = tpu.matmul %50, %51, %cst_40 {dimension_numbers = #tpu.dot_dimension_numbers<[1], [0], [0], [1], [0, 0, 1, 1], [], []>} : vector<8x8xbf16>, vector<8x800xbf16>, vector<8x800xf32> -> vector<8x800xf32>
    %53 = arith.addf %48, %52 : vector<8x800xf32>
    %c5_41 = arith.constant 5 : index
    %c0_42 = arith.constant 0 : index
    %c0_43 = arith.constant 0 : index
    %54 = vector.load %arg4[%c5_41, %c0_42, %c0_43] : memref<27x8x8xbf16, #tpu.memory_space<vmem>>, vector<1x8x8xbf16>
    %55 = vector.shape_cast %54 : vector<1x8x8xbf16> to vector<8x8xbf16>
    %56 = vector.extract_strided_slice %27 {offsets = [0, 12], sizes = [8, 800], strides = [1, 1]} : vector<8x1024xbf16> to vector<8x800xbf16>
    %cst_44 = arith.constant dense<0.000000e+00> : vector<8x800xf32>
    %57 = tpu.matmul %55, %56, %cst_44 {dimension_numbers = #tpu.dot_dimension_numbers<[1], [0], [0], [1], [0, 0, 1, 1], [], []>} : vector<8x8xbf16>, vector<8x800xbf16>, vector<8x800xf32> -> vector<8x800xf32>
    %58 = arith.addf %53, %57 : vector<8x800xf32>
    %c6 = arith.constant 6 : index
    %c0_45 = arith.constant 0 : index
    %c0_46 = arith.constant 0 : index
    %59 = vector.load %arg4[%c6, %c0_45, %c0_46] : memref<27x8x8xbf16, #tpu.memory_space<vmem>>, vector<1x8x8xbf16>
    %60 = vector.shape_cast %59 : vector<1x8x8xbf16> to vector<8x8xbf16>
    %61 = vector.extract_strided_slice %27 {offsets = [0, 20], sizes = [8, 800], strides = [1, 1]} : vector<8x1024xbf16> to vector<8x800xbf16>
    %cst_47 = arith.constant dense<0.000000e+00> : vector<8x800xf32>
    %62 = tpu.matmul %60, %61, %cst_47 {dimension_numbers = #tpu.dot_dimension_numbers<[1], [0], [0], [1], [0, 0, 1, 1], [], []>} : vector<8x8xbf16>, vector<8x800xbf16>, vector<8x800xf32> -> vector<8x800xf32>
    %63 = arith.addf %58, %62 : vector<8x800xf32>
    %c7 = arith.constant 7 : index
    %c0_48 = arith.constant 0 : index
    %c0_49 = arith.constant 0 : index
    %64 = vector.load %arg4[%c7, %c0_48, %c0_49] : memref<27x8x8xbf16, #tpu.memory_space<vmem>>, vector<1x8x8xbf16>
    %65 = vector.shape_cast %64 : vector<1x8x8xbf16> to vector<8x8xbf16>
    %66 = vector.extract_strided_slice %27 {offsets = [0, 21], sizes = [8, 800], strides = [1, 1]} : vector<8x1024xbf16> to vector<8x800xbf16>
    %cst_50 = arith.constant dense<0.000000e+00> : vector<8x800xf32>
    %67 = tpu.matmul %65, %66, %cst_50 {dimension_numbers = #tpu.dot_dimension_numbers<[1], [0], [0], [1], [0, 0, 1, 1], [], []>} : vector<8x8xbf16>, vector<8x800xbf16>, vector<8x800xf32> -> vector<8x800xf32>
    %68 = arith.addf %63, %67 : vector<8x800xf32>
    %c8 = arith.constant 8 : index
    %c0_51 = arith.constant 0 : index
    %c0_52 = arith.constant 0 : index
    %69 = vector.load %arg4[%c8, %c0_51, %c0_52] : memref<27x8x8xbf16, #tpu.memory_space<vmem>>, vector<1x8x8xbf16>
    %70 = vector.shape_cast %69 : vector<1x8x8xbf16> to vector<8x8xbf16>
    %71 = vector.extract_strided_slice %27 {offsets = [0, 22], sizes = [8, 800], strides = [1, 1]} : vector<8x1024xbf16> to vector<8x800xbf16>
    %cst_53 = arith.constant dense<0.000000e+00> : vector<8x800xf32>
    %72 = tpu.matmul %70, %71, %cst_53 {dimension_numbers = #tpu.dot_dimension_numbers<[1], [0], [0], [1], [0, 0, 1, 1], [], []>} : vector<8x8xbf16>, vector<8x800xbf16>, vector<8x800xf32> -> vector<8x800xf32>
    %73 = arith.addf %68, %72 : vector<8x800xf32>
    %c9 = arith.constant 9 : index
    %c0_54 = arith.constant 0 : index
    %c0_55 = arith.constant 0 : index
    %74 = vector.load %arg4[%c9, %c0_54, %c0_55] : memref<27x8x8xbf16, #tpu.memory_space<vmem>>, vector<1x8x8xbf16>
    %75 = vector.shape_cast %74 : vector<1x8x8xbf16> to vector<8x8xbf16>
    %76 = vector.extract_strided_slice %27 {offsets = [0, 100], sizes = [8, 800], strides = [1, 1]} : vector<8x1024xbf16> to vector<8x800xbf16>
    %cst_56 = arith.constant dense<0.000000e+00> : vector<8x800xf32>
    %77 = tpu.matmul %75, %76, %cst_56 {dimension_numbers = #tpu.dot_dimension_numbers<[1], [0], [0], [1], [0, 0, 1, 1], [], []>} : vector<8x8xbf16>, vector<8x800xbf16>, vector<8x800xf32> -> vector<8x800xf32>
    %78 = arith.addf %73, %77 : vector<8x800xf32>
    %c10 = arith.constant 10 : index
    %c0_57 = arith.constant 0 : index
    %c0_58 = arith.constant 0 : index
    %79 = vector.load %arg4[%c10, %c0_57, %c0_58] : memref<27x8x8xbf16, #tpu.memory_space<vmem>>, vector<1x8x8xbf16>
    %80 = vector.shape_cast %79 : vector<1x8x8xbf16> to vector<8x8xbf16>
    %81 = vector.extract_strided_slice %27 {offsets = [0, 101], sizes = [8, 800], strides = [1, 1]} : vector<8x1024xbf16> to vector<8x800xbf16>
    %cst_59 = arith.constant dense<0.000000e+00> : vector<8x800xf32>
    %82 = tpu.matmul %80, %81, %cst_59 {dimension_numbers = #tpu.dot_dimension_numbers<[1], [0], [0], [1], [0, 0, 1, 1], [], []>} : vector<8x8xbf16>, vector<8x800xbf16>, vector<8x800xf32> -> vector<8x800xf32>
    %83 = arith.addf %78, %82 : vector<8x800xf32>
    %c11 = arith.constant 11 : index
    %c0_60 = arith.constant 0 : index
    %c0_61 = arith.constant 0 : index
    %84 = vector.load %arg4[%c11, %c0_60, %c0_61] : memref<27x8x8xbf16, #tpu.memory_space<vmem>>, vector<1x8x8xbf16>
    %85 = vector.shape_cast %84 : vector<1x8x8xbf16> to vector<8x8xbf16>
    %86 = vector.extract_strided_slice %27 {offsets = [0, 102], sizes = [8, 800], strides = [1, 1]} : vector<8x1024xbf16> to vector<8x800xbf16>
    %cst_62 = arith.constant dense<0.000000e+00> : vector<8x800xf32>
    %87 = tpu.matmul %85, %86, %cst_62 {dimension_numbers = #tpu.dot_dimension_numbers<[1], [0], [0], [1], [0, 0, 1, 1], [], []>} : vector<8x8xbf16>, vector<8x800xbf16>, vector<8x800xf32> -> vector<8x800xf32>
    %88 = arith.addf %83, %87 : vector<8x800xf32>
    %c12 = arith.constant 12 : index
    %c0_63 = arith.constant 0 : index
    %c0_64 = arith.constant 0 : index
    %89 = vector.load %arg4[%c12, %c0_63, %c0_64] : memref<27x8x8xbf16, #tpu.memory_space<vmem>>, vector<1x8x8xbf16>
    %90 = vector.shape_cast %89 : vector<1x8x8xbf16> to vector<8x8xbf16>
    %91 = vector.extract_strided_slice %27 {offsets = [0, 110], sizes = [8, 800], strides = [1, 1]} : vector<8x1024xbf16> to vector<8x800xbf16>
    %cst_65 = arith.constant dense<0.000000e+00> : vector<8x800xf32>
    %92 = tpu.matmul %90, %91, %cst_65 {dimension_numbers = #tpu.dot_dimension_numbers<[1], [0], [0], [1], [0, 0, 1, 1], [], []>} : vector<8x8xbf16>, vector<8x800xbf16>, vector<8x800xf32> -> vector<8x800xf32>
    %93 = arith.addf %88, %92 : vector<8x800xf32>
    %c13 = arith.constant 13 : index
    %c0_66 = arith.constant 0 : index
    %c0_67 = arith.constant 0 : index
    %94 = vector.load %arg4[%c13, %c0_66, %c0_67] : memref<27x8x8xbf16, #tpu.memory_space<vmem>>, vector<1x8x8xbf16>
    %95 = vector.shape_cast %94 : vector<1x8x8xbf16> to vector<8x8xbf16>
    %96 = vector.extract_strided_slice %27 {offsets = [0, 111], sizes = [8, 800], strides = [1, 1]} : vector<8x1024xbf16> to vector<8x800xbf16>
    %cst_68 = arith.constant dense<0.000000e+00> : vector<8x800xf32>
    %97 = tpu.matmul %95, %96, %cst_68 {dimension_numbers = #tpu.dot_dimension_numbers<[1], [0], [0], [1], [0, 0, 1, 1], [], []>} : vector<8x8xbf16>, vector<8x800xbf16>, vector<8x800xf32> -> vector<8x800xf32>
    %98 = arith.addf %93, %97 : vector<8x800xf32>
    %c14 = arith.constant 14 : index
    %c0_69 = arith.constant 0 : index
    %c0_70 = arith.constant 0 : index
    %99 = vector.load %arg4[%c14, %c0_69, %c0_70] : memref<27x8x8xbf16, #tpu.memory_space<vmem>>, vector<1x8x8xbf16>
    %100 = vector.shape_cast %99 : vector<1x8x8xbf16> to vector<8x8xbf16>
    %101 = vector.extract_strided_slice %27 {offsets = [0, 112], sizes = [8, 800], strides = [1, 1]} : vector<8x1024xbf16> to vector<8x800xbf16>
    %cst_71 = arith.constant dense<0.000000e+00> : vector<8x800xf32>
    %102 = tpu.matmul %100, %101, %cst_71 {dimension_numbers = #tpu.dot_dimension_numbers<[1], [0], [0], [1], [0, 0, 1, 1], [], []>} : vector<8x8xbf16>, vector<8x800xbf16>, vector<8x800xf32> -> vector<8x800xf32>
    %103 = arith.addf %98, %102 : vector<8x800xf32>
    %c15 = arith.constant 15 : index
    %c0_72 = arith.constant 0 : index
    %c0_73 = arith.constant 0 : index
    %104 = vector.load %arg4[%c15, %c0_72, %c0_73] : memref<27x8x8xbf16, #tpu.memory_space<vmem>>, vector<1x8x8xbf16>
    %105 = vector.shape_cast %104 : vector<1x8x8xbf16> to vector<8x8xbf16>
    %106 = vector.extract_strided_slice %27 {offsets = [0, 120], sizes = [8, 800], strides = [1, 1]} : vector<8x1024xbf16> to vector<8x800xbf16>
    %cst_74 = arith.constant dense<0.000000e+00> : vector<8x800xf32>
    %107 = tpu.matmul %105, %106, %cst_74 {dimension_numbers = #tpu.dot_dimension_numbers<[1], [0], [0], [1], [0, 0, 1, 1], [], []>} : vector<8x8xbf16>, vector<8x800xbf16>, vector<8x800xf32> -> vector<8x800xf32>
    %108 = arith.addf %103, %107 : vector<8x800xf32>
    %c16 = arith.constant 16 : index
    %c0_75 = arith.constant 0 : index
    %c0_76 = arith.constant 0 : index
    %109 = vector.load %arg4[%c16, %c0_75, %c0_76] : memref<27x8x8xbf16, #tpu.memory_space<vmem>>, vector<1x8x8xbf16>
    %110 = vector.shape_cast %109 : vector<1x8x8xbf16> to vector<8x8xbf16>
    %111 = vector.extract_strided_slice %27 {offsets = [0, 121], sizes = [8, 800], strides = [1, 1]} : vector<8x1024xbf16> to vector<8x800xbf16>
    %cst_77 = arith.constant dense<0.000000e+00> : vector<8x800xf32>
    %112 = tpu.matmul %110, %111, %cst_77 {dimension_numbers = #tpu.dot_dimension_numbers<[1], [0], [0], [1], [0, 0, 1, 1], [], []>} : vector<8x8xbf16>, vector<8x800xbf16>, vector<8x800xf32> -> vector<8x800xf32>
    %113 = arith.addf %108, %112 : vector<8x800xf32>
    %c17 = arith.constant 17 : index
    %c0_78 = arith.constant 0 : index
    %c0_79 = arith.constant 0 : index
    %114 = vector.load %arg4[%c17, %c0_78, %c0_79] : memref<27x8x8xbf16, #tpu.memory_space<vmem>>, vector<1x8x8xbf16>
    %115 = vector.shape_cast %114 : vector<1x8x8xbf16> to vector<8x8xbf16>
    %116 = vector.extract_strided_slice %27 {offsets = [0, 122], sizes = [8, 800], strides = [1, 1]} : vector<8x1024xbf16> to vector<8x800xbf16>
    %cst_80 = arith.constant dense<0.000000e+00> : vector<8x800xf32>
    %117 = tpu.matmul %115, %116, %cst_80 {dimension_numbers = #tpu.dot_dimension_numbers<[1], [0], [0], [1], [0, 0, 1, 1], [], []>} : vector<8x8xbf16>, vector<8x800xbf16>, vector<8x800xf32> -> vector<8x800xf32>
    %118 = arith.addf %113, %117 : vector<8x800xf32>
    %c18 = arith.constant 18 : index
    %c0_81 = arith.constant 0 : index
    %c0_82 = arith.constant 0 : index
    %119 = vector.load %arg4[%c18, %c0_81, %c0_82] : memref<27x8x8xbf16, #tpu.memory_space<vmem>>, vector<1x8x8xbf16>
    %120 = vector.shape_cast %119 : vector<1x8x8xbf16> to vector<8x8xbf16>
    %121 = vector.extract_strided_slice %27 {offsets = [0, 200], sizes = [8, 800], strides = [1, 1]} : vector<8x1024xbf16> to vector<8x800xbf16>
    %cst_83 = arith.constant dense<0.000000e+00> : vector<8x800xf32>
    %122 = tpu.matmul %120, %121, %cst_83 {dimension_numbers = #tpu.dot_dimension_numbers<[1], [0], [0], [1], [0, 0, 1, 1], [], []>} : vector<8x8xbf16>, vector<8x800xbf16>, vector<8x800xf32> -> vector<8x800xf32>
    %123 = arith.addf %118, %122 : vector<8x800xf32>
    %c19 = arith.constant 19 : index
    %c0_84 = arith.constant 0 : index
    %c0_85 = arith.constant 0 : index
    %124 = vector.load %arg4[%c19, %c0_84, %c0_85] : memref<27x8x8xbf16, #tpu.memory_space<vmem>>, vector<1x8x8xbf16>
    %125 = vector.shape_cast %124 : vector<1x8x8xbf16> to vector<8x8xbf16>
    %126 = vector.extract_strided_slice %27 {offsets = [0, 201], sizes = [8, 800], strides = [1, 1]} : vector<8x1024xbf16> to vector<8x800xbf16>
    %cst_86 = arith.constant dense<0.000000e+00> : vector<8x800xf32>
    %127 = tpu.matmul %125, %126, %cst_86 {dimension_numbers = #tpu.dot_dimension_numbers<[1], [0], [0], [1], [0, 0, 1, 1], [], []>} : vector<8x8xbf16>, vector<8x800xbf16>, vector<8x800xf32> -> vector<8x800xf32>
    %128 = arith.addf %123, %127 : vector<8x800xf32>
    %c20 = arith.constant 20 : index
    %c0_87 = arith.constant 0 : index
    %c0_88 = arith.constant 0 : index
    %129 = vector.load %arg4[%c20, %c0_87, %c0_88] : memref<27x8x8xbf16, #tpu.memory_space<vmem>>, vector<1x8x8xbf16>
    %130 = vector.shape_cast %129 : vector<1x8x8xbf16> to vector<8x8xbf16>
    %131 = vector.extract_strided_slice %27 {offsets = [0, 202], sizes = [8, 800], strides = [1, 1]} : vector<8x1024xbf16> to vector<8x800xbf16>
    %cst_89 = arith.constant dense<0.000000e+00> : vector<8x800xf32>
    %132 = tpu.matmul %130, %131, %cst_89 {dimension_numbers = #tpu.dot_dimension_numbers<[1], [0], [0], [1], [0, 0, 1, 1], [], []>} : vector<8x8xbf16>, vector<8x800xbf16>, vector<8x800xf32> -> vector<8x800xf32>
    %133 = arith.addf %128, %132 : vector<8x800xf32>
    %c21 = arith.constant 21 : index
    %c0_90 = arith.constant 0 : index
    %c0_91 = arith.constant 0 : index
    %134 = vector.load %arg4[%c21, %c0_90, %c0_91] : memref<27x8x8xbf16, #tpu.memory_space<vmem>>, vector<1x8x8xbf16>
    %135 = vector.shape_cast %134 : vector<1x8x8xbf16> to vector<8x8xbf16>
    %136 = vector.extract_strided_slice %27 {offsets = [0, 210], sizes = [8, 800], strides = [1, 1]} : vector<8x1024xbf16> to vector<8x800xbf16>
    %cst_92 = arith.constant dense<0.000000e+00> : vector<8x800xf32>
    %137 = tpu.matmul %135, %136, %cst_92 {dimension_numbers = #tpu.dot_dimension_numbers<[1], [0], [0], [1], [0, 0, 1, 1], [], []>} : vector<8x8xbf16>, vector<8x800xbf16>, vector<8x800xf32> -> vector<8x800xf32>
    %138 = arith.addf %133, %137 : vector<8x800xf32>
    %c22 = arith.constant 22 : index
    %c0_93 = arith.constant 0 : index
    %c0_94 = arith.constant 0 : index
    %139 = vector.load %arg4[%c22, %c0_93, %c0_94] : memref<27x8x8xbf16, #tpu.memory_space<vmem>>, vector<1x8x8xbf16>
    %140 = vector.shape_cast %139 : vector<1x8x8xbf16> to vector<8x8xbf16>
    %141 = vector.extract_strided_slice %27 {offsets = [0, 211], sizes = [8, 800], strides = [1, 1]} : vector<8x1024xbf16> to vector<8x800xbf16>
    %cst_95 = arith.constant dense<0.000000e+00> : vector<8x800xf32>
    %142 = tpu.matmul %140, %141, %cst_95 {dimension_numbers = #tpu.dot_dimension_numbers<[1], [0], [0], [1], [0, 0, 1, 1], [], []>} : vector<8x8xbf16>, vector<8x800xbf16>, vector<8x800xf32> -> vector<8x800xf32>
    %143 = arith.addf %138, %142 : vector<8x800xf32>
    %c23 = arith.constant 23 : index
    %c0_96 = arith.constant 0 : index
    %c0_97 = arith.constant 0 : index
    %144 = vector.load %arg4[%c23, %c0_96, %c0_97] : memref<27x8x8xbf16, #tpu.memory_space<vmem>>, vector<1x8x8xbf16>
    %145 = vector.shape_cast %144 : vector<1x8x8xbf16> to vector<8x8xbf16>
    %146 = vector.extract_strided_slice %27 {offsets = [0, 212], sizes = [8, 800], strides = [1, 1]} : vector<8x1024xbf16> to vector<8x800xbf16>
    %cst_98 = arith.constant dense<0.000000e+00> : vector<8x800xf32>
    %147 = tpu.matmul %145, %146, %cst_98 {dimension_numbers = #tpu.dot_dimension_numbers<[1], [0], [0], [1], [0, 0, 1, 1], [], []>} : vector<8x8xbf16>, vector<8x800xbf16>, vector<8x800xf32> -> vector<8x800xf32>
    %148 = arith.addf %143, %147 : vector<8x800xf32>
    %c24 = arith.constant 24 : index
    %c0_99 = arith.constant 0 : index
    %c0_100 = arith.constant 0 : index
    %149 = vector.load %arg4[%c24, %c0_99, %c0_100] : memref<27x8x8xbf16, #tpu.memory_space<vmem>>, vector<1x8x8xbf16>
    %150 = vector.shape_cast %149 : vector<1x8x8xbf16> to vector<8x8xbf16>
    %151 = vector.extract_strided_slice %27 {offsets = [0, 220], sizes = [8, 800], strides = [1, 1]} : vector<8x1024xbf16> to vector<8x800xbf16>
    %cst_101 = arith.constant dense<0.000000e+00> : vector<8x800xf32>
    %152 = tpu.matmul %150, %151, %cst_101 {dimension_numbers = #tpu.dot_dimension_numbers<[1], [0], [0], [1], [0, 0, 1, 1], [], []>} : vector<8x8xbf16>, vector<8x800xbf16>, vector<8x800xf32> -> vector<8x800xf32>
    %153 = arith.addf %148, %152 : vector<8x800xf32>
    %c25 = arith.constant 25 : index
    %c0_102 = arith.constant 0 : index
    %c0_103 = arith.constant 0 : index
    %154 = vector.load %arg4[%c25, %c0_102, %c0_103] : memref<27x8x8xbf16, #tpu.memory_space<vmem>>, vector<1x8x8xbf16>
    %155 = vector.shape_cast %154 : vector<1x8x8xbf16> to vector<8x8xbf16>
    %156 = vector.extract_strided_slice %27 {offsets = [0, 221], sizes = [8, 800], strides = [1, 1]} : vector<8x1024xbf16> to vector<8x800xbf16>
    %cst_104 = arith.constant dense<0.000000e+00> : vector<8x800xf32>
    %157 = tpu.matmul %155, %156, %cst_104 {dimension_numbers = #tpu.dot_dimension_numbers<[1], [0], [0], [1], [0, 0, 1, 1], [], []>} : vector<8x8xbf16>, vector<8x800xbf16>, vector<8x800xf32> -> vector<8x800xf32>
    %158 = arith.addf %153, %157 : vector<8x800xf32>
    %c26 = arith.constant 26 : index
    %c0_105 = arith.constant 0 : index
    %c0_106 = arith.constant 0 : index
    %159 = vector.load %arg4[%c26, %c0_105, %c0_106] : memref<27x8x8xbf16, #tpu.memory_space<vmem>>, vector<1x8x8xbf16>
    %160 = vector.shape_cast %159 : vector<1x8x8xbf16> to vector<8x8xbf16>
    %161 = vector.extract_strided_slice %27 {offsets = [0, 222], sizes = [8, 800], strides = [1, 1]} : vector<8x1024xbf16> to vector<8x800xbf16>
    %cst_107 = arith.constant dense<0.000000e+00> : vector<8x800xf32>
    %162 = tpu.matmul %160, %161, %cst_107 {dimension_numbers = #tpu.dot_dimension_numbers<[1], [0], [0], [1], [0, 0, 1, 1], [], []>} : vector<8x8xbf16>, vector<8x800xbf16>, vector<8x800xf32> -> vector<8x800xf32>
    %163 = arith.addf %158, %162 : vector<8x800xf32>
    %cst_108 = arith.constant 0.000000e+00 : f32
    %164 = vector.broadcast %cst_108 : f32 to vector<8x800xf32>
    %c0_109 = arith.constant 0 : index
    %c0_110 = arith.constant 0 : index
    %c0_111 = arith.constant 0 : index
    %165 = vector.load %arg5[%c0_109, %c0_110, %c0_111] : memref<8x8x32xbf16, #tpu.memory_space<vmem>>, vector<1x8x32xbf16>
    %166 = vector.shape_cast %165 : vector<1x8x32xbf16> to vector<8x32xbf16>
    %167 = vector.extract_strided_slice %1 {offsets = [0, 111], sizes = [32, 800], strides = [1, 1]} : vector<32x1024xbf16> to vector<32x800xbf16>
    %cst_112 = arith.constant dense<0.000000e+00> : vector<8x800xf32>
    %168 = tpu.matmul %166, %167, %cst_112 {dimension_numbers = #tpu.dot_dimension_numbers<[1], [0], [0], [1], [0, 0, 1, 1], [], []>} : vector<8x32xbf16>, vector<32x800xbf16>, vector<8x800xf32> -> vector<8x800xf32>
    %169 = arith.addf %164, %168 : vector<8x800xf32>
    %c1_113 = arith.constant 1 : index
    %c0_114 = arith.constant 0 : index
    %c0_115 = arith.constant 0 : index
    %170 = vector.load %arg5[%c1_113, %c0_114, %c0_115] : memref<8x8x32xbf16, #tpu.memory_space<vmem>>, vector<1x8x32xbf16>
    %171 = vector.shape_cast %170 : vector<1x8x32xbf16> to vector<8x32xbf16>
    %172 = vector.extract_strided_slice %1 {offsets = [0, 110], sizes = [32, 800], strides = [1, 1]} : vector<32x1024xbf16> to vector<32x800xbf16>
    %cst_116 = arith.constant dense<0.000000e+00> : vector<8x800xf32>
    %173 = tpu.matmul %171, %172, %cst_116 {dimension_numbers = #tpu.dot_dimension_numbers<[1], [0], [0], [1], [0, 0, 1, 1], [], []>} : vector<8x32xbf16>, vector<32x800xbf16>, vector<8x800xf32> -> vector<8x800xf32>
    %174 = arith.addf %169, %173 : vector<8x800xf32>
    %c2_117 = arith.constant 2 : index
    %c0_118 = arith.constant 0 : index
    %c0_119 = arith.constant 0 : index
    %175 = vector.load %arg5[%c2_117, %c0_118, %c0_119] : memref<8x8x32xbf16, #tpu.memory_space<vmem>>, vector<1x8x32xbf16>
    %176 = vector.shape_cast %175 : vector<1x8x32xbf16> to vector<8x32xbf16>
    %177 = vector.extract_strided_slice %1 {offsets = [0, 101], sizes = [32, 800], strides = [1, 1]} : vector<32x1024xbf16> to vector<32x800xbf16>
    %cst_120 = arith.constant dense<0.000000e+00> : vector<8x800xf32>
    %178 = tpu.matmul %176, %177, %cst_120 {dimension_numbers = #tpu.dot_dimension_numbers<[1], [0], [0], [1], [0, 0, 1, 1], [], []>} : vector<8x32xbf16>, vector<32x800xbf16>, vector<8x800xf32> -> vector<8x800xf32>
    %179 = arith.addf %174, %178 : vector<8x800xf32>
    %c3_121 = arith.constant 3 : index
    %c0_122 = arith.constant 0 : index
    %c0_123 = arith.constant 0 : index
    %180 = vector.load %arg5[%c3_121, %c0_122, %c0_123] : memref<8x8x32xbf16, #tpu.memory_space<vmem>>, vector<1x8x32xbf16>
    %181 = vector.shape_cast %180 : vector<1x8x32xbf16> to vector<8x32xbf16>
    %182 = vector.extract_strided_slice %1 {offsets = [0, 100], sizes = [32, 800], strides = [1, 1]} : vector<32x1024xbf16> to vector<32x800xbf16>
    %cst_124 = arith.constant dense<0.000000e+00> : vector<8x800xf32>
    %183 = tpu.matmul %181, %182, %cst_124 {dimension_numbers = #tpu.dot_dimension_numbers<[1], [0], [0], [1], [0, 0, 1, 1], [], []>} : vector<8x32xbf16>, vector<32x800xbf16>, vector<8x800xf32> -> vector<8x800xf32>
    %184 = arith.addf %179, %183 : vector<8x800xf32>
    %c4_125 = arith.constant 4 : index
    %c0_126 = arith.constant 0 : index
    %c0_127 = arith.constant 0 : index
    %185 = vector.load %arg5[%c4_125, %c0_126, %c0_127] : memref<8x8x32xbf16, #tpu.memory_space<vmem>>, vector<1x8x32xbf16>
    %186 = vector.shape_cast %185 : vector<1x8x32xbf16> to vector<8x32xbf16>
    %187 = vector.extract_strided_slice %1 {offsets = [0, 11], sizes = [32, 800], strides = [1, 1]} : vector<32x1024xbf16> to vector<32x800xbf16>
    %cst_128 = arith.constant dense<0.000000e+00> : vector<8x800xf32>
    %188 = tpu.matmul %186, %187, %cst_128 {dimension_numbers = #tpu.dot_dimension_numbers<[1], [0], [0], [1], [0, 0, 1, 1], [], []>} : vector<8x32xbf16>, vector<32x800xbf16>, vector<8x800xf32> -> vector<8x800xf32>
    %189 = arith.addf %184, %188 : vector<8x800xf32>
    %c5_129 = arith.constant 5 : index
    %c0_130 = arith.constant 0 : index
    %c0_131 = arith.constant 0 : index
    %190 = vector.load %arg5[%c5_129, %c0_130, %c0_131] : memref<8x8x32xbf16, #tpu.memory_space<vmem>>, vector<1x8x32xbf16>
    %191 = vector.shape_cast %190 : vector<1x8x32xbf16> to vector<8x32xbf16>
    %192 = vector.extract_strided_slice %1 {offsets = [0, 10], sizes = [32, 800], strides = [1, 1]} : vector<32x1024xbf16> to vector<32x800xbf16>
    %cst_132 = arith.constant dense<0.000000e+00> : vector<8x800xf32>
    %193 = tpu.matmul %191, %192, %cst_132 {dimension_numbers = #tpu.dot_dimension_numbers<[1], [0], [0], [1], [0, 0, 1, 1], [], []>} : vector<8x32xbf16>, vector<32x800xbf16>, vector<8x800xf32> -> vector<8x800xf32>
    %194 = arith.addf %189, %193 : vector<8x800xf32>
    %c6_133 = arith.constant 6 : index
    %c0_134 = arith.constant 0 : index
    %c0_135 = arith.constant 0 : index
    %195 = vector.load %arg5[%c6_133, %c0_134, %c0_135] : memref<8x8x32xbf16, #tpu.memory_space<vmem>>, vector<1x8x32xbf16>
    %196 = vector.shape_cast %195 : vector<1x8x32xbf16> to vector<8x32xbf16>
    %197 = vector.extract_strided_slice %1 {offsets = [0, 1], sizes = [32, 800], strides = [1, 1]} : vector<32x1024xbf16> to vector<32x800xbf16>
    %cst_136 = arith.constant dense<0.000000e+00> : vector<8x800xf32>
    %198 = tpu.matmul %196, %197, %cst_136 {dimension_numbers = #tpu.dot_dimension_numbers<[1], [0], [0], [1], [0, 0, 1, 1], [], []>} : vector<8x32xbf16>, vector<32x800xbf16>, vector<8x800xf32> -> vector<8x800xf32>
    %199 = arith.addf %194, %198 : vector<8x800xf32>
    %c7_137 = arith.constant 7 : index
    %c0_138 = arith.constant 0 : index
    %c0_139 = arith.constant 0 : index
    %200 = vector.load %arg5[%c7_137, %c0_138, %c0_139] : memref<8x8x32xbf16, #tpu.memory_space<vmem>>, vector<1x8x32xbf16>
    %201 = vector.shape_cast %200 : vector<1x8x32xbf16> to vector<8x32xbf16>
    %202 = vector.extract_strided_slice %1 {offsets = [0, 0], sizes = [32, 800], strides = [1, 1]} : vector<32x1024xbf16> to vector<32x800xbf16>
    %cst_140 = arith.constant dense<0.000000e+00> : vector<8x800xf32>
    %203 = tpu.matmul %201, %202, %cst_140 {dimension_numbers = #tpu.dot_dimension_numbers<[1], [0], [0], [1], [0, 0, 1, 1], [], []>} : vector<8x32xbf16>, vector<32x800xbf16>, vector<8x800xf32> -> vector<8x800xf32>
    %204 = arith.addf %199, %203 : vector<8x800xf32>
    %205 = vector.broadcast %9 : vector<8x1xf32> to vector<8x800xf32>
    %206 = arith.addf %163, %205 : vector<8x800xf32>
    %cst_141 = arith.constant 0.000000e+00 : f32
    %207 = vector.broadcast %cst_141 : f32 to vector<8x800xf32>
    %208 = arith.cmpf oge, %206, %207 : vector<8x800xf32>
    %cst_142 = arith.constant 0.00999999977 : f32
    %209 = vector.broadcast %cst_142 : f32 to vector<8x800xf32>
    %210 = arith.mulf %209, %206 : vector<8x800xf32>
    %211 = arith.select %208, %206, %210 : vector<8x800xi1>, vector<8x800xf32>
    %212 = vector.broadcast %11 : vector<8x1xf32> to vector<8x800xf32>
    %213 = arith.mulf %211, %212 : vector<8x800xf32>
    %214 = vector.broadcast %13 : vector<8x1xf32> to vector<8x800xf32>
    %215 = arith.addf %213, %214 : vector<8x800xf32>
    %216 = arith.addf %215, %204 : vector<8x800xf32>
    %c0_143 = arith.constant 0 : index
    %c0_144 = arith.constant 0 : index
    %c0_145 = arith.constant 0 : index
    %217 = vector.load %arg7[%c0_143, %c0_144, %c0_145] : memref<1x8x800xf32, #tpu.memory_space<vmem>>, vector<1x8x800xf32>
    %218 = vector.shape_cast %217 : vector<1x8x800xf32> to vector<8x800xf32>
    %219 = vector.shape_cast %216 : vector<8x800xf32> to vector<1x8x800xf32>
    tpu.vector_store %arg7[%c0_143, %c0_144, %c0_145], %219 {strides = array<i32>} : memref<1x8x800xf32, #tpu.memory_space<vmem>>, vector<1x8x800xf32>,
    return
  }
  func.func @transform_0(%arg0: i32) -> (i32, i32, i32) {
    %c0_i32 = arith.constant 0 : i32
    %c0_i32_0 = arith.constant 0 : i32
    %c0_i32_1 = arith.constant 0 : i32
    return %arg0, %c0_i32, %c0_i32_0 : i32, i32, i32
  }
  func.func @transform_1(%arg0: i32) -> (i32, i32) {
    %c0_i32 = arith.constant 0 : i32
    %c0_i32_0 = arith.constant 0 : i32
    %c0_i32_1 = arith.constant 0 : i32
    return %c0_i32, %c0_i32_0 : i32, i32
  }
  func.func @transform_2(%arg0: i32) -> (i32, i32) {
    %c0_i32 = arith.constant 0 : i32
    %c0_i32_0 = arith.constant 0 : i32
    %c0_i32_1 = arith.constant 0 : i32
    return %c0_i32, %c0_i32_0 : i32, i32
  }
  func.func @transform_3(%arg0: i32) -> (i32, i32, i32) {
    %c0_i32 = arith.constant 0 : i32
    %c0_i32_0 = arith.constant 0 : i32
    %c0_i32_1 = arith.constant 0 : i32
    %c0_i32_2 = arith.constant 0 : i32
    return %c0_i32, %c0_i32_0, %c0_i32_1 : i32, i32, i32
  }
  func.func @transform_4(%arg0: i32) -> (i32, i32, i32) {
    %c0_i32 = arith.constant 0 : i32
    %c0_i32_0 = arith.constant 0 : i32
    %c0_i32_1 = arith.constant 0 : i32
    %c0_i32_2 = arith.constant 0 : i32
    return %c0_i32, %c0_i32_0, %c0_i32_1 : i32, i32, i32
  }
  func.func @transform_5(%arg0: i32) -> (i32, i32, i32) {
    %c0_i32 = arith.constant 0 : i32
    %c0_i32_0 = arith.constant 0 : i32
    %c0_i32_1 = arith.constant 0 : i32
    %c0_i32_2 = arith.constant 0 : i32
    return %c0_i32, %c0_i32_0, %c0_i32_1 : i32, i32, i32
  }
  func.func @transform_6(%arg0: i32) -> (i32, i32, i32) {
    %c0_i32 = arith.constant 0 : i32
    %c0_i32_0 = arith.constant 0 : i32
    %c0_i32_1 = arith.constant 0 : i32
    return %arg0, %c0_i32, %c0_i32_0 : i32, i32, i32
  }
}

</mosaic_0001>

<bundles_post_ra>
// kernel: subnetdown_forward.1
= control target key start
LH: loop header
LB: loop body
LE: loop exit
PB: predicated region body
PF: predicated region fallthrough
CT: control target
= control target key end

     0   :  { %s6294_s21 = smov 0   ;;  %s9443_s0 = inlined_call_operand.vmem [shape: bf16[2,32,1024], index: 0, kind: input, shape index: {}]   ;;  %s9444_s1 = inlined_call_operand.vmem [shape: f32[1,1024], index: 1, kind: input, shape index: {}]   ;;  %s9445_s2 = inlined_call_operand.vmem [shape: bf16[8,32], index: 2, kind: input, shape index: {}]   ;;  %s9446_s3 = inlined_call_operand.vmem [shape: bf16[27,8,8], index: 3, kind: input, shape index: {}]   ;;  %s9447_s4 = inlined_call_operand.vmem [shape: bf16[8,8,32], index: 4, kind: input, shape index: {}]   ;;  %s9448_s5 = inlined_call_operand.vmem [shape: f32[6,8,1], index: 5, kind: input, shape index: {}]   ;;  %s9449_s6 = inlined_call_operand.vmem [shape: f32[2,8,800], index: 6, kind: output, shape index: {}]  }
   0x1 LB: > { %s5803_s22 = sadd.s32 4294967295, %s6230_s21   ;;  %p5807_p0 = scmp.ge.s32.totalorder %s6230_s21, 1  ;;  %s6230_s21 = sphi %s6294_s21, %s16_s21  }
   0x2   : > { %p212_p1 = scmp.lt.s32.totalorder %s6230_s21, 3 }
   0x4   : > { %p213_p2 = pnand %p5807_p0, %p212_p1 }
   0x6   : > { %216 = sbr.rel (%p213_p2) target bundleno = 1408 (0x580), region = 44 }
   0xb   : > { %p242_p3 = scmp.lt.s32.totalorder %s5803_s22, 1  ;;  %v269_v0 = vld [vmem:[%s9448_s5] sm:$0xff]  ;;  %v6232_v1 = vmov 0   ;;  %v5812_v2 = vld [vmem:[%s9448_s5 + $0x10] sm:$0xff]  ;;  %vm366_vm0 = vcmask 261120   ;;  %v5811_v6 = vld [vmem:[%s9448_s5 + $0x8] sm:$0xff] }
   0xc   : > { %6221 = vset.pattern.permute.xlu0 %v6232_v1  ;;  %6222 = vset.pattern.permute.xlu1 %v6232_v1  ;;  %v280_v27 = vld [vmem:[%s9445_s2] sm:$0xf]  ;;  %s6233_s13 = smov 127   ;;  %s6234_s14 = smov 126   ;;  %vm573_vm1 = vcmask 1039360   ;;  %vm584_vm2 = vcmask 1043456  }
   0xd   : > { %s9633_s22 = smov (!%p242_p3, %s5803_s22), 1  ;;  %283 = vperm.xlu0 %6221, %v269_v0   ;;  %6223 = vset.pattern.permute.xlu2 %v6232_v1  ;;  %v6417_v58 = vld [vmem:[%s9444_s1] sm:$0xff]  ;;  %s6235_s15 = smov 118   ;;  %vm580_vm3 = vcmask 64512   ;;  %vm828_vm4 = vcmask 1031168   ;;  %vm973_vm5 = vcmask 965632  }
   0xe   : > { %497 = vperm.xlu1 %6222, %v5812_v2   ;;  %s6168_s27 = sshll.u32 %s9633_s22, 7  ;;  %v510_v0 = vperm.slane %v6417_v58, 0  ;;  %v511_v2 = vperm.slane %v6417_v58, 1  ;;  %s6236_s16 = smov 117   ;;  %vm1118_vm6 = vcmask 957440   ;;  %vm1263_vm7 = vcmask 949248  }
   0xf   : > { %s6314_s30 = scalar_lea.vmem %s9443_s0, %s6168_s27  ;;  %s6237_s17 = smov 116   ;;  %vm1408_vm8 = vcmask 883712   ;;  %vm1553_vm9 = vcmask 875520   ;;  %vm1698_vm10 = vcmask 867328   ;;  %vm1847_vm11 = vcmask 228352  }
  0x10   : > { %v5850_v3 = vld [vmem:[%s6314_s30 + $0x40] sm:$0xf]  ;;  %v6177_v5 = vld [vmem:[%s6314_s30 + $0x44] sm:$0xf]  ;;  %v5858_v9 = vld [vmem:[%s6314_s30 + $0x48] sm:$0xf] }
  0x11   : > { %v6181_v4 = vld [vmem:[%s6314_s30 + $0x5c] sm:$0xf0]  ;;  %v5852_v8 = vld [vmem:[%s6314_s30 + $0x60] sm:$0xf0]  ;;  %v6182_v10 = vld [vmem:[%s6314_s30 + $0x64] sm:$0xf0] }
  0x12   : > { %v6322_v7 = vor.u32 %v6181_v4, %v5850_v3  ;;  %v6327_v11 = vor.u32 %v6177_v5, %v5852_v8  ;;  %v6329_v12 = vor.u32 %v6182_v10, %v5858_v9  ;;  %v6178_v13 = vld [vmem:[%s6314_s30 + $0x4c] sm:$0xf]  ;;  %v5818_v15 = vld [vmem:[%s6314_s30] sm:$0xf]  ;;  %v6169_v18 = vld [vmem:[%s6314_s30 + $0x4] sm:$0xf] }
  0x13   : > { %v5860_v14 = vld [vmem:[%s6314_s30 + $0x68] sm:$0xf0]  ;;  %v6173_v17 = vld [vmem:[%s6314_s30 + $0x1c] sm:$0xf0]  ;;  %v5820_v19 = vld [vmem:[%s6314_s30 + $0x20] sm:$0xf0] }
  0x14   : > { %9514 = vst [vmem:[#allocation2_spill] sm:$0xff] %v6322_v7  ;;  %376 = vmatpush.bf16.msra.mxu0 %v6322_v7  ;;  %v6335_v16 = vor.u32 %v6178_v13, %v5860_v14  ;;  %389 = vmatpush.bf16.msra.mxu1 %v6327_v11  ;;  %v6342_v20 = vor.u32 %v6173_v17, %v5818_v15  ;;  %v5826_v22 = vld [vmem:[%s6314_s30 + $0x8] sm:$0xf]  ;;  %v6170_v24 = vld [vmem:[%s6314_s30 + $0xc] sm:$0xf]  ;;  %s6238_s18 = smov 108  }
  0x15   : > { %402 = vmatpush.bf16.msra.mxu2 %v6329_v12  ;;  %v6344_v21 = vor.u32 %v6169_v18, %v5820_v19  ;;  %v6174_v23 = vld [vmem:[%s6314_s30 + $0x24] sm:$0xf0]  ;;  %v5828_v26 = vld [vmem:[%s6314_s30 + $0x28] sm:$0xf0]  ;;  %v5866_v28 = vld [vmem:[%s6314_s30 + $0x50] sm:$0xf]  ;;  %484 = vperm.xlu0 %6221, %v5811_v6  }
  0x16   : > { %9515 = vst [vmem:[#allocation3_spill] sm:$0xff] %v6335_v16  ;;  %415 = vmatpush.bf16.msra.mxu3 %v6335_v16  ;;  %v6350_v25 = vor.u32 %v6174_v23, %v5826_v22  ;;  %v6183_v29 = vld [vmem:[%s6314_s30 + $0x6c] sm:$0xf0]  ;;  %v6358_v30 = vor.u32 %v6170_v24, %v5828_v26  ;;  %v6179_v32 = vld [vmem:[%s6314_s30 + $0x54] sm:$0xf]  ;;  %v512_v22 = vperm.slane %v6417_v58, 2 }
  0x17   : > { %9516 = vst [vmem:[#allocation4_spill] sm:$0xff] %v6342_v20  ;;  %v6360_v31 = vor.u32 %v6183_v29, %v5866_v28  ;;  %v5868_v33 = vld [vmem:[%s6314_s30 + $0x70] sm:$0xf0]  ;;  %v5874_v34 = vld [vmem:[%s6314_s30 + $0x58] sm:$0xf]  ;;  %v513_v26 = vperm.slane %v6417_v58, 3 }
  0x18   : > { %9517 = vst [vmem:[#allocation5_spill] sm:$0xff] %v6344_v21  ;;  %377 = vmatpush.bf16.msra.mxu0 %v6342_v20  ;;  %v6366_v35 = vor.u32 %v6179_v32, %v5868_v33  ;;  %v6184_v36 = vld [vmem:[%s6314_s30 + $0x74] sm:$0xf0]  ;;  %v6180_v37 = vld [vmem:[%s6314_s30 + $0x5c] sm:$0xf]  ;;  %390 = vmatpush.bf16.msra.mxu1 %v6344_v21  ;;  %s6239_s23 = smov 107  }
  0x19   : > { %9518 = vst [vmem:[#allocation6_spill] sm:$0xff] %v6350_v25  ;;  %v5876_v38 = vld [vmem:[%s6314_s30 + $0x78] sm:$0xf0]  ;;  %403 = vmatpush.bf16.msra.mxu2 %v6350_v25  ;;  %v6373_v39 = vor.u32 %v6184_v36, %v5874_v34  ;;  %v5834_v40 = vld [vmem:[%s6314_s30 + $0x10] sm:$0xf]  ;;  %s6240_s24 = smov 106  }
  0x1a   : > { %9519 = vst [vmem:[#allocation7_spill] sm:$0xff] %v6358_v30  ;;  %v6175_v41 = vld [vmem:[%s6314_s30 + $0x2c] sm:$0xf0]  ;;  %v6171_v42 = vld [vmem:[%s6314_s30 + $0x14] sm:$0xf]  ;;  %416 = vmatpush.bf16.msra.mxu3 %v6358_v30  ;;  %v6380_v43 = vor.u32 %v6180_v37, %v5876_v38  ;;  %s6241_s27 = smov 28  }
  0x1b   : > { %9520 = vst [vmem:[#allocation8_spill] sm:$0xff] %v6360_v31  ;;  %v6382_v44 = vor.u32 %v6175_v41, %v5834_v40  ;;  %v5836_v45 = vld [vmem:[%s6314_s30 + $0x30] sm:$0xf0]  ;;  %v5842_v46 = vld [vmem:[%s6314_s30 + $0x18] sm:$0xf]  ;;  %5880 = vmatmul.msk.bf16.vlgmr.msra.gmra.mxu0 %vm366_vm0, %v280_v27  ;;  %5881 = vmatmul.msk.bf16.vlgmr.msra.gmra.mxu1 %vm366_vm0, %v280_v27  ;;  %s6243_s7 = smov 26  }
  0x1c   : > { %9521 = vst [vmem:[#allocation9_spill] sm:$0xff] %v6366_v35  ;;  %428 = vmatpush.bf16.msrb.mxu0 %v6360_v31  ;;  %v6176_v47 = vld [vmem:[%s6314_s30 + $0x34] sm:$0xf0]  ;;  %441 = vmatpush.bf16.msrb.mxu1 %v6366_v35  ;;  %v6389_v48 = vor.u32 %v6171_v42, %v5836_v45  ;;  %v6172_v49 = vld [vmem:[%s6314_s30 + $0x1c] sm:$0xf]  ;;  %s6244_s10 = smov 18  }
  0x1d   : > { %9522 = vst [vmem:[#allocation10_spill] sm:$0xff] %v6373_v39  ;;  %v5844_v50 = vld [vmem:[%s6314_s30 + $0x38] sm:$0xf0]  ;;  %5882 = vmatmul.msk.bf16.vlgmr.msra.gmra.mxu2 %vm366_vm0, %v280_v27  ;;  %5883 = vmatmul.msk.bf16.vlgmr.msra.gmra.mxu3 %vm366_vm0, %v280_v27  ;;  %v6397_v51 = vor.u32 %v6176_v47, %v5842_v46  ;;  %s6242_s30 = smov 27   ;;  %s6247_s20 = smov 8   ;;  %vm1995_vm12 = vcmask 220160  }
  0x1e   : > { %9523 = vst [vmem:[#allocation11_spill] sm:$0xff] %v6380_v43  ;;  %454 = vmatpush.bf16.msrb.mxu2 %v6373_v39  ;;  %467 = vmatpush.bf16.msrb.mxu3 %v6380_v43  ;;  %v6401_v52 = vor.u32 %v6172_v49, %v5844_v50  ;;  %s6248_s25 = smov 7   ;;  %s6249_s29 = smov 6   ;;  %vm2143_vm13 = vcmask 211968   ;;  %vm2291_vm14 = vcmask 146432   ;;  %vm2439_vm15 = vcmask 138240  }
  0x1f   : > { %9524 = vst [vmem:[#allocation12_spill] sm:$0xff] %v6382_v44  ;;  %s6250_s9 = smov 56   ;;  %s6251_s11 = smov 55  }
  0x20   : > { %9525 = vst [vmem:[#allocation13_spill] sm:$0xff] %v6389_v48  ;;  %429 = vmatpush.bf16.msrb.mxu0 %v6382_v44  ;;  %442 = vmatpush.bf16.msrb.mxu1 %v6389_v48  ;;  %s6255_s28 = smov 44   ;;  %s6256_s8 = smov 36  }
  0x21   : > { %9526 = vst [vmem:[#allocation14_spill] sm:$0xff] %v6397_v51 }
  0x22   : > { %9527 = vst [vmem:[#allocation15_spill] sm:$0xff] %v6401_v52  ;;  %455 = vmatpush.bf16.msrb.mxu2 %v6397_v51  ;;  %468 = vmatpush.bf16.msrb.mxu3 %v6401_v52 }
  0x2b   : > { %5884 = vmatmul.msk.bf16.vlgmr.msrb.gmra.mxu0 %vm366_vm0, %v280_v27  ;;  %5885 = vmatmul.msk.bf16.vlgmr.msrb.gmra.mxu1 %vm366_vm0, %v280_v27 }
  0x2d   : > { %5886 = vmatmul.msk.bf16.vlgmr.msrb.gmra.mxu2 %vm366_vm0, %v280_v27  ;;  %5887 = vmatmul.msk.bf16.vlgmr.msrb.gmra.mxu3 %vm366_vm0, %v280_v27 }
  0x7f   : > { %v6410_v53 = vpop.permute.xlu0 %283 }
  0x80   : > { %v6421_v62 = vpop.permute.xlu1 %497 }
  0x87   : > { %v6419_v61 = vpop.permute.xlu0 %484 }
  0x98   : > { %v379_v54 = vpop.f32.mrf.mxu0  ;;  %v392_v56 = vpop.f32.mrf.mxu1 }
  0x99   : > { %v380_v55 = vadd.f32 %v379_v54, %v6410_v53  ;;  %v393_v57 = vadd.f32 %v392_v56, %v6410_v53 }
  0x9b   : > { %v474_v59 = vmax.f32 %v380_v55, 0.0  ;;  %v475_v60 = vmax.f32 %v393_v57, 0.0  ;;  %v514_v57 = vperm.slane %v6417_v58, 4 }
  0x9d   : > { %v487_v63 = vmul.f32 %v6419_v61, %v474_v59  ;;  %v488_v1 = vmul.f32 %v6419_v61, %v475_v60  ;;  %v515_v60 = vperm.slane %v6417_v58, 5 }
  0x9f   : > { %v500_v3 = vadd.f32 %v6421_v62, %v487_v63  ;;  %v501_v5 = vadd.f32 %v6421_v62, %v488_v1 }
  0xa0   : > { %v405_v4 = vpop.f32.mrf.mxu2  ;;  %v418_v8 = vpop.f32.mrf.mxu3 }
  0xa1   : > { %v406_v6 = vadd.f32 %v405_v4, %v6410_v53  ;;  %v381_v9 = vpop.f32.mrf.mxu0  ;;  %v526_v10 = vmul.f32 %v510_v0, %v500_v3  ;;  %v419_v13 = vadd.f32 %v418_v8, %v6410_v53  ;;  %v394_v14 = vpop.f32.mrf.mxu1  ;;  %v527_v17 = vmul.f32 %v511_v2, %v501_v5 }
  0xa3   : > { %v476_v15 = vmax.f32 %v406_v6, 0.0  ;;  %v477_v18 = vmax.f32 %v419_v13, 0.0  ;;  %v534_v23 = vpack.c.bf16 %v527_v17, %v526_v10 }
  0xa5   : > { %v489_v19 = vmul.f32 %v6419_v61, %v476_v15  ;;  %v490_v24 = vmul.f32 %v6419_v61, %v477_v18  ;;  %v545_v28 = vunpack.c.l.b16 %v534_v23  ;;  %v546_v29 = vunpack.c.h.b16 %v534_v23 }
  0xa6   : > { %v517_v23 = vperm.slane %v6417_v58, 7 }
  0xa7   : > { %v502_v27 = vadd.f32 %v6421_v62, %v489_v19  ;;  %v503_v32 = vadd.f32 %v6421_v62, %v490_v24  ;;  %v6437_v36 = vpack.c.b16 %v545_v28, %v545_v28  ;;  %v6439_v37 = vpack.c.b16 %v546_v29, %v546_v29 }
  0xa8   : > { %v407_v33 = vpop.f32.mrf.mxu2  ;;  %v420_v38 = vpop.f32.mrf.mxu3  ;;  %v516_v19 = vperm.slane %v6417_v58, 6 }
  0xa9   : > { %v528_v34 = vmul.f32 %v512_v22, %v502_v27  ;;  %v431_v40 = vpop.f32.mrf.mxu0  ;;  %v529_v41 = vmul.f32 %v513_v26, %v503_v32  ;;  %v444_v45 = vpop.f32.mrf.mxu1  ;;  %561 = vrot.lane.b32.xlu2 %v6439_v37, %s6233_s13  ;;  %559 = vrot.lane.b32.xlu1 %v6437_v36, %s6233_s13 }
  0xaa   : > { %v432_v42 = vadd.f32 %v431_v40, %v6410_v53  ;;  %v445_v46 = vadd.f32 %v444_v45, %v6410_v53 }
  0xab   : > { %v535_v47 = vpack.c.bf16 %v529_v41, %v528_v34 }
  0xac   : > { %v478_v49 = vmax.f32 %v432_v42, 0.0  ;;  %v479_v50 = vmax.f32 %v445_v46, 0.0  ;;  %v6535_v46 = vld [vmem:[%s9446_s3 + $0x4] sm:$0xf] }
  0xad   : > { %v547_v54 = vunpack.c.l.b16 %v535_v47  ;;  %v548_v55 = vunpack.c.h.b16 %v535_v47 }
  0xae   : > { %v491_v56 = vmul.f32 %v6419_v61, %v478_v49  ;;  %v492_v59 = vmul.f32 %v6419_v61, %v479_v50 }
  0xaf   : > { %v6451_v63 = vpack.c.b16 %v548_v55, %v548_v55  ;;  %v6454_v2 = vpack.c.b16 %v547_v54, %v547_v54 }
  0xb0   : > { %v504_v0 = vadd.f32 %v6421_v62, %v491_v56  ;;  %v457_v1 = vpop.f32.mrf.mxu2  ;;  %v505_v3 = vadd.f32 %v6421_v62, %v492_v59  ;;  %v470_v5 = vpop.f32.mrf.mxu3 }
  0xb1   : > { %v458_v4 = vadd.f32 %v457_v1, %v6410_v53  ;;  %v433_v6 = vpop.f32.mrf.mxu0  ;;  %v471_v9 = vadd.f32 %v470_v5, %v6410_v53  ;;  %565 = vrot.lane.b32.xlu0 %v6451_v63, %s6233_s13  ;;  %v446_v10 = vpop.f32.mrf.mxu1  ;;  %563 = vrot.lane.b32.xlu2 %v6454_v2, %s6233_s13 }
  0xb2   : > { %v530_v8 = vmul.f32 %v514_v57, %v504_v0  ;;  %v531_v13 = vmul.f32 %v515_v60, %v505_v3 }
  0xb3   : > { %v480_v14 = vmax.f32 %v458_v4, 0.0  ;;  %v481_v15 = vmax.f32 %v471_v9, 0.0  ;;  %v704_v9 = vsel %vm584_vm2, %v6439_v37, 0 }
  0xb4   : > { %v536_v17 = vpack.c.bf16 %v531_v13, %v530_v8  ;;  %v701_v8 = vsel %vm584_vm2, %v6437_v36, 0 }
  0xb5   : > { %v493_v18 = vmul.f32 %v6419_v61, %v480_v14  ;;  %v494_v22 = vmul.f32 %v6419_v61, %v481_v15 }
  0xb6   : > { %v549_v53 = vunpack.c.l.b16 %v536_v17  ;;  %v550_v24 = vunpack.c.h.b16 %v536_v17 }
  0xb7   : > { %v506_v26 = vadd.f32 %v6421_v62, %v493_v18  ;;  %v507_v27 = vadd.f32 %v6421_v62, %v494_v22 }
  0xb8   : > { %v459_v28 = vpop.f32.mrf.mxu2  ;;  %v6469_v29 = vpack.c.b16 %v549_v53, %v549_v53  ;;  %v6471_v32 = vpack.c.b16 %v550_v24, %v550_v24  ;;  %v472_v34 = vpop.f32.mrf.mxu3  ;;  %v710_v53 = vsel %vm584_vm2, %v6451_v63, 0  ;;  %v707_v24 = vsel %vm584_vm2, %v6454_v2, 0 }
  0xb9   : > { %v532_v33 = vmul.f32 %v516_v19, %v506_v26  ;;  %v533_v38 = vmul.f32 %v517_v23, %v507_v27 }
  0xba   : > { %569 = vrot.lane.b32.xlu2 %v6471_v32, %s6233_s13  ;;  %567 = vrot.lane.b32.xlu1 %v6469_v29, %s6233_s13  ;;  %v713_v13 = vsel %vm584_vm2, %v6469_v29, 0  ;;  %v716_v14 = vsel %vm584_vm2, %v6471_v32, 0 }
  0xbb   : > { %v6477_v58 = vpack.c.bf16 %v533_v38, %v532_v33  ;;  %v538_v38 = vld [vmem:[%s9446_s3] sm:$0xf] }
  0xbd   : > { %v551_v61 = vunpack.c.l.b16 %v6477_v58 }
  0xbf   : > { %v6480_v40 = vpack.c.b16 %v551_v61, %v551_v61 }
  0xc1   : > { %571 = vrot.lane.b32.xlu0 %v6480_v40, %s6233_s13  ;;  %v719_v27 = vsel %vm584_vm2, %v6480_v40, 0 }
  0xc2   : > { %816 = vrot.lane.b32.xlu2 %v6439_v37, %s6234_s14  ;;  %814 = vrot.lane.b32.xlu1 %v6437_v36, %s6234_s14 }
  0xc9   : > { %818 = vrot.lane.b32.xlu0 %v6454_v2, %s6234_s14 }
  0xca   : > { %822 = vrot.lane.b32.xlu2 %v6469_v29, %s6234_s14  ;;  %820 = vrot.lane.b32.xlu1 %v6451_v63, %s6234_s14 }
  0xd1   : > { %824 = vrot.lane.b32.xlu0 %v6471_v32, %s6234_s14 }
  0xd2   : > { %961 = vrot.lane.b32.xlu2 %v6439_v37, %s6235_s15  ;;  %826 = vrot.lane.b32.xlu1 %v6480_v40, %s6234_s14  ;;  %s6245_s14 = smov 17  }
  0xd9   : > { %963 = vrot.lane.b32.xlu0 %v6454_v2, %s6235_s15 }
  0xda   : > { %959 = vrot.lane.b32.xlu2 %v6437_v36, %s6235_s15  ;;  %965 = vrot.lane.b32.xlu1 %v6451_v63, %s6235_s15 }
  0xe1   : > { %967 = vrot.lane.b32.xlu0 %v6469_v29, %s6235_s15 }
  0xe2   : > { %971 = vrot.lane.b32.xlu2 %v6480_v40, %s6235_s15  ;;  %969 = vrot.lane.b32.xlu1 %v6471_v32, %s6235_s15 }
  0xe9   : > { %1104 = vrot.lane.b32.xlu0 %v6437_v36, %s6236_s16 }
  0xea   : > { %1108 = vrot.lane.b32.xlu2 %v6454_v2, %s6236_s16  ;;  %1106 = vrot.lane.b32.xlu1 %v6439_v37, %s6236_s16 }
  0xf1   : > { %1110 = vrot.lane.b32.xlu0 %v6451_v63, %s6236_s16 }
  0xf2   : > { %1114 = vrot.lane.b32.xlu2 %v6471_v32, %s6236_s16  ;;  %1112 = vrot.lane.b32.xlu1 %v6469_v29, %s6236_s16 }
  0xf9   : > { %1249 = vrot.lane.b32.xlu0 %v6437_v36, %s6237_s17 }
  0xfa   : > { %1116 = vrot.lane.b32.xlu2 %v6480_v40, %s6236_s16  ;;  %1251 = vrot.lane.b32.xlu1 %v6439_v37, %s6237_s17 }
 0x101   : > { %1253 = vrot.lane.b32.xlu0 %v6454_v2, %s6237_s17 }
 0x102   : > { %1257 = vrot.lane.b32.xlu2 %v6469_v29, %s6237_s17  ;;  %1255 = vrot.lane.b32.xlu1 %v6451_v63, %s6237_s17 }
 0x103   : > { %v562_v62 = vpop.permute.xlu2 %561 }
 0x109   : > { %1259 = vrot.lane.b32.xlu0 %v6471_v32, %s6237_s17 }
 0x10a   : > { %1394 = vrot.lane.b32.xlu2 %v6437_v36, %s6238_s18  ;;  %1261 = vrot.lane.b32.xlu1 %v6480_v40, %s6237_s17  ;;  %s6246_s17 = smov 16  }
 0x10b   : > { %v564_v41 = vpop.permute.xlu2 %563 }
 0x10c   : > { %v575_v42 = vsel %vm573_vm1, %v562_v62, %v564_v41 }
 0x10d   : > { %v589_v45 = vsel %vm584_vm2, %v575_v42, 0 }
 0x10e   : > { %626 = vmatpush.bf16.msra.mxu1 %v589_v45 }
 0x111   : > { %1396 = vrot.lane.b32.xlu0 %v6439_v37, %s6238_s18  ;;  %5890 = vmatmul.msk.bf16.vlgmr.msra.gmra.mxu1 %vm580_vm3, %v6535_v46 }
 0x112   : > { %1400 = vrot.lane.b32.xlu2 %v6451_v63, %s6238_s18  ;;  %1398 = vrot.lane.b32.xlu1 %v6454_v2, %s6238_s18 }
 0x114   : > { %v570_v47 = vpop.permute.xlu2 %569 }
 0x119   : > { %1402 = vrot.lane.b32.xlu0 %v6469_v29, %s6238_s18 }
 0x11a   : > { %1406 = vrot.lane.b32.xlu2 %v6480_v40, %s6238_s18  ;;  %1404 = vrot.lane.b32.xlu1 %v6471_v32, %s6238_s18  ;;  %s6252_s18 = smov 54  }
 0x11b   : > { %v560_v50 = vpop.permute.xlu1 %559 }
 0x11c   : > { %v6542_v49 = vpop.permute.xlu2 %816  ;;  %v574_v54 = vsel %vm573_vm1, %v560_v50, %v562_v62 }
 0x11d   : > { %v586_v55 = vsel %vm584_vm2, %v574_v54, 0 }
 0x11e   : > { %613 = vmatpush.bf16.msra.mxu0 %v586_v55 }
 0x121   : > { %1541 = vrot.lane.b32.xlu0 %v6439_v37, %s6239_s23  ;;  %5889 = vmatmul.msk.bf16.vlgmr.msra.gmra.mxu0 %vm580_vm3, %v6535_v46 }
 0x122   : > { %1545 = vrot.lane.b32.xlu2 %v6451_v63, %s6239_s23  ;;  %1543 = vrot.lane.b32.xlu1 %v6454_v2, %s6239_s23 }
 0x123   : > { %v566_v56 = vpop.permute.xlu0 %565 }
 0x124   : > { %v576_v57 = vsel %vm573_vm1, %v564_v41, %v566_v56  ;;  %v6552_v59 = vpop.permute.xlu2 %822 }
 0x125   : > { %v592_v60 = vsel %vm584_vm2, %v576_v57, 0 }
 0x126   : > { %639 = vmatpush.bf16.msra.mxu2 %v592_v60 }
 0x129   : > { %5891 = vmatmul.msk.bf16.vlgmr.msra.gmra.mxu2 %vm580_vm3, %v6535_v46  ;;  %1539 = vrot.lane.b32.xlu0 %v6437_v36, %s6239_s23 }
 0x12a   : > { %1549 = vrot.lane.b32.xlu2 %v6471_v32, %s6239_s23  ;;  %1547 = vrot.lane.b32.xlu1 %v6469_v29, %s6239_s23 }
 0x12c   : > { %v6560_v0 = vpop.permute.xlu2 %961  ;;  %v568_v1 = vpop.permute.xlu1 %567 }
 0x12d   : > { %v577_v3 = vsel %vm573_vm1, %v566_v56, %v568_v1  ;;  %v578_v4 = vsel %vm573_vm1, %v568_v1, %v570_v47 }
 0x12e   : > { %v595_v5 = vsel %vm584_vm2, %v577_v3, 0  ;;  %v598_v6 = vsel %vm584_vm2, %v578_v4, 0 }
 0x12f   : > { %652 = vmatpush.bf16.msra.mxu3 %v595_v5  ;;  %665 = vmatpush.bf16.msrb.mxu0 %v598_v6 }
 0x131   : > { %1551 = vrot.lane.b32.xlu0 %v6480_v40, %s6239_s23  ;;  %s6253_s23 = smov 46  }
 0x132   : > { %1686 = vrot.lane.b32.xlu2 %v6439_v37, %s6240_s24  ;;  %1684 = vrot.lane.b32.xlu1 %v6437_v36, %s6240_s24 }
 0x133   : > { %728 = vmatpush.bf16.msrb.mxu3 %v701_v8  ;;  %741 = vmatpush.bf16.msra.mxu0 %v704_v9  ;;  %v572_v10 = vpop.permute.xlu0 %571  ;;  %v5903_v9 = vld [vmem:[%s9446_s3 + $0x8] sm:$0xf] }
 0x134   : > { %5892 = vmatmul.msk.bf16.vlgmr.msra.gmra.mxu3 %vm580_vm3, %v6535_v46  ;;  %5893 = vmatmul.msk.bf16.vlgmr.msrb.gmra.mxu0 %vm580_vm3, %v6535_v46  ;;  %v579_v15 = vsel %vm573_vm1, %v570_v47, %v572_v10  ;;  %v604_v17 = vsel %vm584_vm2, %v572_v10, 0  ;;  %v6585_v18 = vpop.permute.xlu2 %959  ;;  %v815_v19 = vpop.permute.xlu1 %814 }
 0x135   : > { %691 = vmatpush.bf16.msrb.mxu2 %v604_v17  ;;  %v829_v22 = vsel %vm828_vm4, %v815_v19, %v6542_v49  ;;  %v601_v23 = vsel %vm584_vm2, %v579_v15, 0  ;;  %v974_v8 = vsel %vm973_vm5, %v6585_v18, %v6560_v0 }
 0x136   : > { %678 = vmatpush.bf16.msrb.mxu1 %v601_v23  ;;  %v839_v26 = vsel %vm584_vm2, %v829_v22, 0 }
 0x137   : > { %780 = vmatpush.bf16.msra.mxu3 %v713_v13  ;;  %793 = vmatpush.bf16.msrb.mxu0 %v716_v14  ;;  %v984_v13 = vsel %vm584_vm2, %v974_v8, 0 }
 0x139   : > { %767 = vmatpush.bf16.msra.mxu2 %v710_v53  ;;  %5894 = vmatmul.msk.bf16.vlgmr.msrb.gmra.mxu1 %vm580_vm3, %v6535_v46 }
 0x13a   : > { %754 = vmatpush.bf16.msra.mxu1 %v707_v24  ;;  %5895 = vmatmul.msk.bf16.vlgmr.msrb.gmra.mxu2 %vm580_vm3, %v6535_v46 }
 0x13b   : > { %1688 = vrot.lane.b32.xlu0 %v6454_v2, %s6240_s24  ;;  %v819_v28 = vpop.permute.xlu0 %818  ;;  %1692 = vrot.lane.b32.xlu2 %v6469_v29, %s6240_s24 }
 0x13c   : > { %1690 = vrot.lane.b32.xlu1 %v6451_v63, %s6240_s24  ;;  %v6607_v33 = vpop.permute.xlu2 %971  ;;  %v821_v34 = vpop.permute.xlu1 %820  ;;  %v830_v61 = vsel %vm828_vm4, %v6542_v49, %v819_v28 }
 0x13d   : > { %866 = vmatpush.bf16.msrb.mxu2 %v839_v26  ;;  %v831_v62 = vsel %vm828_vm4, %v819_v28, %v821_v34  ;;  %v842_v42 = vsel %vm584_vm2, %v830_v61, 0  ;;  %v832_v49 = vsel %vm828_vm4, %v821_v34, %v6552_v59 }
 0x13e   : > { %806 = vmatpush.bf16.msrb.mxu1 %v719_v27  ;;  %v845_v45 = vsel %vm584_vm2, %v831_v62, 0  ;;  %v848_v54 = vsel %vm584_vm2, %v832_v49, 0  ;;  %v1002_v49 = vsel %vm584_vm2, %v6607_v33, 0 }
 0x143   : > { %1694 = vrot.lane.b32.xlu0 %v6471_v32, %s6240_s24  ;;  %v825_v41 = vpop.permute.xlu0 %824  ;;  %1833 = vrot.lane.b32.xlu2 %v6439_v37, %s6241_s27 }
 0x144   : > { %5896 = vmatmul.msk.bf16.vlgmr.msrb.gmra.mxu3 %vm580_vm3, %v538_v38  ;;  %1831 = vrot.lane.b32.xlu1 %v6437_v36, %s6241_s27  ;;  %v6625_v46 = vpop.permute.xlu2 %1108  ;;  %v827_v47 = vpop.permute.xlu1 %826  ;;  %v833_v50 = vsel %vm828_vm4, %v6552_v59, %v825_v41 }
 0x145   : > { %5897 = vmatmul.msk.bf16.vlgmr.msra.gmra.mxu0 %vm580_vm3, %v538_v38  ;;  %879 = vmatpush.bf16.msrb.mxu3 %v842_v42  ;;  %v851_v55 = vsel %vm584_vm2, %v833_v50, 0  ;;  %v834_v60 = vsel %vm828_vm4, %v825_v41, %v827_v47  ;;  %v857_v4 = vsel %vm584_vm2, %v827_v47, 0  ;;  %vm2587_vm4 = vcmask 130048  }
 0x146   : > { %892 = vmatpush.bf16.msra.mxu0 %v845_v45  ;;  %v854_v3 = vsel %vm584_vm2, %v834_v60, 0 }
 0x149   : > { %5898 = vmatmul.msk.bf16.vlgmr.msra.gmra.mxu1 %vm580_vm3, %v538_v38 }
 0x14a   : > { %5899 = vmatmul.msk.bf16.vlgmr.msra.gmra.mxu2 %vm580_vm3, %v538_v38  ;;  %905 = vmatpush.bf16.msra.mxu1 %v848_v54 }
 0x14b   : > { %1696 = vrot.lane.b32.xlu0 %v6480_v40, %s6240_s24  ;;  %918 = vmatpush.bf16.msra.mxu2 %v851_v55  ;;  %v964_v56 = vpop.permute.xlu0 %963  ;;  %s6254_s24 = smov 45  }
 0x14c   : > { %1837 = vrot.lane.b32.xlu2 %v6451_v63, %s6241_s27  ;;  %1835 = vrot.lane.b32.xlu1 %v6454_v2, %s6241_s27  ;;  %v6641_v57 = vpop.permute.xlu2 %1114  ;;  %v966_v59 = vpop.permute.xlu1 %965  ;;  %v975_v10 = vsel %vm973_vm5, %v6560_v0, %v964_v56  ;;  %v1829_v0 = vunpack.c.h.b16 %v6477_v58 }
 0x14d   : > { %v987_v14 = vsel %vm584_vm2, %v975_v10, 0  ;;  %v976_v22 = vsel %vm973_vm5, %v964_v56, %v966_v59 }
 0x14e   : > { %v6677_v19 = vpack.c.b16 %v1829_v0, %v1829_v0  ;;  %v990_v58 = vsel %vm584_vm2, %v976_v22, 0 }
 0x153   : > { %1839 = vrot.lane.b32.xlu0 %v6469_v29, %s6241_s27  ;;  %v968_v1 = vpop.permute.xlu0 %967 }
 0x154   : > { %1843 = vrot.lane.b32.xlu2 %v6480_v40, %s6241_s27  ;;  %5900 = vmatmul.msk.bf16.vlgmr.msra.gmra.mxu3 %vm580_vm3, %v538_v38  ;;  %v6654_v5 = vpop.permute.xlu2 %1116  ;;  %v970_v6 = vpop.permute.xlu1 %969  ;;  %v977_v23 = vsel %vm973_vm5, %v966_v59, %v968_v1  ;;  %v5911_v59 = vld [vmem:[%s9446_s3 + $0xc] sm:$0xf] }
 0x155   : > { %1841 = vrot.lane.b32.xlu1 %v6471_v32, %s6241_s27  ;;  %5901 = vmatmul.msk.bf16.vlgmr.msrb.gmra.mxu0 %vm580_vm3, %v538_v38  ;;  %v993_v24 = vsel %vm584_vm2, %v977_v23, 0  ;;  %v978_v28 = vsel %vm973_vm5, %v968_v1, %v970_v6  ;;  %v979_v34 = vsel %vm973_vm5, %v970_v6, %v6607_v33  ;;  %v1124_v0 = vsel %vm1118_vm6, %v6641_v57, %v6654_v5 }
 0x156   : > { %931 = vmatpush.bf16.msra.mxu3 %v854_v3  ;;  %944 = vmatpush.bf16.msrb.mxu0 %v857_v4  ;;  %v999_v61 = vsel %vm584_vm2, %v979_v34, 0  ;;  %v1147_v22 = vsel %vm584_vm2, %v6654_v5, 0 }
 0x159   : > { %5902 = vmatmul.msk.bf16.vlgmr.msrb.gmra.mxu1 %vm580_vm3, %v538_v38  ;;  %v996_v38 = vsel %vm584_vm2, %v978_v28, 0 }
 0x15a   : > { %5904 = vmatmul.msk.bf16.vlgmr.msrb.gmra.mxu2 %vm580_vm3, %v5903_v9  ;;  %1011 = vmatpush.bf16.msrb.mxu1 %v984_v13 }
 0x15b   : > { %1979 = vrot.lane.b32.xlu0 %v6437_v36, %s6242_s30  ;;  %1024 = vmatpush.bf16.msrb.mxu2 %v987_v14  ;;  %v1105_v15 = vpop.permute.xlu0 %1104 }
 0x15c   : > { %1983 = vrot.lane.b32.xlu2 %v6454_v2, %s6242_s30  ;;  %v6675_v17 = vpop.permute.xlu2 %1257  ;;  %v1107_v18 = vpop.permute.xlu1 %1106 }
 0x15d   : > { %1981 = vrot.lane.b32.xlu1 %v6439_v37, %s6242_s30  ;;  %v1119_v45 = vsel %vm1118_vm6, %v1105_v15, %v1107_v18  ;;  %v1120_v56 = vsel %vm1118_vm6, %v1107_v18, %v6625_v46  ;;  %v1144_v18 = vsel %vm584_vm2, %v1124_v0, 0 }
 0x15e   : > { %v1129_v50 = vsel %vm584_vm2, %v1119_v45, 0  ;;  %v1132_v33 = vsel %vm584_vm2, %v1120_v56, 0 }
 0x163   : > { %1845 = vrot.lane.b32.xlu0 %v6677_v19, %s6241_s27  ;;  %v1111_v53 = vpop.permute.xlu0 %1110 }
 0x164   : > { %1987 = vrot.lane.b32.xlu2 %v6469_v29, %s6242_s30  ;;  %5905 = vmatmul.msk.bf16.vlgmr.msrb.gmra.mxu3 %vm580_vm3, %v5903_v9  ;;  %v6691_v26 = vpop.permute.xlu2 %1394  ;;  %v1113_v27 = vpop.permute.xlu1 %1112  ;;  %v1121_v60 = vsel %vm1118_vm6, %v6625_v46, %v1111_v53 }
 0x165   : > { %1985 = vrot.lane.b32.xlu1 %v6451_v63, %s6242_s30  ;;  %5906 = vmatmul.msk.bf16.vlgmr.msra.gmra.mxu0 %vm580_vm3, %v5903_v9  ;;  %v1135_v1 = vsel %vm584_vm2, %v1121_v60, 0  ;;  %v1122_v6 = vsel %vm1118_vm6, %v1111_v53, %v1113_v27  ;;  %v1123_v8 = vsel %vm1118_vm6, %v1113_v27, %v6641_v57  ;;  %v5919_v27 = vld [vmem:[%s9446_s3 + $0x10] sm:$0xf] }
 0x166   : > { %1037 = vmatpush.bf16.msrb.mxu3 %v990_v58  ;;  %1050 = vmatpush.bf16.msra.mxu0 %v993_v24  ;;  %v1138_v10 = vsel %vm584_vm2, %v1122_v6, 0  ;;  %v1141_v13 = vsel %vm584_vm2, %v1123_v8, 0 }
 0x169   : > { %5907 = vmatmul.msk.bf16.vlgmr.msra.gmra.mxu1 %vm580_vm3, %v5903_v9 }
 0x16a   : > { %5908 = vmatmul.msk.bf16.vlgmr.msra.gmra.mxu2 %vm580_vm3, %v5903_v9  ;;  %1063 = vmatpush.bf16.msra.mxu1 %v996_v38 }
 0x16b   : > { %1989 = vrot.lane.b32.xlu0 %v6471_v32, %s6242_s30  ;;  %1076 = vmatpush.bf16.msra.mxu2 %v999_v61  ;;  %v6702_v62 = vpop.permute.xlu0 %1249 }
 0x16c   : > { %1993 = vrot.lane.b32.xlu2 %v6677_v19, %s6242_s30  ;;  %v6708_v41 = vpop.permute.xlu2 %1400  ;;  %v6710_v42 = vpop.permute.xlu1 %1251 }
 0x16d   : > { %1991 = vrot.lane.b32.xlu1 %v6480_v40, %s6242_s30  ;;  %v1264_v5 = vsel %vm1263_vm7, %v6702_v62, %v6710_v42 }
 0x16e   : > { %v1274_v34 = vsel %vm584_vm2, %v1264_v5, 0 }
 0x173   : > { %2129 = vrot.lane.b32.xlu0 %v6439_v37, %s6243_s7  ;;  %v6715_v47 = vpop.permute.xlu0 %1253 }
 0x174   : > { %2133 = vrot.lane.b32.xlu2 %v6451_v63, %s6243_s7  ;;  %5909 = vmatmul.msk.bf16.vlgmr.msra.gmra.mxu3 %vm580_vm3, %v5903_v9  ;;  %v6726_v54 = vpop.permute.xlu2 %1406  ;;  %v6728_v55 = vpop.permute.xlu1 %1255  ;;  %v1265_v24 = vsel %vm1263_vm7, %v6710_v42, %v6715_v47 }
 0x175   : > { %2131 = vrot.lane.b32.xlu1 %v6454_v2, %s6243_s7  ;;  %5910 = vmatmul.msk.bf16.vlgmr.msrb.gmra.mxu0 %vm580_vm3, %v5903_v9  ;;  %v1277_v38 = vsel %vm584_vm2, %v1265_v24, 0  ;;  %v1266_v42 = vsel %vm1263_vm7, %v6715_v47, %v6728_v55  ;;  %v1267_v45 = vsel %vm1263_vm7, %v6728_v55, %v6675_v17 }
 0x176   : > { %1089 = vmatpush.bf16.msra.mxu3 %v1002_v49  ;;  %1156 = vmatpush.bf16.msrb.mxu0 %v1129_v50  ;;  %v1280_v50 = vsel %vm584_vm2, %v1266_v42, 0  ;;  %v1283_v56 = vsel %vm584_vm2, %v1267_v45, 0 }
 0x179   : > { %5912 = vmatmul.msk.bf16.vlgmr.msrb.gmra.mxu1 %vm580_vm3, %v5911_v59 }
 0x17a   : > { %5913 = vmatmul.msk.bf16.vlgmr.msrb.gmra.mxu2 %vm580_vm3, %v5911_v59  ;;  %1169 = vmatpush.bf16.msrb.mxu1 %v1132_v33 }
 0x17b   : > { %2127 = vrot.lane.b32.xlu0 %v6437_v36, %s6243_s7  ;;  %1182 = vmatpush.bf16.msrb.mxu2 %v1135_v1  ;;  %v6743_v3 = vpop.permute.xlu0 %1259 }
 0x17c   : > { %2137 = vrot.lane.b32.xlu2 %v6471_v32, %s6243_s7  ;;  %v6749_v46 = vpop.permute.xlu2 %1545  ;;  %v6751_v4 = vpop.permute.xlu1 %1261  ;;  %v1268_v33 = vsel %vm1263_vm7, %v6675_v17, %v6743_v3 }
 0x17d   : > { %2135 = vrot.lane.b32.xlu1 %v6469_v29, %s6243_s7  ;;  %v1269_v1 = vsel %vm1263_vm7, %v6743_v3, %v6751_v4  ;;  %v1286_v17 = vsel %vm584_vm2, %v1268_v33, 0  ;;  %vm2883_vm7 = vcmask 56320  }
 0x17e   : > { %v1289_v3 = vsel %vm584_vm2, %v1269_v1, 0 }
 0x183   : > { %2139 = vrot.lane.b32.xlu0 %v6480_v40, %s6243_s7  ;;  %v6758_v9 = vpop.permute.xlu0 %1396 }
 0x184   : > { %2275 = vrot.lane.b32.xlu2 %v6437_v36, %s6244_s10  ;;  %5914 = vmatmul.msk.bf16.vlgmr.msrb.gmra.mxu3 %vm580_vm3, %v5911_v59  ;;  %v6768_v14 = vpop.permute.xlu2 %1549  ;;  %v6770_v15 = vpop.permute.xlu1 %1398 }
 0x185   : > { %2141 = vrot.lane.b32.xlu1 %v6677_v19, %s6243_s7  ;;  %5915 = vmatmul.msk.bf16.vlgmr.msra.gmra.mxu0 %vm580_vm3, %v5911_v59  ;;  %v1411_v42 = vsel %vm1408_vm8, %v6770_v15, %v6708_v41 }
 0x186   : > { %1195 = vmatpush.bf16.msrb.mxu3 %v1138_v10  ;;  %1208 = vmatpush.bf16.msra.mxu0 %v1141_v13  ;;  %v1409_v13 = vsel %vm1408_vm8, %v6691_v26, %v6758_v9 }
 0x189   : > { %5916 = vmatmul.msk.bf16.vlgmr.msra.gmra.mxu1 %vm580_vm3, %v5911_v59 }
 0x18a   : > { %5917 = vmatmul.msk.bf16.vlgmr.msra.gmra.mxu2 %vm580_vm3, %v5911_v59  ;;  %1221 = vmatpush.bf16.msra.mxu1 %v1144_v18  ;;  %v1292_v18 = vsel %vm584_vm2, %v6751_v4, 0 }
 0x18b   : > { %2277 = vrot.lane.b32.xlu0 %v6439_v37, %s6244_s10  ;;  %1234 = vmatpush.bf16.msra.mxu2 %v1147_v22  ;;  %v6782_v23 = vpop.permute.xlu0 %1402  ;;  %v1419_v22 = vsel %vm584_vm2, %v1409_v13, 0 }
 0x18c   : > { %2281 = vrot.lane.b32.xlu2 %v6451_v63, %s6244_s10  ;;  %v6788_v57 = vpop.permute.xlu2 %1686  ;;  %v6790_v53 = vpop.permute.xlu1 %1404 }
 0x18d   : > { %2279 = vrot.lane.b32.xlu1 %v6454_v2, %s6244_s10 }
 0x18e   : > { %v6792_v58 = vpop.f32.mrf.mxu1 }
 0x193   : > { %2283 = vrot.lane.b32.xlu0 %v6469_v29, %s6244_s10  ;;  %v6805_v28 = vpop.permute.xlu0 %1541 }
 0x194   : > { %2287 = vrot.lane.b32.xlu2 %v6480_v40, %s6244_s10  ;;  %5918 = vmatmul.msk.bf16.vlgmr.msra.gmra.mxu3 %vm580_vm3, %v5911_v59  ;;  %v6815_v61 = vpop.permute.xlu1 %1543 }
 0x195   : > { %2285 = vrot.lane.b32.xlu1 %v6471_v32, %s6244_s10  ;;  %5920 = vmatmul.msk.bf16.vlgmr.msrb.gmra.mxu0 %vm580_vm3, %v5919_v27  ;;  %v6817_v62 = vpop.permute.xlu2 %1692 }
 0x196   : > { %1301 = vmatpush.bf16.msra.mxu3 %v1274_v34  ;;  %1314 = vmatpush.bf16.msrb.mxu0 %v1277_v38  ;;  %v630_v49 = vpop.f32.mrf.mxu1  ;;  %v6892_v34 = vld [vmem:[%s9446_s3 + $0x14] sm:$0xf]  ;;  %v1410_v38 = vsel %vm1408_vm8, %v6758_v9, %v6770_v15  ;;  %v1425_v15 = vsel %vm584_vm2, %v1411_v42, 0 }
 0x197   : > { %v1422_v9 = vsel %vm584_vm2, %v1410_v38, 0 }
 0x199   : > { %5921 = vmatmul.msk.bf16.vlgmr.msrb.gmra.mxu1 %vm580_vm3, %v5919_v27 }
 0x19a   : > { %5922 = vmatmul.msk.bf16.vlgmr.msrb.gmra.mxu2 %vm580_vm3, %v5919_v27  ;;  %1327 = vmatpush.bf16.msrb.mxu1 %v1280_v50 }
 0x19b   : > { %2289 = vrot.lane.b32.xlu0 %v6677_v19, %s6244_s10  ;;  %1340 = vmatpush.bf16.msrb.mxu2 %v1283_v56  ;;  %v6831_v59 = vpop.permute.xlu0 %1539  ;;  %v1412_v56 = vsel %vm1408_vm8, %v6708_v41, %v6782_v23 }
 0x19c   : > { %2425 = vrot.lane.b32.xlu2 %v6439_v37, %s6245_s14  ;;  %v6837_v47 = vpop.permute.xlu1 %1547 }
 0x19d   : > { %2423 = vrot.lane.b32.xlu1 %v6437_v36, %s6245_s14  ;;  %v6839_v55 = vpop.permute.xlu2 %1833 }
 0x19e   : > { %v6841_v60 = vpop.f32.mrf.mxu0 }
 0x1a3   : > { %2427 = vrot.lane.b32.xlu0 %v6454_v2, %s6245_s14  ;;  %v6851_v6 = vpop.permute.xlu0 %1551 }
 0x1a4   : > { %2431 = vrot.lane.b32.xlu2 %v6469_v29, %s6245_s14  ;;  %5923 = vmatmul.msk.bf16.vlgmr.msrb.gmra.mxu3 %vm580_vm3, %v5919_v27  ;;  %v6861_v8 = vpop.permute.xlu1 %1684  ;;  %v1559_v52 = vsel %vm1553_vm9, %v6768_v14, %v6851_v6 }
 0x1a5   : > { %2429 = vrot.lane.b32.xlu1 %v6451_v63, %s6245_s14  ;;  %5924 = vmatmul.msk.bf16.vlgmr.msra.gmra.mxu0 %vm580_vm3, %v5919_v27 }
 0x1a6   : > { %1353 = vmatpush.bf16.msrb.mxu3 %v1286_v17  ;;  %1366 = vmatpush.bf16.msra.mxu0 %v1289_v3  ;;  %v6863_v10 = vpop.permute.xlu2 %1837  ;;  %v617_v0 = vpop.f32.mrf.mxu0  ;;  %v1413_v17 = vsel %vm1408_vm8, %v6782_v23, %v6790_v53 }
 0x1a7   : > { %v1428_v0 = vsel %vm584_vm2, %v1412_v56, 0  ;;  %v1431_v41 = vsel %vm584_vm2, %v1413_v17, 0 }
 0x1a9   : > { %5925 = vmatmul.msk.bf16.vlgmr.msra.gmra.mxu1 %vm580_vm3, %v5919_v27 }
 0x1aa   : > { %5926 = vmatmul.msk.bf16.vlgmr.msra.gmra.mxu2 %vm580_vm3, %v5919_v27  ;;  %1379 = vmatpush.bf16.msra.mxu1 %v1292_v18 }
 0x1ab   : > { %2433 = vrot.lane.b32.xlu0 %v6471_v32, %s6245_s14  ;;  %1446 = vmatpush.bf16.msra.mxu2 %v1419_v22 }
 0x1ac   : > { %2571 = vrot.lane.b32.xlu2 %v6437_v36, %s6246_s17  ;;  %v6881_v5 = vpop.f32.mrf.mxu2 }
 0x1ad   : > { %v6877_v26 = vpop.permute.xlu0 %1688  ;;  %2435 = vrot.lane.b32.xlu1 %v6480_v40, %s6245_s14 }
 0x1ae   : > { %v6883_v24 = vpop.permute.xlu2 %1843  ;;  %v6885_v4 = vpop.permute.xlu1 %1690 }
 0x1b1   : > { %v6887_v27 = vpop.f32.mrf.mxu0 }
 0x1b3   : > { %2573 = vrot.lane.b32.xlu0 %v6439_v37, %s6246_s17 }
 0x1b4   : > { %2437 = vrot.lane.b32.xlu2 %v6677_v19, %s6245_s14  ;;  %5928 = vmatmul.msk.bf16.vlgmr.msra.gmra.mxu3 %vm580_vm3, %v6892_v34  ;;  %v643_v49 = vpop.f32.mrf.mxu2 }
 0x1b5   : > { %v6906_v45 = vpop.permute.xlu0 %1694  ;;  %2575 = vrot.lane.b32.xlu1 %v6454_v2, %s6246_s17  ;;  %5929 = vmatmul.msk.bf16.vlgmr.msrb.gmra.mxu0 %vm580_vm3, %v6892_v34 }
 0x1b6   : > { %1459 = vmatpush.bf16.msra.mxu3 %v1422_v9  ;;  %1472 = vmatpush.bf16.msrb.mxu0 %v1425_v15  ;;  %v6914_v50 = vpop.permute.xlu2 %1983  ;;  %v6919_v33 = vpop.permute.xlu1 %1831  ;;  %v1414_v15 = vsel %vm1408_vm8, %v6790_v53, %v6726_v54  ;;  %vm3031_vm8 = vcmask 48128  }
 0x1b7   : > { %v654_v1 = vpop.f32.mrf.mxu3  ;;  %v680_v3 = vpop.f32.mrf.mxu1  ;;  %v1434_v53 = vsel %vm584_vm2, %v1414_v15, 0 }
 0x1b9   : > { %v669_v13 = vpop.f32.mrf.mxu0  ;;  %5930 = vmatmul.msk.bf16.vlgmr.msrb.gmra.mxu1 %vm580_vm3, %v6892_v34 }
 0x1ba   : > { %5931 = vmatmul.msk.bf16.vlgmr.msrb.gmra.mxu2 %vm580_vm3, %v6892_v34  ;;  %1485 = vmatpush.bf16.msrb.mxu1 %v1428_v0 }
 0x1bb   : > { %2577 = vrot.lane.b32.xlu0 %v6451_v63, %s6246_s17  ;;  %1498 = vmatpush.bf16.msrb.mxu2 %v1431_v41  ;;  %v1554_v41 = vsel %vm1553_vm9, %v6831_v59, %v6805_v28 }
 0x1bc   : > { %2581 = vrot.lane.b32.xlu2 %v6471_v32, %s6246_s17 }
 0x1bd   : > { %v6934_v23 = vpop.permute.xlu0 %1696  ;;  %2579 = vrot.lane.b32.xlu1 %v6469_v29, %s6246_s17  ;;  %v6938_v18 = vpop.f32.mrf.mxu2 }
 0x1be   : > { %v6940_v22 = vpop.permute.xlu2 %1987  ;;  %v6942_v38 = vpop.permute.xlu1 %1835 }
 0x1bf   : > { %v656_v42 = vpop.f32.mrf.mxu3  ;;  %v682_v9 = vpop.f32.mrf.mxu1 }
 0x1c2   : > { %v743_v49 = vpop.f32.mrf.mxu0 }
 0x1c3   : > { %v6948_v56 = vadd.f32 %v743_v49, %v6792_v58  ;;  %2583 = vrot.lane.b32.xlu0 %v6480_v40, %s6246_s17  ;;  %v1437_v58 = vsel %vm584_vm2, %v6726_v54, 0  ;;  %v6975_v49 = vld [vmem:[%s9446_s3 + $0x18] sm:$0xf]  ;;  %v1555_v54 = vsel %vm1553_vm9, %v6805_v28, %v6815_v61 }
 0x1c4   : > { %2721 = vrot.lane.b32.xlu2 %v6439_v37, %s6247_s20  ;;  %5932 = vmatmul.msk.bf16.vlgmr.msrb.gmra.mxu3 %vm580_vm3, %v6892_v34  ;;  %v1567_v28 = vsel %vm584_vm2, %v1555_v54, 0  ;;  %v1556_v54 = vsel %vm1553_vm9, %v6815_v61, %v6749_v46 }
 0x1c5   : > { %v6956_v17 = vpop.permute.xlu0 %1839  ;;  %2585 = vrot.lane.b32.xlu1 %v6677_v19, %s6246_s17  ;;  %5933 = vmatmul.msk.bf16.vlgmr.msra.gmra.mxu0 %vm580_vm3, %v6892_v34  ;;  %v695_v13 = vpop.f32.mrf.mxu2  ;;  %s6258_s17 = smov 34  }
 0x1c6   : > { %1511 = vmatpush.bf16.msrb.mxu3 %v1434_v53  ;;  %1524 = vmatpush.bf16.msra.mxu0 %v1437_v58  ;;  %v6965_v0 = vpop.permute.xlu2 %1993  ;;  %v1564_v13 = vsel %vm584_vm2, %v1554_v41, 0 }
 0x1c7   : > { %v6970_v42 = vpop.permute.xlu1 %1841  ;;  %v730_v9 = vpop.f32.mrf.mxu3 }
 0x1c8   : > { %v731_v15 = vadd.f32 %v730_v9, %v6841_v60  ;;  %v756_v53 = vpop.f32.mrf.mxu1 }
 0x1c9   : > { %v757_v58 = vadd.f32 %v756_v53, %v6881_v5  ;;  %5934 = vmatmul.msk.bf16.vlgmr.msra.gmra.mxu1 %vm580_vm3, %v6892_v34 }
 0x1ca   : > { %v745_v59 = vpop.f32.mrf.mxu0  ;;  %5936 = vmatmul.msk.bf16.vlgmr.msra.gmra.mxu2 %vm580_vm3, %v6975_v49  ;;  %1591 = vmatpush.bf16.msra.mxu1 %v1564_v13 }
 0x1cb   : > { %2723 = vrot.lane.b32.xlu0 %v6454_v2, %s6247_s20  ;;  %1604 = vmatpush.bf16.msra.mxu2 %v1567_v28  ;;  %v1557_v59 = vsel %vm1553_vm9, %v6749_v46, %v6837_v47  ;;  %v1570_v46 = vsel %vm584_vm2, %v1556_v54, 0 }
 0x1cc   : > { %2719 = vrot.lane.b32.xlu2 %v6437_v36, %s6247_s20  ;;  %v1573_v61 = vsel %vm584_vm2, %v1557_v59, 0 }
 0x1cd   : > { %v6992_v60 = vpop.permute.xlu0 %1979  ;;  %2725 = vrot.lane.b32.xlu1 %v6451_v63, %s6247_s20  ;;  %v769_v5 = vpop.f32.mrf.mxu2 }
 0x1ce   : > { %v6996_v34 = vadd.f32 %v769_v5, %v654_v1  ;;  %v6998_v41 = vpop.permute.xlu2 %2133 }
 0x1cf   : > { %v7000_v9 = vpop.permute.xlu1 %1981  ;;  %v732_v53 = vpop.f32.mrf.mxu3 }
 0x1d0   : > { %v758_v13 = vpop.f32.mrf.mxu1  ;;  %v1558_v53 = vsel %vm1553_vm9, %v6837_v47, %v6768_v14  ;;  %v1579_v14 = vsel %vm584_vm2, %v1559_v52, 0  ;;  %v1996_v31 = vsel %vm1995_vm12, %v6992_v60, %v7000_v9  ;;  %vm3177_vm9 = vcmask 457728  }
 0x1d1   : > { %v1576_v47 = vsel %vm584_vm2, %v1558_v53, 0 }
 0x1d2   : > { %v795_v28 = vpop.f32.mrf.mxu0 }
 0x1d3   : > { %v7008_v51 = vadd.f32 %v795_v28, %v680_v3  ;;  %2727 = vrot.lane.b32.xlu0 %v6469_v29, %s6247_s20 }
 0x1d4   : > { %2731 = vrot.lane.b32.xlu2 %v6480_v40, %s6247_s20  ;;  %5937 = vmatmul.msk.bf16.vlgmr.msra.gmra.mxu3 %vm580_vm3, %v6975_v49 }
 0x1d5   : > { %v7016_v1 = vpop.permute.xlu0 %1845  ;;  %2729 = vrot.lane.b32.xlu1 %v6471_v32, %s6247_s20  ;;  %5938 = vmatmul.msk.bf16.vlgmr.msrb.gmra.mxu0 %vm580_vm3, %v6975_v49  ;;  %v771_v3 = vpop.f32.mrf.mxu2 }
 0x1d6   : > { %1617 = vmatpush.bf16.msra.mxu3 %v1570_v46  ;;  %1630 = vmatpush.bf16.msrb.mxu0 %v1573_v61  ;;  %v7024_v5 = vpop.permute.xlu2 %2137 }
 0x1d7   : > { %v7029_v13 = vpop.permute.xlu1 %1985  ;;  %v782_v28 = vpop.f32.mrf.mxu3 }
 0x1d8   : > { %v783_v54 = vadd.f32 %v782_v28, %v6887_v27  ;;  %v808_v48 = vpop.f32.mrf.mxu1  ;;  %v1699_v28 = vsel %vm1698_vm10, %v6861_v8, %v6788_v57  ;;  %v1582_v8 = vsel %vm584_vm2, %v6851_v6, 0  ;;  %v1701_v6 = vsel %vm1698_vm10, %v6877_v26, %v6885_v4 }
 0x1d9   : > { %v7036_v59 = vadd.f32 %v808_v48, %v6938_v18  ;;  %5939 = vmatmul.msk.bf16.vlgmr.msrb.gmra.mxu1 %vm580_vm3, %v6975_v49 }
 0x1da   : > { %v797_v46 = vpop.f32.mrf.mxu0  ;;  %5940 = vmatmul.msk.bf16.vlgmr.msrb.gmra.mxu2 %vm580_vm3, %v6975_v49  ;;  %1643 = vmatpush.bf16.msrb.mxu1 %v1576_v47 }
 0x1db   : > { %2733 = vrot.lane.b32.xlu0 %v6677_v19, %s6247_s20  ;;  %1656 = vmatpush.bf16.msrb.mxu2 %v1579_v14 }
 0x1dc   : > { %2869 = vrot.lane.b32.xlu2 %v6439_v37, %s6248_s25 }
 0x1dd   : > { %v7048_v48 = vpop.permute.xlu0 %1989  ;;  %2867 = vrot.lane.b32.xlu1 %v6437_v36, %s6248_s25  ;;  %v868_v27 = vpop.f32.mrf.mxu2 }
 0x1de   : > { %v7052_v18 = vadd.f32 %v868_v27, %v731_v15  ;;  %v7054_v61 = vpop.permute.xlu2 %2275  ;;  %v1709_v15 = vsel %vm584_vm2, %v1699_v28, 0 }
 0x1df   : > { %v7056_v3 = vpop.permute.xlu1 %1991  ;;  %v784_v53 = vpop.f32.mrf.mxu3 }
 0x1e0   : > { %v810_v52 = vpop.f32.mrf.mxu1  ;;  %v1700_v53 = vsel %vm1698_vm10, %v6788_v57, %v6877_v26  ;;  %v1715_v26 = vsel %vm584_vm2, %v1701_v6, 0  ;;  %v1702_v6 = vsel %vm1698_vm10, %v6885_v4, %v6817_v62 }
 0x1e1   : > { %v1712_v57 = vsel %vm584_vm2, %v1700_v53, 0 }
 0x1e2   : > { %v894_v46 = vpop.f32.mrf.mxu0 }
 0x1e3   : > { %v7061_v47 = vadd.f32 %v894_v46, %v757_v58  ;;  %2871 = vrot.lane.b32.xlu0 %v6454_v2, %s6248_s25  ;;  %v7088_v46 = vld [vmem:[%s9446_s3 + $0x1c] sm:$0xf] }
 0x1e4   : > { %2875 = vrot.lane.b32.xlu2 %v6469_v29, %s6248_s25  ;;  %5941 = vmatmul.msk.bf16.vlgmr.msrb.gmra.mxu3 %vm580_vm3, %v6975_v49 }
 0x1e5   : > { %v7070_v14 = vpop.permute.xlu0 %2129  ;;  %2873 = vrot.lane.b32.xlu1 %v6451_v63, %s6248_s25  ;;  %5942 = vmatmul.msk.bf16.vlgmr.msra.gmra.mxu0 %vm580_vm3, %v6975_v49  ;;  %v870_v58 = vpop.f32.mrf.mxu2 }
 0x1e6   : > { %1669 = vmatpush.bf16.msrb.mxu3 %v1582_v8  ;;  %1736 = vmatpush.bf16.msra.mxu0 %v1709_v15  ;;  %v7078_v27 = vpop.permute.xlu2 %2281 }
 0x1e7   : > { %v7083_v52 = vpop.permute.xlu1 %2131  ;;  %v881_v28 = vpop.f32.mrf.mxu3 }
 0x1e8   : > { %v951_v49 = vadd.f32 %v881_v28, %v6948_v56  ;;  %v907_v15 = vpop.f32.mrf.mxu1 }
 0x1e9   : > { %v7095_v8 = vadd.f32 %v907_v15, %v6996_v34  ;;  %5944 = vmatmul.msk.bf16.vlgmr.msra.gmra.mxu1 %vm580_vm3, %v7088_v46 }
 0x1ea   : > { %v896_v58 = vpop.f32.mrf.mxu0  ;;  %5945 = vmatmul.msk.bf16.vlgmr.msra.gmra.mxu2 %vm580_vm3, %v7088_v46  ;;  %1749 = vmatpush.bf16.msra.mxu1 %v1712_v57 }
 0x1eb   : > { %2877 = vrot.lane.b32.xlu0 %v6471_v32, %s6248_s25  ;;  %1762 = vmatpush.bf16.msra.mxu2 %v1715_v26  ;;  %v1703_v26 = vsel %vm1698_vm10, %v6817_v62, %v6906_v45 }
 0x1ec   : > { %2881 = vrot.lane.b32.xlu2 %v6677_v19, %s6248_s25  ;;  %v1721_v62 = vsel %vm584_vm2, %v1703_v26, 0 }
 0x1ed   : > { %v7107_v56 = vpop.permute.xlu0 %2127  ;;  %2879 = vrot.lane.b32.xlu1 %v6480_v40, %s6248_s25  ;;  %v920_v34 = vpop.f32.mrf.mxu2 }
 0x1ee   : > { %v7111_v28 = vadd.f32 %v920_v34, %v783_v54  ;;  %v7113_v15 = vpop.permute.xlu2 %2287 }
 0x1ef   : > { %v7115_v53 = vpop.permute.xlu1 %2135  ;;  %v883_v58 = vpop.f32.mrf.mxu3 }
 0x1f0   : > { %v909_v57 = vpop.f32.mrf.mxu1 }
 0x1f2   : > { %v946_v39 = vpop.f32.mrf.mxu0 }
 0x1f3   : > { %v7124_v43 = vadd.f32 %v946_v39, %v7036_v59  ;;  %3015 = vrot.lane.b32.xlu0 %v6437_v36, %s6249_s29  ;;  %v1718_v39 = vsel %vm584_vm2, %v1702_v6, 0  ;;  %v1704_v59 = vsel %vm1698_vm10, %v6906_v45, %v6934_v23  ;;  %vm4192_vm10 = vcmask 285696  }
 0x1f4   : > { %3019 = vrot.lane.b32.xlu2 %v6454_v2, %s6249_s29  ;;  %5946 = vmatmul.msk.bf16.vlgmr.msra.gmra.mxu3 %vm580_vm3, %v7088_v46  ;;  %v1724_v26 = vsel %vm584_vm2, %v1704_v59, 0 }
 0x1f5   : > { %v7132_v54 = vpop.permute.xlu0 %2139  ;;  %3017 = vrot.lane.b32.xlu1 %v6439_v37, %s6249_s29  ;;  %5947 = vmatmul.msk.bf16.vlgmr.msrb.gmra.mxu0 %vm580_vm3, %v7088_v46  ;;  %v922_v4 = vpop.f32.mrf.mxu2 }
 0x1f6   : > { %1775 = vmatpush.bf16.msra.mxu3 %v1718_v39  ;;  %1788 = vmatpush.bf16.msrb.mxu0 %v1721_v62  ;;  %v7140_v36 = vpop.permute.xlu2 %2425 }
 0x1f7   : > { %v7145_v34 = vpop.permute.xlu1 %2141  ;;  %v933_v58 = vpop.f32.mrf.mxu3 }
 0x1f8   : > { %v955_v57 = vadd.f32 %v933_v58, %v7008_v51  ;;  %v1013_v35 = vpop.f32.mrf.mxu1  ;;  %v1727_v51 = vsel %vm584_vm2, %v6934_v23, 0  ;;  %v1848_v23 = vsel %vm1847_vm11, %v6919_v33, %v6839_v55  ;;  %v1849_v58 = vsel %vm1847_vm11, %v6839_v55, %v6942_v38 }
 0x1f9   : > { %v7149_v20 = vadd.f32 %v1013_v35, %v7052_v18  ;;  %5948 = vmatmul.msk.bf16.vlgmr.msrb.gmra.mxu1 %vm580_vm3, %v7088_v46  ;;  %v1859_v55 = vsel %vm584_vm2, %v1848_v23, 0  ;;  %v1851_v23 = vsel %vm1847_vm11, %v6863_v10, %v6956_v17 }
 0x1fa   : > { %v948_v6 = vpop.f32.mrf.mxu0  ;;  %5949 = vmatmul.msk.bf16.vlgmr.msrb.gmra.mxu2 %vm580_vm3, %v7088_v46  ;;  %1801 = vmatpush.bf16.msrb.mxu1 %v1724_v26 }
 0x1fb   : > { %3021 = vrot.lane.b32.xlu0 %v6451_v63, %s6249_s29  ;;  %1814 = vmatpush.bf16.msrb.mxu2 %v1727_v51 }
 0x1fc   : > { %3025 = vrot.lane.b32.xlu2 %v6471_v32, %s6249_s29 }
 0x1fd   : > { %v7162_v35 = vpop.permute.xlu0 %2277  ;;  %3023 = vrot.lane.b32.xlu1 %v6469_v29, %s6249_s29  ;;  %v1026_v45 = vpop.f32.mrf.mxu2 }
 0x1fe   : > { %v7166_v18 = vadd.f32 %v1026_v45, %v951_v49  ;;  %v7168_v39 = vpop.permute.xlu2 %2431  ;;  %v7181_v49 = vld [vmem:[%s9446_s3 + $0x20] sm:$0xf] }
 0x1ff   : > { %v7170_v62 = vpop.permute.xlu1 %2279  ;;  %v935_v4 = vpop.f32.mrf.mxu3 }
 0x200   : > { %v1015_v59 = vpop.f32.mrf.mxu1 }
 0x202   : > { %v1052_v6 = vpop.f32.mrf.mxu0 }
 0x203   : > { %v7184_v26 = vadd.f32 %v1052_v6, %v7095_v8  ;;  %3027 = vrot.lane.b32.xlu0 %v6480_v40, %s6249_s29  ;;  %v1862_v8 = vsel %vm584_vm2, %v1849_v58, 0 }
 0x204   : > { %3165 = vrot.lane.b32.xlu2 %v6454_v2, %s6250_s9  ;;  %5950 = vmatmul.msk.bf16.vlgmr.msrb.gmra.mxu3 %vm580_vm3, %v7088_v46  ;;  %v1850_v46 = vsel %vm1847_vm11, %v6942_v38, %v6863_v10  ;;  %v1868_v10 = vsel %vm584_vm2, %v1851_v23, 0  ;;  %v1852_v23 = vsel %vm1847_vm11, %v6956_v17, %v6970_v42 }
 0x205   : > { %v7193_v33 = vpop.permute.xlu0 %2283  ;;  %3163 = vrot.lane.b32.xlu1 %v6439_v37, %s6250_s9  ;;  %5952 = vmatmul.msk.bf16.vlgmr.msra.gmra.mxu0 %vm580_vm3, %v7181_v49  ;;  %v1028_v51 = vpop.f32.mrf.mxu2  ;;  %v1865_v38 = vsel %vm584_vm2, %v1850_v46, 0 }
 0x206   : > { %1886 = vmatpush.bf16.msrb.mxu3 %v1859_v55  ;;  %1899 = vmatpush.bf16.msra.mxu0 %v1862_v8  ;;  %v7200_v45 = vpop.permute.xlu2 %2571 }
 0x207   : > { %v7205_v4 = vpop.permute.xlu1 %2285  ;;  %v1039_v59 = vpop.f32.mrf.mxu3 }
 0x208   : > { %v1097_v6 = vadd.f32 %v1039_v59, %v7061_v47  ;;  %v1065_v44 = vpop.f32.mrf.mxu1 }
 0x209   : > { %v7212_v58 = vadd.f32 %v1065_v44, %v7111_v28  ;;  %5953 = vmatmul.msk.bf16.vlgmr.msra.gmra.mxu1 %vm580_vm3, %v7181_v49 }
 0x20a   : > { %v1054_v55 = vpop.f32.mrf.mxu0  ;;  %5954 = vmatmul.msk.bf16.vlgmr.msra.gmra.mxu2 %vm580_vm3, %v7181_v49  ;;  %1912 = vmatpush.bf16.msra.mxu1 %v1865_v38 }
 0x20b   : > { %3167 = vrot.lane.b32.xlu0 %v6451_v63, %s6250_s9  ;;  %1925 = vmatpush.bf16.msra.mxu2 %v1868_v10  ;;  %v1853_v55 = vsel %vm1847_vm11, %v6970_v42, %v6883_v24 }
 0x20c   : > { %3169 = vrot.lane.b32.xlu2 %v6469_v29, %s6250_s9  ;;  %v1874_v17 = vsel %vm584_vm2, %v1853_v55, 0 }
 0x20d   : > { %v7224_v44 = vpop.permute.xlu0 %2289  ;;  %3029 = vrot.lane.b32.xlu1 %v6677_v19, %s6249_s29  ;;  %v1078_v47 = vpop.f32.mrf.mxu2 }
 0x20e   : > { %v7228_v28 = vadd.f32 %v1078_v47, %v955_v57  ;;  %v7230_v8 = vpop.permute.xlu2 %2437 }
 0x20f   : > { %v7232_v51 = vpop.permute.xlu1 %2423  ;;  %v1041_v46 = vpop.f32.mrf.mxu3 }
 0x210   : > { %v1067_v59 = vpop.f32.mrf.mxu1  ;;  %v1854_v46 = vsel %vm1847_vm11, %v6883_v24, %v7016_v1 }
 0x212   : > { %v1158_v38 = vpop.f32.mrf.mxu0 }
 0x213   : > { %v7241_v10 = vadd.f32 %v1158_v38, %v7149_v20  ;;  %3171 = vrot.lane.b32.xlu0 %v6471_v32, %s6250_s9  ;;  %v1871_v20 = vsel %vm584_vm2, %v1852_v23, 0 }
 0x214   : > { %3175 = vrot.lane.b32.xlu2 %v6677_v19, %s6250_s9  ;;  %5955 = vmatmul.msk.bf16.vlgmr.msra.gmra.mxu3 %vm580_vm3, %v7181_v49 }
 0x215   : > { %v7249_v57 = vpop.permute.xlu0 %2427  ;;  %3173 = vrot.lane.b32.xlu1 %v6480_v40, %s6250_s9  ;;  %5956 = vmatmul.msk.bf16.vlgmr.msrb.gmra.mxu0 %vm580_vm3, %v7181_v49  ;;  %v1080_v42 = vpop.f32.mrf.mxu2  ;;  %s6257_s9 = smov 35  }
 0x216   : > { %1938 = vmatpush.bf16.msra.mxu3 %v1871_v20  ;;  %1951 = vmatpush.bf16.msrb.mxu0 %v1874_v17  ;;  %v7257_v47 = vpop.permute.xlu2 %2581  ;;  %v1877_v20 = vsel %vm584_vm2, %v1854_v46, 0  ;;  %v1997_v46 = vsel %vm1995_vm12, %v7000_v9, %v6914_v50 }
 0x217   : > { %v7262_v59 = vpop.permute.xlu1 %2429  ;;  %v1091_v38 = vpop.f32.mrf.mxu3 }
 0x218   : > { %v1101_v23 = vadd.f32 %v1091_v38, %v7124_v43  ;;  %v1171_v30 = vpop.f32.mrf.mxu1  ;;  %v2007_v43 = vsel %vm584_vm2, %v1996_v31, 0  ;;  %v7294_v31 = vld [vmem:[%s9446_s3 + $0x24] sm:$0xf] }
 0x219   : > { %v7269_v55 = vadd.f32 %v1171_v30, %v7166_v18  ;;  %5957 = vmatmul.msk.bf16.vlgmr.msrb.gmra.mxu1 %vm580_vm3, %v7181_v49 }
 0x21a   : > { %v1160_v17 = vpop.f32.mrf.mxu0  ;;  %5958 = vmatmul.msk.bf16.vlgmr.msrb.gmra.mxu2 %vm580_vm3, %v7181_v49  ;;  %1964 = vmatpush.bf16.msrb.mxu1 %v1877_v20 }
 0x21b   : > { %3310 = vrot.lane.b32.xlu0 %v6454_v2, %s6251_s11  ;;  %2034 = vmatpush.bf16.msrb.mxu2 %v2007_v43 }
 0x21c   : > { %3314 = vrot.lane.b32.xlu2 %v6469_v29, %s6251_s11 }
 0x21d   : > { %v7281_v30 = vpop.permute.xlu0 %2433  ;;  %3312 = vrot.lane.b32.xlu1 %v6451_v63, %s6251_s11  ;;  %v1184_v24 = vpop.f32.mrf.mxu2 }
 0x21e   : > { %v7285_v60 = vadd.f32 %v1184_v24, %v1097_v6  ;;  %v7287_v1 = vpop.permute.xlu2 %2721  ;;  %v1998_v6 = vsel %vm1995_vm12, %v6914_v50, %v7029_v13  ;;  %v2010_v50 = vsel %vm584_vm2, %v1997_v46, 0  ;;  %v1999_v24 = vsel %vm1995_vm12, %v7029_v13, %v6940_v22 }
 0x21f   : > { %v7289_v18 = vpop.permute.xlu1 %2435  ;;  %v1093_v49 = vpop.f32.mrf.mxu3  ;;  %v2013_v9 = vsel %vm584_vm2, %v1998_v6, 0  ;;  %v2016_v13 = vsel %vm584_vm2, %v1999_v24, 0 }
 0x220   : > { %v1173_v42 = vpop.f32.mrf.mxu1 }
 0x222   : > { %v1210_v38 = vpop.f32.mrf.mxu0 }
 0x223   : > { %v7303_v20 = vadd.f32 %v1210_v38, %v7212_v58  ;;  %3308 = vrot.lane.b32.xlu0 %v6439_v37, %s6251_s11  ;;  %v2000_v38 = vsel %vm1995_vm12, %v6940_v22, %v7048_v48 }
 0x224   : > { %3318 = vrot.lane.b32.xlu2 %v6480_v40, %s6251_s11  ;;  %5960 = vmatmul.msk.bf16.vlgmr.msrb.gmra.mxu3 %vm580_vm3, %v7294_v31  ;;  %v2019_v22 = vsel %vm584_vm2, %v2000_v38, 0  ;;  %v2001_v38 = vsel %vm1995_vm12, %v7048_v48, %v7056_v3 }
 0x225   : > { %v7311_v17 = vpop.permute.xlu0 %2573  ;;  %3316 = vrot.lane.b32.xlu1 %v6471_v32, %s6251_s11  ;;  %5961 = vmatmul.msk.bf16.vlgmr.msra.gmra.mxu0 %vm580_vm3, %v7294_v31  ;;  %v1186_v58 = vpop.f32.mrf.mxu2 }
 0x226   : > { %2047 = vmatpush.bf16.msrb.mxu3 %v2010_v50  ;;  %2060 = vmatpush.bf16.msra.mxu0 %v2013_v9  ;;  %v7319_v43 = vpop.permute.xlu2 %2719 }
 0x227   : > { %v7324_v49 = vpop.permute.xlu1 %2575  ;;  %v1197_v42 = vpop.f32.mrf.mxu3 }
 0x228   : > { %v1243_v46 = vadd.f32 %v1197_v42, %v7184_v26  ;;  %v1223_v7 = vpop.f32.mrf.mxu1 }
 0x229   : > { %v7331_v6 = vadd.f32 %v1223_v7, %v7228_v28  ;;  %5962 = vmatmul.msk.bf16.vlgmr.msra.gmra.mxu1 %vm580_vm3, %v7294_v31 }
 0x22a   : > { %v1212_v50 = vpop.f32.mrf.mxu0  ;;  %5963 = vmatmul.msk.bf16.vlgmr.msra.gmra.mxu2 %vm580_vm3, %v7294_v31  ;;  %2073 = vmatpush.bf16.msra.mxu1 %v2016_v13 }
 0x22b   : > { %3320 = vrot.lane.b32.xlu0 %v6677_v19, %s6251_s11  ;;  %2086 = vmatpush.bf16.msra.mxu2 %v2019_v22  ;;  %v2002_v50 = vsel %vm1995_vm12, %v7056_v3, %v6965_v0  ;;  %v2022_v0 = vsel %vm584_vm2, %v2001_v38, 0  ;;  %v2145_v38 = vsel %vm2143_vm13, %v7070_v14, %v7083_v52 }
 0x22c   : > { %3455 = vrot.lane.b32.xlu2 %v6454_v2, %s6252_s18  ;;  %v2025_v48 = vsel %vm584_vm2, %v2002_v50, 0 }
 0x22d   : > { %v7343_v7 = vpop.permute.xlu0 %2577  ;;  %3453 = vrot.lane.b32.xlu1 %v6439_v37, %s6252_s18  ;;  %v1236_v26 = vpop.f32.mrf.mxu2 }
 0x22e   : > { %v7347_v28 = vadd.f32 %v1236_v26, %v1101_v23  ;;  %v7349_v9 = vpop.permute.xlu2 %2731  ;;  %v2144_v26 = vsel %vm2143_vm13, %v7107_v56, %v7070_v14  ;;  %v2158_v14 = vsel %vm584_vm2, %v2145_v38, 0  ;;  %v2146_v38 = vsel %vm2143_vm13, %v7083_v52, %v6998_v41 }
 0x22f   : > { %v7351_v58 = vpop.permute.xlu1 %2579  ;;  %v1199_v24 = vpop.f32.mrf.mxu3  ;;  %v2155_v56 = vsel %vm584_vm2, %v2144_v26, 0 }
 0x230   : > { %v1225_v42 = vpop.f32.mrf.mxu1 }
 0x232   : > { %v1316_v13 = vpop.f32.mrf.mxu0 }
 0x233   : > { %v7360_v22 = vadd.f32 %v1316_v13, %v7269_v55  ;;  %3457 = vrot.lane.b32.xlu0 %v6451_v63, %s6252_s18  ;;  %v7386_v13 = vld [vmem:[%s9446_s3 + $0x28] sm:$0xf] }
 0x234   : > { %3461 = vrot.lane.b32.xlu2 %v6471_v32, %s6252_s18  ;;  %5964 = vmatmul.msk.bf16.vlgmr.msra.gmra.mxu3 %vm580_vm3, %v7294_v31 }
 0x235   : > { %v7368_v23 = vpop.permute.xlu0 %2583  ;;  %3459 = vrot.lane.b32.xlu1 %v6469_v29, %s6252_s18  ;;  %5965 = vmatmul.msk.bf16.vlgmr.msrb.gmra.mxu0 %vm580_vm3, %v7294_v31  ;;  %v1238_v3 = vpop.f32.mrf.mxu2 }
 0x236   : > { %2099 = vmatpush.bf16.msra.mxu3 %v2022_v0  ;;  %2112 = vmatpush.bf16.msrb.mxu0 %v2025_v48  ;;  %v7376_v55 = vpop.permute.xlu2 %2869 }
 0x237   : > { %9528 = vst [vmem:[#allocation16_spill] sm:$0xff] %v7376_v55  ;;  %v7381_v24 = vpop.permute.xlu1 %2585  ;;  %v1303_v42 = vpop.f32.mrf.mxu3 }
 0x238   : > { %v1385_v50 = vadd.f32 %v1303_v42, %v7241_v10  ;;  %v1329_v0 = vpop.f32.mrf.mxu1 }
 0x239   : > { %v7393_v48 = vadd.f32 %v1329_v0, %v7285_v60  ;;  %5966 = vmatmul.msk.bf16.vlgmr.msrb.gmra.mxu1 %vm580_vm3, %v7294_v31 }
 0x23a   : > { %v1318_v3 = vpop.f32.mrf.mxu0  ;;  %5968 = vmatmul.msk.bf16.vlgmr.msrb.gmra.mxu2 %vm580_vm3, %v7386_v13  ;;  %2182 = vmatpush.bf16.msrb.mxu1 %v2155_v56 }
 0x23b   : > { %3463 = vrot.lane.b32.xlu0 %v6480_v40, %s6252_s18  ;;  %2195 = vmatpush.bf16.msrb.mxu2 %v2158_v14  ;;  %v2147_v3 = vsel %vm2143_vm13, %v6998_v41, %v7115_v53  ;;  %v2161_v41 = vsel %vm584_vm2, %v2146_v38, 0 }
 0x23c   : > { %3600 = vrot.lane.b32.xlu2 %v6454_v2, %s6253_s23  ;;  %v2164_v52 = vsel %vm584_vm2, %v2147_v3, 0 }
 0x23d   : > { %v7405_v10 = vpop.permute.xlu0 %2723  ;;  %3598 = vrot.lane.b32.xlu1 %v6439_v37, %s6253_s23  ;;  %v1342_v60 = vpop.f32.mrf.mxu2 }
 0x23e   : > { %v7409_v31 = vadd.f32 %v1342_v60, %v1243_v46  ;;  %v7411_v26 = vpop.permute.xlu2 %2875 }
 0x23f   : > { %9529 = vst [vmem:[#allocation17_spill] sm:$0xff] %v7411_v26  ;;  %v7413_v42 = vpop.permute.xlu1 %2725  ;;  %v1305_v0 = vpop.f32.mrf.mxu3  ;;  %v2149_v26 = vsel %vm2143_vm13, %v7024_v5, %v7132_v54 }
 0x240   : > { %v1331_v56 = vpop.f32.mrf.mxu1  ;;  %v2148_v0 = vsel %vm2143_vm13, %v7115_v53, %v7024_v5  ;;  %v2170_v5 = vsel %vm584_vm2, %v2149_v26, 0  ;;  %v2150_v26 = vsel %vm2143_vm13, %v7132_v54, %v7145_v34  ;;  %vm4337_vm13 = vcmask 277504  }
 0x241   : > { %v2167_v53 = vsel %vm584_vm2, %v2148_v0, 0  ;;  %v2173_v54 = vsel %vm584_vm2, %v2150_v26, 0  ;;  %v7505_v26 = vld [vmem:[%s9446_s3 + $0x2c] sm:$0xf] }
 0x242   : > { %v1368_v14 = vpop.f32.mrf.mxu0 }
 0x243   : > { %v7422_v55 = vadd.f32 %v1368_v14, %v7331_v6  ;;  %3465 = vrot.lane.b32.xlu0 %v6677_v19, %s6252_s18 }
 0x244   : > { %3604 = vrot.lane.b32.xlu2 %v6469_v29, %s6253_s23  ;;  %5969 = vmatmul.msk.bf16.vlgmr.msrb.gmra.mxu3 %vm580_vm3, %v7386_v13 }
 0x245   : > { %v7430_v46 = vpop.permute.xlu0 %2727  ;;  %3602 = vrot.lane.b32.xlu1 %v6451_v63, %s6253_s23  ;;  %5970 = vmatmul.msk.bf16.vlgmr.msra.gmra.mxu0 %vm580_vm3, %v7386_v13  ;;  %v1344_v6 = vpop.f32.mrf.mxu2 }
 0x246   : > { %2208 = vmatpush.bf16.msrb.mxu3 %v2161_v41  ;;  %2221 = vmatpush.bf16.msra.mxu0 %v2164_v52  ;;  %v7438_v60 = vpop.permute.xlu2 %2881 }
 0x247   : > { %v7443_v56 = vpop.permute.xlu1 %2729  ;;  %v1355_v14 = vpop.f32.mrf.mxu3 }
 0x248   : > { %v1389_v38 = vadd.f32 %v1355_v14, %v7303_v20  ;;  %v1381_v25 = vpop.f32.mrf.mxu1 }
 0x249   : > { %v7450_v3 = vadd.f32 %v1381_v25, %v7347_v28  ;;  %5971 = vmatmul.msk.bf16.vlgmr.msra.gmra.mxu1 %vm580_vm3, %v7386_v13 }
 0x24a   : > { %v1370_v41 = vpop.f32.mrf.mxu0  ;;  %5972 = vmatmul.msk.bf16.vlgmr.msra.gmra.mxu2 %vm580_vm3, %v7386_v13  ;;  %2234 = vmatpush.bf16.msra.mxu1 %v2167_v53 }
 0x24b   : > { %3606 = vrot.lane.b32.xlu0 %v6471_v32, %s6253_s23  ;;  %2247 = vmatpush.bf16.msra.mxu2 %v2170_v5  ;;  %v2292_v41 = vsel %vm2291_vm14, %v7054_v61, %v7162_v35 }
 0x24c   : > { %3610 = vrot.lane.b32.xlu2 %v6677_v19, %s6253_s23  ;;  %v2303_v61 = vsel %vm584_vm2, %v2292_v41, 0 }
 0x24d   : > { %v7462_v25 = vpop.permute.xlu0 %2733  ;;  %3608 = vrot.lane.b32.xlu1 %v6480_v40, %s6253_s23  ;;  %v1448_v20 = vpop.f32.mrf.mxu2 }
 0x24e   : > { %v7466_v28 = vadd.f32 %v1448_v20, %v1385_v50  ;;  %v7468_v52 = vpop.permute.xlu2 %3019  ;;  %v2293_v20 = vsel %vm2291_vm14, %v7162_v35, %v7170_v62 }
 0x24f   : > { %9530 = vst [vmem:[#allocation18_spill] sm:$0xff] %v7468_v52  ;;  %v7470_v6 = vpop.permute.xlu1 %2867  ;;  %v1357_v0 = vpop.f32.mrf.mxu3  ;;  %v2306_v35 = vsel %vm584_vm2, %v2293_v20, 0 }
 0x250   : > { %v1383_v14 = vpop.f32.mrf.mxu1 }
 0x252   : > { %v1474_v53 = vpop.f32.mrf.mxu0 }
 0x253   : > { %v7479_v5 = vadd.f32 %v1474_v53, %v7393_v48  ;;  %3743 = vrot.lane.b32.xlu0 %v6439_v37, %s6254_s24 }
 0x254   : > { %3747 = vrot.lane.b32.xlu2 %v6451_v63, %s6254_s24  ;;  %5973 = vmatmul.msk.bf16.vlgmr.msra.gmra.mxu3 %vm580_vm3, %v7386_v13 }
 0x255   : > { %v7488_v34 = vpop.permute.xlu0 %2871  ;;  %3745 = vrot.lane.b32.xlu1 %v6454_v2, %s6254_s24  ;;  %5974 = vmatmul.msk.bf16.vlgmr.msrb.gmra.mxu0 %vm580_vm3, %v7386_v13  ;;  %v1450_v50 = vpop.f32.mrf.mxu2  ;;  %v2294_v13 = vsel %vm2291_vm14, %v7170_v62, %v7078_v27 }
 0x256   : > { %2260 = vmatpush.bf16.msra.mxu3 %v2173_v54  ;;  %2330 = vmatpush.bf16.msrb.mxu0 %v2303_v61  ;;  %v7495_v48 = vpop.permute.xlu2 %3025  ;;  %v2309_v62 = vsel %vm584_vm2, %v2294_v13, 0  ;;  %v2295_v13 = vsel %vm2291_vm14, %v7078_v27, %v7193_v33 }
 0x257   : > { %9531 = vst [vmem:[#allocation19_spill] sm:$0xff] %v7495_v48  ;;  %v7500_v0 = vpop.permute.xlu1 %2873  ;;  %v1461_v14 = vpop.f32.mrf.mxu3  ;;  %v2312_v27 = vsel %vm584_vm2, %v2295_v13, 0 }
 0x258   : > { %v1531_v41 = vadd.f32 %v1461_v14, %v7360_v22  ;;  %v1487_v53 = vpop.f32.mrf.mxu1 }
 0x259   : > { %v7512_v54 = vadd.f32 %v1487_v53, %v7409_v31  ;;  %5976 = vmatmul.msk.bf16.vlgmr.msrb.gmra.mxu1 %vm580_vm3, %v7505_v26 }
 0x25a   : > { %v1476_v61 = vpop.f32.mrf.mxu0  ;;  %5977 = vmatmul.msk.bf16.vlgmr.msrb.gmra.mxu2 %vm580_vm3, %v7505_v26  ;;  %2343 = vmatpush.bf16.msrb.mxu1 %v2306_v35  ;;  %v2296_v35 = vsel %vm2291_vm14, %v7193_v33, %v7205_v4 }
 0x25b   : > { %3749 = vrot.lane.b32.xlu0 %v6469_v29, %s6254_s24  ;;  %2356 = vmatpush.bf16.msrb.mxu2 %v2309_v62  ;;  %v2315_v33 = vsel %vm584_vm2, %v2296_v35, 0 }
 0x25c   : > { %3753 = vrot.lane.b32.xlu2 %v6480_v40, %s6254_s24 }
 0x25d   : > { %v7524_v22 = vpop.permute.xlu0 %2877  ;;  %3751 = vrot.lane.b32.xlu1 %v6471_v32, %s6254_s24  ;;  %v1500_v31 = vpop.f32.mrf.mxu2 }
 0x25e   : > { %v7528_v50 = vadd.f32 %v1500_v31, %v1389_v38  ;;  %v7530_v14 = vpop.permute.xlu2 %3165 }
 0x25f   : > { %9532 = vst [vmem:[#allocation20_spill] sm:$0xff] %v7530_v14  ;;  %v7532_v20 = vpop.permute.xlu1 %2879  ;;  %v1463_v53 = vpop.f32.mrf.mxu3  ;;  %v2298_v14 = vsel %vm2291_vm14, %v7113_v15, %v7224_v44 }
 0x260   : > { %v1489_v61 = vpop.f32.mrf.mxu1  ;;  %v2297_v53 = vsel %vm2291_vm14, %v7205_v4, %v7113_v15 }
 0x261   : > { %v2318_v4 = vsel %vm584_vm2, %v2297_v53, 0  ;;  %v2440_v53 = vsel %vm2439_vm15, %v7232_v51, %v7140_v36 }
 0x262   : > { %v1526_v62 = vpop.f32.mrf.mxu0 }
 0x263   : > { %v7541_v48 = vadd.f32 %v1526_v62, %v7450_v3  ;;  %3755 = vrot.lane.b32.xlu0 %v6677_v19, %s6254_s24 }
 0x264   : > { %3892 = vrot.lane.b32.xlu2 %v6451_v63, %s6255_s28  ;;  %5978 = vmatmul.msk.bf16.vlgmr.msrb.gmra.mxu3 %vm580_vm3, %v7505_v26 }
 0x265   : > { %v7549_v38 = vpop.permute.xlu0 %3015  ;;  %3890 = vrot.lane.b32.xlu1 %v6454_v2, %s6255_s28  ;;  %5979 = vmatmul.msk.bf16.vlgmr.msra.gmra.mxu0 %vm580_vm3, %v7505_v26  ;;  %v1502_v3 = vpop.f32.mrf.mxu2 }
 0x266   : > { %2369 = vmatpush.bf16.msrb.mxu3 %v2312_v27  ;;  %2382 = vmatpush.bf16.msra.mxu0 %v2315_v33  ;;  %v7557_v31 = vpop.permute.xlu2 %3169  ;;  %v2321_v33 = vsel %vm584_vm2, %v2298_v14, 0 }
 0x267   : > { %v7562_v61 = vpop.permute.xlu1 %3017  ;;  %v1513_v62 = vpop.f32.mrf.mxu3 }
 0x268   : > { %v1535_v13 = vadd.f32 %v1513_v62, %v7422_v55  ;;  %v1593_v52 = vpop.f32.mrf.mxu1  ;;  %v2441_v62 = vsel %vm2439_vm15, %v7140_v36, %v7249_v57  ;;  %v2451_v36 = vsel %vm584_vm2, %v2440_v53, 0  ;;  %v2443_v53 = vsel %vm2439_vm15, %v7262_v59, %v7168_v39 }
 0x269   : > { %v7569_v35 = vadd.f32 %v1593_v52, %v7466_v28  ;;  %5980 = vmatmul.msk.bf16.vlgmr.msra.gmra.mxu1 %vm580_vm3, %v7505_v26 }
 0x26a   : > { %v1528_v27 = vpop.f32.mrf.mxu0  ;;  %5981 = vmatmul.msk.bf16.vlgmr.msra.gmra.mxu2 %vm580_vm3, %v7505_v26  ;;  %2395 = vmatpush.bf16.msra.mxu1 %v2318_v4 }
 0x26b   : > { %3894 = vrot.lane.b32.xlu0 %v6469_v29, %s6255_s28  ;;  %2408 = vmatpush.bf16.msra.mxu2 %v2321_v33 }
 0x26c   : > { %3896 = vrot.lane.b32.xlu2 %v6471_v32, %s6255_s28 }
 0x26d   : > { %v7581_v15 = vpop.permute.xlu0 %3021  ;;  %3888 = vrot.lane.b32.xlu1 %v6439_v37, %s6255_s28  ;;  %v1606_v44 = vpop.f32.mrf.mxu2 }
 0x26e   : > { %v7585_v55 = vadd.f32 %v1606_v44, %v1531_v41  ;;  %v7587_v28 = vpop.permute.xlu2 %3175  ;;  %v7600_v41 = vld [vmem:[%s9446_s3 + $0x30] sm:$0xf] }
 0x26f   : > { %9533 = vst [vmem:[#allocation21_spill] sm:$0xff] %v7587_v28  ;;  %v7589_v52 = vpop.permute.xlu1 %3023  ;;  %v1515_v14 = vpop.f32.mrf.mxu3 }
 0x270   : > { %v1595_v3 = vpop.f32.mrf.mxu1 }
 0x272   : > { %v1632_v27 = vpop.f32.mrf.mxu0 }
 0x273   : > { %v7603_v4 = vadd.f32 %v1632_v27, %v7512_v54  ;;  %3898 = vrot.lane.b32.xlu0 %v6480_v40, %s6255_s28  ;;  %v2454_v54 = vsel %vm584_vm2, %v2441_v62, 0 }
 0x274   : > { %4033 = vrot.lane.b32.xlu2 %v6439_v37, %s6256_s8  ;;  %5982 = vmatmul.msk.bf16.vlgmr.msra.gmra.mxu3 %vm580_vm3, %v7505_v26  ;;  %v2442_v26 = vsel %vm2439_vm15, %v7249_v57, %v7262_v59  ;;  %v2460_v59 = vsel %vm584_vm2, %v2443_v53, 0  ;;  %v2444_v53 = vsel %vm2439_vm15, %v7168_v39, %v7281_v30 }
 0x275   : > { %v7612_v51 = vpop.permute.xlu0 %3027  ;;  %3900 = vrot.lane.b32.xlu1 %v6677_v19, %s6255_s28  ;;  %5984 = vmatmul.msk.bf16.vlgmr.msrb.gmra.mxu0 %vm580_vm3, %v7600_v41  ;;  %v1608_v33 = vpop.f32.mrf.mxu2  ;;  %v2457_v57 = vsel %vm584_vm2, %v2442_v26, 0 }
 0x276   : > { %2478 = vmatpush.bf16.msra.mxu3 %v2451_v36  ;;  %2491 = vmatpush.bf16.msrb.mxu0 %v2454_v54  ;;  %v7619_v44 = vpop.permute.xlu2 %3314 }
 0x277   : > { %9534 = vst [vmem:[#allocation22_spill] sm:$0xff] %v7619_v44  ;;  %v7624_v14 = vpop.permute.xlu1 %3163  ;;  %v1619_v3 = vpop.f32.mrf.mxu3 }
 0x278   : > { %v1677_v27 = vadd.f32 %v1619_v3, %v7479_v5  ;;  %v1645_v28 = vpop.f32.mrf.mxu1 }
 0x279   : > { %v7631_v62 = vadd.f32 %v1645_v28, %v7528_v50  ;;  %5985 = vmatmul.msk.bf16.vlgmr.msrb.gmra.mxu1 %vm580_vm3, %v7600_v41 }
 0x27a   : > { %v1634_v36 = vpop.f32.mrf.mxu0  ;;  %5986 = vmatmul.msk.bf16.vlgmr.msrb.gmra.mxu2 %vm580_vm3, %v7600_v41  ;;  %2504 = vmatpush.bf16.msrb.mxu1 %v2457_v57 }
 0x27b   : > { %4035 = vrot.lane.b32.xlu0 %v6454_v2, %s6256_s8  ;;  %2517 = vmatpush.bf16.msrb.mxu2 %v2460_v59  ;;  %v2445_v36 = vsel %vm2439_vm15, %v7281_v30, %v7289_v18  ;;  %v2463_v30 = vsel %vm584_vm2, %v2444_v53, 0 }
 0x27c   : > { %4039 = vrot.lane.b32.xlu2 %v6469_v29, %s6256_s8 }
 0x27d   : > { %v7643_v5 = vpop.permute.xlu0 %3167  ;;  %4037 = vrot.lane.b32.xlu1 %v6451_v63, %s6256_s8  ;;  %v1658_v50 = vpop.f32.mrf.mxu2 }
 0x27e   : > { %v7647_v28 = vadd.f32 %v1658_v50, %v1535_v13  ;;  %v7649_v54 = vpop.permute.xlu2 %3318  ;;  %v2466_v13 = vsel %vm584_vm2, %v2445_v36, 0 }
 0x27f   : > { %9535 = vst [vmem:[#allocation23_spill] sm:$0xff] %v7649_v54  ;;  %v7651_v33 = vpop.permute.xlu1 %3029  ;;  %v1621_v26 = vpop.f32.mrf.mxu3  ;;  %v2588_v54 = vsel %vm2587_vm4, %v7200_v45, %v7311_v17 }
 0x280   : > { %v1647_v3 = vpop.f32.mrf.mxu1  ;;  %v2446_v26 = vsel %vm2439_vm15, %v7289_v18, %v7230_v8  ;;  %v2599_v45 = vsel %vm584_vm2, %v2588_v54, 0  ;;  %v7713_v54 = vld [vmem:[%s9446_s3 + $0x34] sm:$0xf] }
 0x281   : > { %v2469_v8 = vsel %vm584_vm2, %v2446_v26, 0  ;;  %v2589_v26 = vsel %vm2587_vm4, %v7311_v17, %v7324_v49 }
 0x282   : > { %v1738_v57 = vpop.f32.mrf.mxu0  ;;  %v2602_v17 = vsel %vm584_vm2, %v2589_v26, 0 }
 0x283   : > { %v7660_v59 = vadd.f32 %v1738_v57, %v7569_v35  ;;  %4041 = vrot.lane.b32.xlu0 %v6471_v32, %s6256_s8 }
 0x284   : > { %4178 = vrot.lane.b32.xlu2 %v6439_v37, %s6257_s9  ;;  %5987 = vmatmul.msk.bf16.vlgmr.msrb.gmra.mxu3 %vm580_vm3, %v7600_v41 }
 0x285   : > { %v7668_v39 = vpop.permute.xlu0 %3171  ;;  %4043 = vrot.lane.b32.xlu1 %v6480_v40, %s6256_s8  ;;  %5988 = vmatmul.msk.bf16.vlgmr.msra.gmra.mxu0 %vm580_vm3, %v7600_v41  ;;  %v1660_v35 = vpop.f32.mrf.mxu2 }
 0x286   : > { %2530 = vmatpush.bf16.msrb.mxu3 %v2463_v30  ;;  %2543 = vmatpush.bf16.msra.mxu0 %v2466_v13  ;;  %v7676_v50 = vpop.permute.xlu2 %3455 }
 0x287   : > { %v7681_v3 = vpop.permute.xlu1 %3173  ;;  %v1671_v57 = vpop.f32.mrf.mxu3 }
 0x288   : > { %v1681_v53 = vadd.f32 %v1671_v57, %v7541_v48  ;;  %v1751_v44 = vpop.f32.mrf.mxu1 }
 0x289   : > { %v7688_v36 = vadd.f32 %v1751_v44, %v7585_v55  ;;  %5989 = vmatmul.msk.bf16.vlgmr.msra.gmra.mxu1 %vm580_vm3, %v7600_v41 }
 0x28a   : > { %v1740_v30 = vpop.f32.mrf.mxu0  ;;  %5990 = vmatmul.msk.bf16.vlgmr.msra.gmra.mxu2 %vm580_vm3, %v7600_v41  ;;  %2556 = vmatpush.bf16.msra.mxu1 %v2469_v8 }
 0x28b   : > { %4180 = vrot.lane.b32.xlu0 %v6454_v2, %s6257_s9  ;;  %2626 = vmatpush.bf16.msra.mxu2 %v2599_v45 }
 0x28c   : > { %4182 = vrot.lane.b32.xlu2 %v6451_v63, %s6257_s9 }
 0x28d   : > { %v7700_v18 = vpop.permute.xlu0 %3310  ;;  %4045 = vrot.lane.b32.xlu1 %v6677_v19, %s6256_s8  ;;  %v1764_v48 = vpop.f32.mrf.mxu2 }
 0x28e   : > { %v7704_v55 = vadd.f32 %v1764_v48, %v1677_v27  ;;  %v7706_v41 = vpop.permute.xlu2 %3461  ;;  %v2590_v27 = vsel %vm2587_vm4, %v7324_v49, %v7343_v7  ;;  %v2591_v48 = vsel %vm2587_vm4, %v7343_v7, %v7351_v58 }
 0x28f   : > { %9536 = vst [vmem:[#allocation24_spill] sm:$0xff] %v7706_v41  ;;  %v7708_v44 = vpop.permute.xlu1 %3312  ;;  %v1673_v13 = vpop.f32.mrf.mxu3  ;;  %v2605_v49 = vsel %vm584_vm2, %v2590_v27, 0  ;;  %v2608_v7 = vsel %vm584_vm2, %v2591_v48, 0 }
 0x290   : > { %v1753_v35 = vpop.f32.mrf.mxu1 }
 0x292   : > { %v1790_v57 = vpop.f32.mrf.mxu0 }
 0x293   : > { %v7722_v30 = vadd.f32 %v1790_v57, %v7631_v62  ;;  %4184 = vrot.lane.b32.xlu0 %v6469_v29, %s6257_s9  ;;  %v2592_v57 = vsel %vm2587_vm4, %v7351_v58, %v7257_v47 }
 0x294   : > { %4188 = vrot.lane.b32.xlu2 %v6480_v40, %s6257_s9  ;;  %5992 = vmatmul.msk.bf16.vlgmr.msra.gmra.mxu3 %vm580_vm3, %v7713_v54  ;;  %v2611_v58 = vsel %vm584_vm2, %v2592_v57, 0  ;;  %v2593_v57 = vsel %vm2587_vm4, %v7257_v47, %v7368_v23 }
 0x295   : > { %v7730_v8 = vpop.permute.xlu0 %3308  ;;  %4186 = vrot.lane.b32.xlu1 %v6471_v32, %s6257_s9  ;;  %5993 = vmatmul.msk.bf16.vlgmr.msrb.gmra.mxu0 %vm580_vm3, %v7713_v54  ;;  %v1766_v62 = vpop.f32.mrf.mxu2 }
 0x296   : > { %2639 = vmatpush.bf16.msra.mxu3 %v2602_v17  ;;  %2652 = vmatpush.bf16.msrb.mxu0 %v2605_v49  ;;  %v7738_v45 = vpop.permute.xlu2 %3600 }
 0x297   : > { %v7743_v13 = vpop.permute.xlu1 %3316  ;;  %v1777_v35 = vpop.f32.mrf.mxu3 }
 0x298   : > { %v1823_v26 = vadd.f32 %v1777_v35, %v7603_v4  ;;  %v1803_v41 = vpop.f32.mrf.mxu1 }
 0x299   : > { %v7750_v27 = vadd.f32 %v1803_v41, %v7647_v28  ;;  %5994 = vmatmul.msk.bf16.vlgmr.msrb.gmra.mxu1 %vm580_vm3, %v7713_v54 }
 0x29a   : > { %v1792_v17 = vpop.f32.mrf.mxu0  ;;  %5995 = vmatmul.msk.bf16.vlgmr.msrb.gmra.mxu2 %vm580_vm3, %v7713_v54  ;;  %2665 = vmatpush.bf16.msrb.mxu1 %v2608_v7  ;;  %v7803_v7 = vld [vmem:[%s9446_s3 + $0x38] sm:$0xf] }
 0x29b   : > { %4190 = vrot.lane.b32.xlu0 %v6677_v19, %s6257_s9  ;;  %2678 = vmatpush.bf16.msrb.mxu2 %v2611_v58 }
 0x29c   : > { %4325 = vrot.lane.b32.xlu2 %v6454_v2, %s6258_s17  ;;  %v2594_v2 = vsel %vm2587_vm4, %v7368_v23, %v7381_v24  ;;  %v2614_v23 = vsel %vm584_vm2, %v2593_v57, 0  ;;  %vm3322_vm4 = vcmask 449536  }
 0x29d   : > { %v7762_v4 = vpop.permute.xlu0 %3320  ;;  %4323 = vrot.lane.b32.xlu1 %v6439_v37, %s6258_s17  ;;  %v1816_v28 = vpop.f32.mrf.mxu2 }
 0x29e   : > { %v7766_v41 = vadd.f32 %v1816_v28, %v1681_v53  ;;  %v7768_v49 = vpop.permute.xlu2 %3604  ;;  %v2617_v53 = vsel %vm584_vm2, %v2594_v2, 0 }
 0x29f   : > { %v7770_v62 = vpop.permute.xlu1 %3453  ;;  %v1779_v48 = vpop.f32.mrf.mxu3 }
 0x2a0   : > { %v1805_v35 = vpop.f32.mrf.mxu1 }
 0x2a2   : > { %v1901_v17 = vpop.f32.mrf.mxu0 }
 0x2a3   : > { %v7779_v37 = vadd.f32 %v1901_v17, %v7688_v36  ;;  %4327 = vrot.lane.b32.xlu0 %v6451_v63, %s6258_s17  ;;  %v2736_v63 = vsel %vm580_vm3, %v7319_v43, %v7287_v1 }
 0x2a4   : > { %4331 = vrot.lane.b32.xlu2 %v6471_v32, %s6258_s17  ;;  %5996 = vmatmul.msk.bf16.vlgmr.msrb.gmra.mxu3 %vm580_vm3, %v7713_v54  ;;  %v2747_v43 = vsel %vm584_vm2, %v2736_v63, 0 }
 0x2a5   : > { %v7788_v47 = vpop.permute.xlu0 %3457  ;;  %4329 = vrot.lane.b32.xlu1 %v6469_v29, %s6258_s17  ;;  %5997 = vmatmul.msk.bf16.vlgmr.msra.gmra.mxu0 %vm580_vm3, %v7713_v54  ;;  %v1818_v24 = vpop.f32.mrf.mxu2  ;;  %v2737_v29 = vsel %vm580_vm3, %v7287_v1, %v7405_v10 }
 0x2a6   : > { %2691 = vmatpush.bf16.msrb.mxu3 %v2614_v23  ;;  %2704 = vmatpush.bf16.msra.mxu0 %v2617_v53  ;;  %v7808_v58 = vpop.permute.xlu2 %3610  ;;  %v2750_v1 = vsel %vm584_vm2, %v2737_v29, 0  ;;  %v2739_v23 = vsel %vm580_vm3, %v7413_v42, %v7430_v46 }
 0x2a7   : > { %v7798_v32 = vpop.permute.xlu1 %3459  ;;  %v1888_v36 = vpop.f32.mrf.mxu3  ;;  %9537 = vst [vmem:[#allocation25_spill] sm:$0xff] %v7808_v58 }
 0x2a8   : > { %v1970_v28 = vadd.f32 %v1888_v36, %v7660_v59  ;;  %v1914_v48 = vpop.f32.mrf.mxu1  ;;  %v2740_v36 = vsel %vm580_vm3, %v7430_v46, %v7443_v56 }
 0x2a9   : > { %v1972_v35 = vadd.f32 %v1914_v48, %v7704_v55  ;;  %5998 = vmatmul.msk.bf16.vlgmr.msra.gmra.mxu1 %vm580_vm3, %v7713_v54  ;;  %v2759_v46 = vsel %vm584_vm2, %v2740_v36, 0 }
 0x2aa   : > { %v1903_v57 = vpop.f32.mrf.mxu0  ;;  %6000 = vmatmul.msk.bf16.vlgmr.msra.gmra.mxu2 %vm580_vm3, %v7803_v7  ;;  %2774 = vmatpush.bf16.msra.mxu1 %v2747_v43  ;;  %v2741_v43 = vsel %vm580_vm3, %v7443_v56, %v7349_v9 }
 0x2ab   : > { %4333 = vrot.lane.b32.xlu0 %v6480_v40, %s6258_s17  ;;  %2787 = vmatpush.bf16.msra.mxu2 %v2750_v1  ;;  %v2738_v40 = vsel %vm580_vm3, %v7405_v10, %v7413_v42  ;;  %v2762_v56 = vsel %vm584_vm2, %v2741_v43, 0  ;;  %v9545_v43 = vld [vmem:[#allocation16_spill] sm:$0xff] }
 0x2ac   : > { %4487 = vrot.lane.b32.xlu2 %v6327_v11, %s6244_s10  ;;  %v2753_v42 = vsel %vm584_vm2, %v2738_v40, 0 }
 0x2ad   : > { %v7822_v59 = vpop.permute.xlu0 %3463  ;;  %4335 = vrot.lane.b32.xlu1 %v6677_v19, %s6258_s17  ;;  %v1927_v55 = vpop.f32.mrf.mxu2 }
 0x2ae   : > { %v7826_v54 = vadd.f32 %v1927_v55, %v1823_v26  ;;  %v7836_v24 = vpop.permute.xlu2 %3747  ;;  %v2756_v26 = vsel %vm584_vm2, %v2739_v23, 0  ;;  %v9543_v23 = vld [vmem:[#allocation7_spill] sm:$0xff] }
 0x2af   : > { %v7828_v2 = vpop.permute.xlu1 %3598  ;;  %v1890_v17 = vpop.f32.mrf.mxu3  ;;  %9538 = vst [vmem:[#allocation26_spill] sm:$0xff] %v7836_v24 }
 0x2b0   : > { %v1916_v53 = vpop.f32.mrf.mxu1 }
 0x2b1   : > { %v9539_v53 = vld [vmem:[#allocation6_spill] sm:$0xff] }
 0x2b2   : > { %v1953_v63 = vpop.f32.mrf.mxu0 }
 0x2b3   : > { %v7839_v19 = vadd.f32 %v1953_v63, %v7750_v27  ;;  %4489 = vrot.lane.b32.xlu0 %v6329_v12, %s6244_s10 }
 0x2b4   : > { %6001 = vmatmul.msk.bf16.vlgmr.msra.gmra.mxu3 %vm580_vm3, %v7803_v7  ;;  %4471 = vrot.lane.b32.xlu2 %v6344_v21, %s6244_s10 }
 0x2b5   : > { %v7847_v10 = vpop.permute.xlu0 %3465  ;;  %4491 = vrot.lane.b32.xlu1 %v6335_v16, %s6244_s10  ;;  %6002 = vmatmul.msk.bf16.vlgmr.msrb.gmra.mxu0 %vm580_vm3, %v7803_v7  ;;  %v1929_v27 = vpop.f32.mrf.mxu2 }
 0x2b6   : > { %2800 = vmatpush.bf16.msra.mxu3 %v2753_v42  ;;  %2813 = vmatpush.bf16.msrb.mxu0 %v2756_v26 }
 0x2b7   : > { %v7858_v29 = vpop.permute.xlu1 %3602  ;;  %v1940_v48 = vpop.f32.mrf.mxu3 }
 0x2b8   : > { %v1974_v57 = vadd.f32 %v1940_v48, %v7722_v30  ;;  %v1966_v1 = vpop.f32.mrf.mxu1  ;;  %v7875_v30 = vpop.permute.xlu2 %3753  ;;  %v2742_v48 = vsel %vm580_vm3, %v7349_v9, %v7462_v25 }
 0x2b9   : > { %v7865_v55 = vadd.f32 %v1966_v1, %v7766_v41  ;;  %6003 = vmatmul.msk.bf16.vlgmr.msrb.gmra.mxu1 %vm580_vm3, %v7803_v7  ;;  %9540 = vst [vmem:[#allocation27_spill] sm:$0xff] %v7875_v30  ;;  %v9541_v41 = vld [vmem:[#allocation2_spill] sm:$0xff]  ;;  %v2884_v1 = vsel %vm2883_vm7, %v7470_v6, %v9545_v43  ;;  %v9549_v6 = vld [vmem:[#allocation4_spill] sm:$0xff]  ;;  %v9552_v30 = vld [vmem:[#allocation9_spill] sm:$0xff] }
 0x2ba   : > { %v1955_v17 = vpop.f32.mrf.mxu0  ;;  %6004 = vmatmul.msk.bf16.vlgmr.msrb.gmra.mxu2 %vm580_vm3, %v7803_v7  ;;  %2826 = vmatpush.bf16.msrb.mxu1 %v2759_v46  ;;  %v2895_v9 = vsel %vm584_vm2, %v2884_v1, 0 }
 0x2bb   : > { %4473 = vrot.lane.b32.xlu0 %v9539_v53, %s6244_s10  ;;  %2839 = vmatpush.bf16.msrb.mxu2 %v2762_v56  ;;  %v9546_v56 = vld [vmem:[#allocation8_spill] sm:$0xff] }
 0x2bc   : > { %4485 = vrot.lane.b32.xlu2 %v9541_v41, %s6244_s10 }
 0x2bd   : > { %v7879_v40 = vpop.permute.xlu0 %3606  ;;  %4475 = vrot.lane.b32.xlu1 %v9543_v23, %s6244_s10  ;;  %v2036_v63 = vpop.f32.mrf.mxu2 }
 0x2be   : > { %9542 = vst [vmem:[#allocation2_spill] sm:$0xff] %v7879_v40  ;;  %v7883_v42 = vadd.f32 %v2036_v63, %v1970_v28  ;;  %v9547_v28 = vld [vmem:[#allocation12_spill] sm:$0xff]  ;;  %v2765_v63 = vsel %vm584_vm2, %v2742_v48, 0 }
 0x2bf   : > { %v7885_v26 = vpop.permute.xlu1 %3608  ;;  %v1942_v27 = vpop.f32.mrf.mxu3 }
 0x2c0   : > { %9544 = vst [vmem:[#allocation28_spill] sm:$0xff] %v7885_v26  ;;  %v1968_v36 = vpop.f32.mrf.mxu1  ;;  %v7909_v27 = vpop.permute.xlu2 %3892 }
 0x2c1   : > { %9550 = vst [vmem:[#allocation4_spill] sm:$0xff] %v7909_v27  ;;  %v2885_v36 = vsel %vm2883_vm7, %v9545_v43, %v7488_v34 }
 0x2c2   : > { %v2062_v17 = vpop.f32.mrf.mxu0  ;;  %v2898_v43 = vsel %vm584_vm2, %v2885_v36, 0 }
 0x2c3   : > { %v7893_v46 = vadd.f32 %v2062_v17, %v1972_v35  ;;  %4493 = vrot.lane.b32.xlu0 %v9546_v56, %s6244_s10  ;;  %v7919_v17 = vld [vmem:[%s9446_s3 + $0x3c] sm:$0xf] }
 0x2c4   : > { %6005 = vmatmul.msk.bf16.vlgmr.msrb.gmra.mxu3 %vm580_vm3, %v7803_v7  ;;  %4477 = vrot.lane.b32.xlu2 %v9547_v28, %s6244_s10 }
 0x2c5   : > { %v7903_v25 = vpop.permute.xlu0 %3743  ;;  %4469 = vrot.lane.b32.xlu1 %v9549_v6, %s6244_s10  ;;  %6006 = vmatmul.msk.bf16.vlgmr.msra.gmra.mxu0 %vm580_vm3, %v7803_v7  ;;  %v2038_v35 = vpop.f32.mrf.mxu2  ;;  %v2886_v7 = vsel %vm2883_vm7, %v7488_v34, %v7500_v0 }
 0x2c6   : > { %9548 = vst [vmem:[#allocation16_spill] sm:$0xff] %v7903_v25  ;;  %2852 = vmatpush.bf16.msrb.mxu3 %v2765_v63  ;;  %2922 = vmatpush.bf16.msra.mxu0 %v2895_v9  ;;  %v2901_v34 = vsel %vm584_vm2, %v2886_v7, 0 }
 0x2c7   : > { %v7914_v48 = vpop.permute.xlu1 %3745  ;;  %v2049_v1 = vpop.f32.mrf.mxu3 }
 0x2c8   : > { %9551 = vst [vmem:[#allocation29_spill] sm:$0xff] %v7914_v48  ;;  %v2119_v35 = vadd.f32 %v2049_v1, %v7779_v37  ;;  %v2075_v63 = vpop.f32.mrf.mxu1  ;;  %v9553_v37 = vld [vmem:[#allocation11_spill] sm:$0xff]  ;;  %v7944_v25 = vpop.permute.xlu2 %3896  ;;  %v9558_v48 = vld [vmem:[#allocation17_spill] sm:$0xff] }
 0x2c9   : > { %v2121_v9 = vadd.f32 %v2075_v63, %v7826_v54  ;;  %6008 = vmatmul.msk.bf16.vlgmr.msra.gmra.mxu1 %vm580_vm3, %v7919_v17  ;;  %9557 = vst [vmem:[#allocation31_spill] sm:$0xff] %v7944_v25  ;;  %v2887_v7 = vsel %vm2883_vm7, %v7500_v0, %v9558_v48  ;;  %v9562_v0 = vld [vmem:[#allocation14_spill] sm:$0xff] }
 0x2ca   : > { %v2064_v27 = vpop.f32.mrf.mxu0  ;;  %6009 = vmatmul.msk.bf16.vlgmr.msra.gmra.mxu2 %vm580_vm3, %v7919_v17  ;;  %2935 = vmatpush.bf16.msra.mxu1 %v2898_v43 }
 0x2cb   : > { %4495 = vrot.lane.b32.xlu0 %v9552_v30, %s6244_s10  ;;  %2948 = vmatpush.bf16.msra.mxu2 %v2901_v34  ;;  %v9555_v27 = vld [vmem:[#allocation10_spill] sm:$0xff]  ;;  %v2888_v34 = vsel %vm2883_vm7, %v9558_v48, %v7524_v22 }
 0x2cc   : > { %4499 = vrot.lane.b32.xlu2 %v9553_v37, %s6244_s10  ;;  %v2907_v48 = vsel %vm584_vm2, %v2888_v34, 0 }
 0x2cd   : > { %v7936_v54 = vpop.permute.xlu0 %3749  ;;  %4497 = vrot.lane.b32.xlu1 %v9555_v27, %s6244_s10  ;;  %v2088_v1 = vpop.f32.mrf.mxu2 }
 0x2ce   : > { %9554 = vst [vmem:[#allocation11_spill] sm:$0xff] %v7936_v54  ;;  %v7940_v63 = vadd.f32 %v2088_v1, %v1974_v57  ;;  %v9559_v57 = vld [vmem:[#allocation13_spill] sm:$0xff]  ;;  %v9560_v1 = vld [vmem:[#allocation15_spill] sm:$0xff] }
 0x2cf   : > { %v7942_v24 = vpop.permute.xlu1 %3751  ;;  %v2051_v36 = vpop.f32.mrf.mxu3 }
 0x2d0   : > { %9556 = vst [vmem:[#allocation30_spill] sm:$0xff] %v7942_v24  ;;  %v2077_v43 = vpop.f32.mrf.mxu1  ;;  %v2890_v24 = vsel %vm2883_vm7, %v7532_v20, %v7438_v60  ;;  %v7981_v34 = vpop.permute.xlu2 %4033 }
 0x2d1   : > { %v2889_v43 = vsel %vm2883_vm7, %v7524_v22, %v7532_v20  ;;  %9563 = vst [vmem:[#allocation15_spill] sm:$0xff] %v7981_v34  ;;  %v2913_v60 = vsel %vm584_vm2, %v2890_v24, 0  ;;  %v3032_v24 = vsel %vm3031_vm8, %v7549_v38, %v7562_v61  ;;  %vm3467_vm7 = vcmask 441344  }
 0x2d2   : > { %v2114_v54 = vpop.f32.mrf.mxu0  ;;  %v2910_v22 = vsel %vm584_vm2, %v2889_v43, 0 }
 0x2d3   : > { %v7953_v58 = vadd.f32 %v2114_v54, %v7865_v55  ;;  %4479 = vrot.lane.b32.xlu0 %v9559_v57, %s6244_s10  ;;  %v2904_v55 = vsel %vm584_vm2, %v2887_v7, 0 }
 0x2d4   : > { %6010 = vmatmul.msk.bf16.vlgmr.msra.gmra.mxu3 %vm580_vm3, %v7919_v17  ;;  %4483 = vrot.lane.b32.xlu2 %v9560_v1, %s6244_s10 }
 0x2d5   : > { %v7961_v36 = vpop.permute.xlu0 %3755  ;;  %4481 = vrot.lane.b32.xlu1 %v9562_v0, %s6244_s10  ;;  %6011 = vmatmul.msk.bf16.vlgmr.msrb.gmra.mxu0 %vm580_vm3, %v7919_v17  ;;  %v2090_v54 = vpop.f32.mrf.mxu2  ;;  %s6185_s10 = smul.u32 56, %s9633_s22 }
 0x2d6   : > { %9561 = vst [vmem:[#allocation17_spill] sm:$0xff] %v7961_v36  ;;  %2961 = vmatpush.bf16.msra.mxu3 %v2904_v55  ;;  %2974 = vmatpush.bf16.msrb.mxu0 %v2907_v48  ;;  %v9564_v54 = vld [vmem:[#allocation18_spill] sm:$0xff] }
 0x2d7   : > { %v7972_v25 = vpop.permute.xlu1 %3890  ;;  %v2101_v36 = vpop.f32.mrf.mxu3  ;;  %v3033_v43 = vsel %vm3031_vm8, %v7562_v61, %v9564_v54  ;;  %v3043_v61 = vsel %vm584_vm2, %v3032_v24, 0  ;;  %s9403_s22 = scalar_lea.vmem %s9449_s6, %s6185_s10 }
 0x2d8   : > { %v2123_v26 = vadd.f32 %v2101_v36, %v7839_v19  ;;  %v2184_v40 = vpop.f32.mrf.mxu1 }
 0x2d9   : > { %v7979_v7 = vadd.f32 %v2184_v40, %v7883_v42  ;;  %6012 = vmatmul.msk.bf16.vlgmr.msrb.gmra.mxu1 %vm580_vm3, %v7919_v17 }
 0x2da   : > { %v2116_v55 = vpop.f32.mrf.mxu0  ;;  %6013 = vmatmul.msk.bf16.vlgmr.msrb.gmra.mxu2 %vm580_vm3, %v7919_v17  ;;  %2987 = vmatpush.bf16.msrb.mxu1 %v2910_v22  ;;  %v8010_v22 = vld [vmem:[%s9446_s3 + $0x40] sm:$0xf] }
 0x2db   : > { %4639 = vrot.lane.b32.xlu0 %v9541_v41, %s6245_s14  ;;  %3000 = vmatpush.bf16.msrb.mxu2 %v2913_v60  ;;  %v8016_v60 = vpop.permute.xlu2 %4039 }
 0x2dc   : > { %4623 = vrot.lane.b32.xlu2 %v9549_v6, %s6245_s14  ;;  %9565 = vst [vmem:[#allocation18_spill] sm:$0xff] %v8016_v60 }
 0x2dd   : > { %v7993_v20 = vpop.permute.xlu0 %3894  ;;  %4641 = vrot.lane.b32.xlu1 %v6327_v11, %s6245_s14  ;;  %v2197_v19 = vpop.f32.mrf.mxu2 }
 0x2de   : > { %v7997_v40 = vadd.f32 %v2197_v19, %v2119_v35 }
 0x2df   : > { %v7999_v42 = vpop.permute.xlu1 %3888  ;;  %v2103_v36 = vpop.f32.mrf.mxu3 }
 0x2e0   : > { %v2186_v48 = vpop.f32.mrf.mxu1 }
 0x2e2   : > { %v2223_v55 = vpop.f32.mrf.mxu0 }
 0x2e3   : > { %v8012_v35 = vadd.f32 %v2223_v55, %v2121_v9  ;;  %4625 = vrot.lane.b32.xlu0 %v6344_v21, %s6245_s14  ;;  %v3046_v9 = vsel %vm584_vm2, %v3033_v43, 0  ;;  %v3035_v55 = vsel %vm3031_vm8, %v7581_v15, %v7589_v52 }
 0x2e4   : > { %6014 = vmatmul.msk.bf16.vlgmr.msrb.gmra.mxu3 %vm580_vm3, %v7919_v17  ;;  %4645 = vrot.lane.b32.xlu2 %v6335_v16, %s6245_s14  ;;  %v3034_v17 = vsel %vm3031_vm8, %v9564_v54, %v7581_v15  ;;  %v3052_v15 = vsel %vm584_vm2, %v3035_v55, 0 }
 0x2e5   : > { %v8022_v38 = vpop.permute.xlu0 %3898  ;;  %4643 = vrot.lane.b32.xlu1 %v6329_v12, %s6245_s14  ;;  %6016 = vmatmul.msk.bf16.vlgmr.msra.gmra.mxu0 %vm580_vm3, %v8010_v22  ;;  %v2199_v19 = vpop.f32.mrf.mxu2  ;;  %v3049_v54 = vsel %vm584_vm2, %v3034_v17, 0 }
 0x2e6   : > { %3070 = vmatpush.bf16.msrb.mxu3 %v3043_v61  ;;  %3083 = vmatpush.bf16.msra.mxu0 %v3046_v9 }
 0x2e7   : > { %v8033_v36 = vpop.permute.xlu1 %3900  ;;  %v2210_v48 = vpop.f32.mrf.mxu3 }
 0x2e8   : > { %v2268_v60 = vadd.f32 %v2210_v48, %v7893_v46  ;;  %v2236_v34 = vpop.f32.mrf.mxu1  ;;  %v9568_v48 = vld [vmem:[#allocation19_spill] sm:$0xff] }
 0x2e9   : > { %v8040_v24 = vadd.f32 %v2236_v34, %v7940_v63  ;;  %6017 = vmatmul.msk.bf16.vlgmr.msra.gmra.mxu1 %vm580_vm3, %v8010_v22  ;;  %v4179_v34 = vpop.permute.xlu2 %4178  ;;  %v3036_v55 = vsel %vm3031_vm8, %v7589_v52, %v9568_v48 }
 0x2ea   : > { %v2225_v43 = vpop.f32.mrf.mxu0  ;;  %6018 = vmatmul.msk.bf16.vlgmr.msra.gmra.mxu2 %vm580_vm3, %v8010_v22  ;;  %3096 = vmatpush.bf16.msra.mxu1 %v3049_v54  ;;  %v3055_v52 = vsel %vm584_vm2, %v3036_v55, 0 }
 0x2eb   : > { %4647 = vrot.lane.b32.xlu0 %v9546_v56, %s6245_s14  ;;  %3109 = vmatpush.bf16.msra.mxu2 %v3052_v15  ;;  %v3037_v43 = vsel %vm3031_vm8, %v9568_v48, %v7612_v51 }
 0x2ec   : > { %4629 = vrot.lane.b32.xlu2 %v9543_v23, %s6245_s14 }
 0x2ed   : > { %v8052_v46 = vpop.permute.xlu0 %4035  ;;  %4627 = vrot.lane.b32.xlu1 %v9539_v53, %s6245_s14  ;;  %v2249_v63 = vpop.f32.mrf.mxu2 }
 0x2ee   : > { %9566 = vst [vmem:[#allocation32_spill] sm:$0xff] %v8052_v46  ;;  %v8056_v61 = vadd.f32 %v2249_v63, %v2123_v26 }
 0x2ef   : > { %v8058_v9 = vpop.permute.xlu1 %4037  ;;  %v2212_v19 = vpop.f32.mrf.mxu3 }
 0x2f0   : > { %9567 = vst [vmem:[#allocation33_spill] sm:$0xff] %v8058_v9  ;;  %v2238_v17 = vpop.f32.mrf.mxu1  ;;  %v3038_v19 = vsel %vm3031_vm8, %v7612_v51, %v7651_v33  ;;  %vm3612_vm8 = vcmask 375808  }
 0x2f1   : > { %v4183_v9 = vpop.permute.xlu2 %4182 }
 0x2f2   : > { %v2332_v54 = vpop.f32.mrf.mxu0 }
 0x2f3   : > { %v8067_v15 = vadd.f32 %v2332_v54, %v7979_v7  ;;  %4631 = vrot.lane.b32.xlu0 %v9547_v28, %s6245_s14  ;;  %v3058_v7 = vsel %vm584_vm2, %v3037_v43, 0  ;;  %v9570_v54 = vld [vmem:[#allocation20_spill] sm:$0xff] }
 0x2f4   : > { %6019 = vmatmul.msk.bf16.vlgmr.msra.gmra.mxu3 %vm580_vm3, %v8010_v22  ;;  %4633 = vrot.lane.b32.xlu2 %v9559_v57, %s6245_s14 }
 0x2f5   : > { %v8075_v26 = vpop.permute.xlu0 %4041  ;;  %4649 = vrot.lane.b32.xlu1 %v9552_v30, %s6245_s14  ;;  %6020 = vmatmul.msk.bf16.vlgmr.msrb.gmra.mxu0 %vm580_vm3, %v8010_v22  ;;  %v2251_v63 = vpop.f32.mrf.mxu2 }
 0x2f6   : > { %9569 = vst [vmem:[#allocation19_spill] sm:$0xff] %v8075_v26  ;;  %3122 = vmatpush.bf16.msra.mxu3 %v3055_v52  ;;  %3135 = vmatpush.bf16.msrb.mxu0 %v3058_v7  ;;  %v3178_v26 = vsel %vm3177_vm9, %v7624_v14, %v9570_v54  ;;  %v3061_v52 = vsel %vm584_vm2, %v3038_v19, 0 }
 0x2f7   : > { %v8086_v17 = vpop.permute.xlu1 %4043  ;;  %v2262_v48 = vpop.f32.mrf.mxu3  ;;  %v3188_v51 = vsel %vm584_vm2, %v3178_v26, 0 }
 0x2f8   : > { %v8092_v46 = vadd.f32 %v2262_v48, %v7953_v58  ;;  %v2345_v55 = vpop.f32.mrf.mxu1  ;;  %v8122_v48 = vld [vmem:[%s9446_s3 + $0x44] sm:$0xf] }
 0x2f9   : > { %v8095_v43 = vadd.f32 %v2345_v55, %v7997_v40  ;;  %6021 = vmatmul.msk.bf16.vlgmr.msrb.gmra.mxu1 %vm580_vm3, %v8010_v22  ;;  %v3179_v55 = vsel %vm3177_vm9, %v9570_v54, %v7643_v5 }
 0x2fa   : > { %v2334_v7 = vpop.f32.mrf.mxu0  ;;  %6022 = vmatmul.msk.bf16.vlgmr.msrb.gmra.mxu2 %vm580_vm3, %v8010_v22  ;;  %3148 = vmatpush.bf16.msrb.mxu1 %v3061_v52  ;;  %v4189_v52 = vpop.permute.xlu2 %4188 }
 0x2fb   : > { %4651 = vrot.lane.b32.xlu0 %v9555_v27, %s6245_s14  ;;  %3215 = vmatpush.bf16.msrb.mxu2 %v3188_v51 }
 0x2fc   : > { %4795 = vrot.lane.b32.xlu2 %v9541_v41, %s6242_s30 }
 0x2fd   : > { %v4181_v14 = vpop.permute.xlu0 %4180  ;;  %4653 = vrot.lane.b32.xlu1 %v9553_v37, %s6245_s14  ;;  %v2358_v33 = vpop.f32.mrf.mxu2 }
 0x2fe   : > { %v8110_v58 = vsel %vm4192_vm10, %v4179_v34, %v4181_v14  ;;  %v8113_v40 = vsel %vm4192_vm10, %v4181_v14, %v4183_v9  ;;  %v8115_v22 = vadd.f32 %v2358_v33, %v2268_v60  ;;  %v3180_v34 = vsel %vm3177_vm9, %v7643_v5, %v7557_v31 }
 0x2ff   : > { %v8117_v26 = vpop.permute.xlu1 %4045  ;;  %v2264_v63 = vpop.f32.mrf.mxu3  ;;  %v3191_v5 = vsel %vm584_vm2, %v3179_v55, 0  ;;  %v3181_v33 = vsel %vm3177_vm9, %v7557_v31, %v7668_v39 }
 0x300   : > { %v2347_v19 = vpop.f32.mrf.mxu1 }
 0x302   : > { %v2384_v60 = vpop.f32.mrf.mxu0 }
 0x303   : > { %v8131_v7 = vadd.f32 %v2384_v60, %v8040_v24  ;;  %4797 = vrot.lane.b32.xlu0 %v6327_v11, %s6242_s30  ;;  %v3194_v24 = vsel %vm584_vm2, %v3180_v34, 0  ;;  %v3182_v60 = vsel %vm3177_vm9, %v7668_v39, %v7681_v3  ;;  %v3197_v39 = vsel %vm584_vm2, %v3181_v33, 0 }
 0x304   : > { %6024 = vmatmul.msk.bf16.vlgmr.msrb.gmra.mxu3 %vm580_vm3, %v8122_v48  ;;  %4637 = vrot.lane.b32.xlu2 %v9560_v1, %s6245_s14 }
 0x305   : > { %v4185_v51 = vpop.permute.xlu0 %4184  ;;  %4635 = vrot.lane.b32.xlu1 %v9562_v0, %s6245_s14  ;;  %6025 = vmatmul.msk.bf16.vlgmr.msra.gmra.mxu0 %vm580_vm3, %v8122_v48  ;;  %v2360_v54 = vpop.f32.mrf.mxu2 }
 0x306   : > { %v8146_v14 = vsel %vm4192_vm10, %v4183_v9, %v4185_v51  ;;  %3228 = vmatpush.bf16.msrb.mxu3 %v3191_v5  ;;  %3241 = vmatpush.bf16.msra.mxu0 %v3194_v24 }
 0x307   : > { %v4187_v63 = vpop.permute.xlu1 %4186  ;;  %v2371_v19 = vpop.f32.mrf.mxu3 }
 0x308   : > { %v8155_v55 = vsel %vm4192_vm10, %v4185_v51, %v4187_v63  ;;  %v8158_v34 = vsel %vm4192_vm10, %v4187_v63, %v4189_v52  ;;  %v8161_v9 = vadd.f32 %v2371_v19, %v8012_v35  ;;  %v2397_v5 = vpop.f32.mrf.mxu1  ;;  %v3200_v35 = vsel %vm584_vm2, %v3182_v60, 0  ;;  %v4326_v51 = vpop.permute.xlu2 %4325 }
 0x309   : > { %9571 = vst [vmem:[#allocation20_spill] sm:$0xff] %v8155_v55  ;;  %v8164_v24 = vadd.f32 %v2397_v5, %v8056_v61  ;;  %6026 = vmatmul.msk.bf16.vlgmr.msra.gmra.mxu1 %vm580_vm3, %v8122_v48 }
 0x30a   : > { %9572 = vst [vmem:[#allocation34_spill] sm:$0xff] %v8158_v34  ;;  %v2386_v31 = vpop.f32.mrf.mxu0  ;;  %6027 = vmatmul.msk.bf16.vlgmr.msra.gmra.mxu2 %vm580_vm3, %v8122_v48  ;;  %3254 = vmatpush.bf16.msra.mxu1 %v3197_v39  ;;  %v9574_v39 = vld [vmem:[#allocation21_spill] sm:$0xff] }
 0x30b   : > { %4779 = vrot.lane.b32.xlu0 %v9549_v6, %s6242_s30  ;;  %3267 = vmatpush.bf16.msra.mxu2 %v3200_v35  ;;  %v3183_v35 = vsel %vm3177_vm9, %v7681_v3, %v9574_v39  ;;  %vm3757_vm9 = vcmask 367616  }
 0x30c   : > { %4799 = vrot.lane.b32.xlu2 %v6329_v12, %s6242_s30  ;;  %v3203_v3 = vsel %vm584_vm2, %v3183_v35, 0  ;;  %v8218_v35 = vld [vmem:[%s9446_s3 + $0x48] sm:$0xf] }
 0x30d   : > { %v8176_v61 = vpop.permute.xlu0 %4190  ;;  %4781 = vrot.lane.b32.xlu1 %v6344_v21, %s6242_s30  ;;  %v2410_v54 = vpop.f32.mrf.mxu2 }
 0x30e   : > { %v8182_v33 = vsel %vm4192_vm10, %v4189_v52, %v8176_v61  ;;  %v8185_v63 = vadd.f32 %v2410_v54, %v8092_v46  ;;  %vm3902_vm10 = vcmask 359424  }
 0x30f   : > { %v4324_v19 = vpop.permute.xlu1 %4323  ;;  %v2373_v60 = vpop.f32.mrf.mxu3 }
 0x310   : > { %v8188_v5 = vsel %vm4337_vm13, %v4324_v19, %v4326_v51  ;;  %v2399_v31 = vpop.f32.mrf.mxu1  ;;  %v3323_v19 = vsel %vm3322_vm4, %v7730_v8, %v7700_v18 }
 0x311   : > { %9573 = vst [vmem:[#allocation35_spill] sm:$0xff] %v8188_v5 }
 0x312   : > { %v2493_v34 = vpop.f32.mrf.mxu0 }
 0x313   : > { %v8194_v55 = vadd.f32 %v2493_v34, %v8095_v43  ;;  %4783 = vrot.lane.b32.xlu0 %v9539_v53, %s6242_s30  ;;  %v3206_v43 = vsel %vm584_vm2, %v9574_v39, 0  ;;  %v4332_v34 = vpop.permute.xlu2 %4331  ;;  %v3324_v39 = vsel %vm3322_vm4, %v7700_v18, %v7708_v44 }
 0x314   : > { %6028 = vmatmul.msk.bf16.vlgmr.msra.gmra.mxu3 %vm580_vm3, %v8122_v48  ;;  %4803 = vrot.lane.b32.xlu2 %v9546_v56, %s6242_s30  ;;  %v3336_v18 = vsel %vm584_vm2, %v3324_v39, 0 }
 0x315   : > { %v4328_v46 = vpop.permute.xlu0 %4327  ;;  %4801 = vrot.lane.b32.xlu1 %v6335_v16, %s6242_s30  ;;  %6029 = vmatmul.msk.bf16.vlgmr.msrb.gmra.mxu0 %vm580_vm3, %v8122_v48  ;;  %v2412_v52 = vpop.f32.mrf.mxu2 }
 0x316   : > { %v8210_v54 = vsel %vm4337_vm13, %v4326_v51, %v4328_v46  ;;  %3280 = vmatpush.bf16.msra.mxu3 %v3203_v3  ;;  %3293 = vmatpush.bf16.msrb.mxu0 %v3206_v43 }
 0x317   : > { %9575 = vst [vmem:[#allocation21_spill] sm:$0xff] %v8210_v54  ;;  %v4330_v60 = vpop.permute.xlu1 %4329  ;;  %v2480_v31 = vpop.f32.mrf.mxu3  ;;  %v3333_v54 = vsel %vm584_vm2, %v3323_v19, 0 }
 0x318   : > { %v8224_v51 = vsel %vm4337_vm13, %v4328_v46, %v4330_v60  ;;  %v8227_v3 = vsel %vm4337_vm13, %v4330_v60, %v4332_v34  ;;  %v2562_v43 = vadd.f32 %v2480_v31, %v8067_v15  ;;  %v2506_v8 = vpop.f32.mrf.mxu1  ;;  %v9577_v31 = vld [vmem:[#allocation22_spill] sm:$0xff] }
 0x319   : > { %v2564_v52 = vadd.f32 %v2506_v8, %v8115_v22  ;;  %6030 = vmatmul.msk.bf16.vlgmr.msrb.gmra.mxu1 %vm580_vm3, %v8122_v48  ;;  %v3325_v39 = vsel %vm3322_vm4, %v7708_v44, %v9577_v31 }
 0x31a   : > { %v2495_v5 = vpop.f32.mrf.mxu0  ;;  %6032 = vmatmul.msk.bf16.vlgmr.msrb.gmra.mxu2 %vm580_vm3, %v8218_v35  ;;  %3360 = vmatpush.bf16.msrb.mxu1 %v3333_v54  ;;  %v3339_v44 = vsel %vm584_vm2, %v3325_v39, 0 }
 0x31b   : > { %4805 = vrot.lane.b32.xlu0 %v9552_v30, %s6242_s30  ;;  %3373 = vmatpush.bf16.msrb.mxu2 %v3336_v18 }
 0x31c   : > { %4787 = vrot.lane.b32.xlu2 %v9547_v28, %s6242_s30 }
 0x31d   : > { %v4334_v15 = vpop.permute.xlu0 %4333  ;;  %4785 = vrot.lane.b32.xlu1 %v9543_v23, %s6242_s30  ;;  %v2519_v22 = vpop.f32.mrf.mxu2 }
 0x31e   : > { %v8244_v48 = vsel %vm4337_vm13, %v4332_v34, %v4334_v15  ;;  %v8247_v5 = vadd.f32 %v2519_v22, %v8161_v9  ;;  %v3326_v34 = vsel %vm3322_vm4, %v9577_v31, %v7743_v13  ;;  %v9578_v22 = vld [vmem:[#allocation23_spill] sm:$0xff] }
 0x31f   : > { %v8249_v46 = vpop.permute.xlu1 %4335  ;;  %v2482_v54 = vpop.f32.mrf.mxu3 }
 0x320   : > { %9576 = vst [vmem:[#allocation36_spill] sm:$0xff] %v8249_v46  ;;  %v8253_v19 = vsel %vm4337_vm13, %v4334_v15, %v8249_v46  ;;  %v2508_v60 = vpop.f32.mrf.mxu1  ;;  %v3327_v54 = vsel %vm3322_vm4, %v7743_v13, %v9578_v22  ;;  %vm4047_vm13 = vcmask 293888  }
 0x321   : > { %v3345_v13 = vsel %vm584_vm2, %v3327_v54, 0 }
 0x322   : > { %v2545_v8 = vpop.f32.mrf.mxu0 }
 0x323   : > { %v8262_v9 = vadd.f32 %v2545_v8, %v8164_v24  ;;  %4789 = vrot.lane.b32.xlu0 %v9559_v57, %s6242_s30  ;;  %v3342_v24 = vsel %vm584_vm2, %v3326_v34, 0  ;;  %v3328_v8 = vsel %vm3322_vm4, %v9578_v22, %v7762_v4 }
 0x324   : > { %6033 = vmatmul.msk.bf16.vlgmr.msrb.gmra.mxu3 %vm580_vm3, %v8218_v35  ;;  %4791 = vrot.lane.b32.xlu2 %v9562_v0, %s6242_s30 }
 0x325   : > { %v8270_v18 = vpop.permute.xlu0 %4489  ;;  %4807 = vrot.lane.b32.xlu1 %v9555_v27, %s6242_s30  ;;  %6034 = vmatmul.msk.bf16.vlgmr.msra.gmra.mxu0 %vm580_vm3, %v8218_v35  ;;  %v2521_v15 = vpop.f32.mrf.mxu2 }
 0x326   : > { %3386 = vmatpush.bf16.msrb.mxu3 %v3339_v44  ;;  %3399 = vmatpush.bf16.msra.mxu0 %v3342_v24  ;;  %v3348_v15 = vsel %vm584_vm2, %v3328_v8, 0  ;;  %v3468_v8 = vsel %vm3467_vm7, %v7770_v62, %v7676_v50  ;;  %v3351_v62 = vsel %vm584_vm2, %v7762_v4, 0  ;;  %v3470_v4 = vsel %vm3467_vm7, %v7788_v47, %v7798_v32 }
 0x327   : > { %v4492_v60 = vpop.permute.xlu1 %4491  ;;  %v2532_v31 = vpop.f32.mrf.mxu3 }
 0x328   : > { %v8286_v46 = vsel %vm2291_vm14, %v8270_v18, %v4492_v60  ;;  %v2566_v39 = vadd.f32 %v2532_v31, %v8131_v7  ;;  %v2558_v34 = vpop.f32.mrf.mxu1 }
 0x329   : > { %v2568_v44 = vadd.f32 %v2558_v34, %v8185_v63  ;;  %6035 = vmatmul.msk.bf16.vlgmr.msra.gmra.mxu1 %vm580_vm3, %v8218_v35 }
 0x32a   : > { %v2547_v24 = vpop.f32.mrf.mxu0  ;;  %6036 = vmatmul.msk.bf16.vlgmr.msra.gmra.mxu2 %vm580_vm3, %v8218_v35  ;;  %3412 = vmatpush.bf16.msra.mxu1 %v3345_v13 }
 0x32b   : > { %4958 = vrot.lane.b32.xlu0 %v9541_v41, %s6241_s27  ;;  %3425 = vmatpush.bf16.msra.mxu2 %v3348_v15 }
 0x32c   : > { %4962 = vrot.lane.b32.xlu2 %v6329_v12, %s6241_s27 }
 0x32d   : > { %v8300_v7 = vpop.permute.xlu0 %4473  ;;  %4960 = vrot.lane.b32.xlu1 %v6327_v11, %s6241_s27  ;;  %v2628_v63 = vpop.f32.mrf.mxu2 }
 0x32e   : > { %v8304_v22 = vadd.f32 %v2628_v63, %v2562_v43  ;;  %v3478_v43 = vsel %vm584_vm2, %v3468_v8, 0 }
 0x32f   : > { %v8306_v54 = vpop.permute.xlu1 %4475  ;;  %v2534_v31 = vpop.f32.mrf.mxu3 }
 0x330   : > { %9579 = vst [vmem:[#allocation22_spill] sm:$0xff] %v8306_v54  ;;  %v2560_v34 = vpop.f32.mrf.mxu1  ;;  %v3469_v31 = vsel %vm3467_vm7, %v7676_v50, %v7788_v47  ;;  %v3484_v47 = vsel %vm584_vm2, %v3470_v4, 0 }
 0x331   : > { %v3481_v50 = vsel %vm584_vm2, %v3469_v31, 0 }
 0x332   : > { %v2654_v24 = vpop.f32.mrf.mxu0 }
 0x333   : > { %v8311_v13 = vadd.f32 %v2654_v24, %v2564_v52  ;;  %4942 = vrot.lane.b32.xlu0 %v9549_v6, %s6241_s27 }
 0x334   : > { %6037 = vmatmul.msk.bf16.vlgmr.msra.gmra.mxu3 %vm580_vm3, %v8218_v35  ;;  %4946 = vrot.lane.b32.xlu2 %v9539_v53, %s6241_s27 }
 0x335   : > { %v4494_v15 = vpop.permute.xlu0 %4493  ;;  %4944 = vrot.lane.b32.xlu1 %v6344_v21, %s6241_s27  ;;  %6038 = vmatmul.msk.bf16.vlgmr.msrb.gmra.mxu0 %vm580_vm3, %v8218_v35  ;;  %v2630_v52 = vpop.f32.mrf.mxu2  ;;  %v8337_v35 = vld [vmem:[%s9446_s3 + $0x4c] sm:$0xf] }
 0x336   : > { %v8327_v63 = vsel %vm2291_vm14, %v4492_v60, %v4494_v15  ;;  %3438 = vmatpush.bf16.msra.mxu3 %v3351_v62  ;;  %3505 = vmatpush.bf16.msrb.mxu0 %v3478_v43 }
 0x337   : > { %v8332_v34 = vpop.permute.xlu1 %4469  ;;  %v2641_v8 = vpop.f32.mrf.mxu3 }
 0x338   : > { %v2711_v60 = vadd.f32 %v2641_v8, %v8194_v55  ;;  %v2667_v24 = vpop.f32.mrf.mxu1 }
 0x339   : > { %v8344_v43 = vadd.f32 %v2667_v24, %v8247_v5  ;;  %6040 = vmatmul.msk.bf16.vlgmr.msrb.gmra.mxu1 %vm580_vm3, %v8337_v35 }
 0x33a   : > { %v2656_v62 = vpop.f32.mrf.mxu0  ;;  %6041 = vmatmul.msk.bf16.vlgmr.msrb.gmra.mxu2 %vm580_vm3, %v8337_v35  ;;  %3518 = vmatpush.bf16.msrb.mxu1 %v3481_v50  ;;  %v9582_v50 = vld [vmem:[#allocation24_spill] sm:$0xff] }
 0x33b   : > { %4809 = vrot.lane.b32.xlu0 %v9553_v37, %s6242_s30  ;;  %3531 = vmatpush.bf16.msrb.mxu2 %v3484_v47  ;;  %v3471_v47 = vsel %vm3467_vm7, %v7798_v32, %v9582_v50  ;;  %v3472_v54 = vsel %vm3467_vm7, %v9582_v50, %v7822_v59 }
 0x33c   : > { %4793 = vrot.lane.b32.xlu2 %v9560_v1, %s6242_s30  ;;  %v3487_v32 = vsel %vm584_vm2, %v3471_v47, 0 }
 0x33d   : > { %v4496_v55 = vpop.permute.xlu0 %4495  ;;  %4964 = vrot.lane.b32.xlu1 %v6335_v16, %s6241_s27  ;;  %v2680_v5 = vpop.f32.mrf.mxu2 }
 0x33e   : > { %v8359_v52 = vsel %vm2291_vm14, %v4494_v15, %v4496_v55  ;;  %v8361_v8 = vadd.f32 %v2680_v5, %v2566_v39  ;;  %v4488_v5 = vpop.permute.xlu2 %4487 }
 0x33f   : > { %9580 = vst [vmem:[#allocation23_spill] sm:$0xff] %v8359_v52  ;;  %v8363_v31 = vpop.permute.xlu1 %4497  ;;  %v2643_v24 = vpop.f32.mrf.mxu3 }
 0x340   : > { %v8367_v4 = vsel %vm2291_vm14, %v4496_v55, %v8363_v31  ;;  %v2669_v62 = vpop.f32.mrf.mxu1  ;;  %v3473_v24 = vsel %vm3467_vm7, %v7822_v59, %v7847_v10 }
 0x341   : > { %9581 = vst [vmem:[#allocation37_spill] sm:$0xff] %v8367_v4  ;;  %v3493_v59 = vsel %vm584_vm2, %v3473_v24, 0 }
 0x342   : > { %v2706_v15 = vpop.f32.mrf.mxu0 }
 0x343   : > { %v8375_v52 = vadd.f32 %v2706_v15, %v2568_v44  ;;  %4948 = vrot.lane.b32.xlu0 %v9543_v23, %s6241_s27  ;;  %v3490_v44 = vsel %vm584_vm2, %v3472_v54, 0  ;;  %v8398_v15 = vsel %vm2291_vm14, %v4488_v5, %v8270_v18 }
 0x344   : > { %6042 = vmatmul.msk.bf16.vlgmr.msrb.gmra.mxu3 %vm580_vm3, %v8337_v35  ;;  %4968 = vrot.lane.b32.xlu2 %v9552_v30, %s6241_s27 }
 0x345   : > { %v8383_v39 = vpop.permute.xlu0 %4479  ;;  %4966 = vrot.lane.b32.xlu1 %v9546_v56, %s6241_s27  ;;  %6043 = vmatmul.msk.bf16.vlgmr.msra.gmra.mxu0 %vm580_vm3, %v8337_v35  ;;  %v2682_v55 = vpop.f32.mrf.mxu2 }
 0x346   : > { %9583 = vst [vmem:[#allocation24_spill] sm:$0xff] %v8383_v39  ;;  %3544 = vmatpush.bf16.msrb.mxu3 %v3487_v32  ;;  %3557 = vmatpush.bf16.msra.mxu0 %v3490_v44  ;;  %v8419_v55 = vpop.permute.xlu2 %4471 }
 0x347   : > { %v8394_v62 = vpop.permute.xlu1 %4481  ;;  %v2693_v50 = vpop.f32.mrf.mxu3 }
 0x348   : > { %9584 = vst [vmem:[#allocation38_spill] sm:$0xff] %v8394_v62  ;;  %v2715_v39 = vadd.f32 %v2693_v50, %v8262_v9  ;;  %v2776_v47 = vpop.f32.mrf.mxu1  ;;  %v3496_v9 = vsel %vm584_vm2, %v7847_v10, 0 }
 0x349   : > { %v8402_v54 = vadd.f32 %v2776_v47, %v8304_v22  ;;  %6044 = vmatmul.msk.bf16.vlgmr.msra.gmra.mxu1 %vm580_vm3, %v8337_v35 }
 0x34a   : > { %v2708_v32 = vpop.f32.mrf.mxu0  ;;  %6045 = vmatmul.msk.bf16.vlgmr.msra.gmra.mxu2 %vm580_vm3, %v8337_v35  ;;  %3570 = vmatpush.bf16.msra.mxu1 %v3493_v59  ;;  %v3614_v59 = vsel %vm3612_vm8, %v7738_v45, %v7858_v29 }
 0x34b   : > { %4970 = vrot.lane.b32.xlu0 %v9555_v27, %s6241_s27  ;;  %3583 = vmatpush.bf16.msra.mxu2 %v3496_v9  ;;  %v3613_v32 = vsel %vm3612_vm8, %v7828_v2, %v7738_v45  ;;  %v3626_v2 = vsel %vm584_vm2, %v3614_v59, 0 }
 0x34c   : > { %4952 = vrot.lane.b32.xlu2 %v9559_v57, %s6241_s27  ;;  %v3623_v45 = vsel %vm584_vm2, %v3613_v32, 0 }
 0x34d   : > { %4950 = vrot.lane.b32.xlu1 %v9547_v28, %s6241_s27  ;;  %v2789_v18 = vpop.f32.mrf.mxu2  ;;  %v4640_v22 = vpop.permute.xlu0 %4639 }
 0x34e   : > { %v8417_v44 = vadd.f32 %v2789_v18, %v2711_v60  ;;  %v8433_v60 = vld [vmem:[%s9446_s3 + $0x50] sm:$0xf] }
 0x34f   : > { %v4642_v24 = vpop.permute.xlu1 %4641  ;;  %v2695_v50 = vpop.f32.mrf.mxu3 }
 0x350   : > { %v8422_v47 = vsel %vm2439_vm15, %v4640_v22, %v4642_v24  ;;  %v2778_v10 = vpop.f32.mrf.mxu1  ;;  %v4486_v22 = vpop.permute.xlu2 %4485 }
 0x351   : > { %9585 = vst [vmem:[#allocation39_spill] sm:$0xff] %v8422_v47  ;;  %v8456_v10 = vsel %vm2291_vm14, %v4486_v22, %v4488_v5 }
 0x352   : > { %v2815_v9 = vpop.f32.mrf.mxu0 }
 0x353   : > { %v8436_v18 = vadd.f32 %v2815_v9, %v8344_v43  ;;  %4954 = vrot.lane.b32.xlu0 %v9562_v0, %s6241_s27 }
 0x354   : > { %6046 = vmatmul.msk.bf16.vlgmr.msra.gmra.mxu3 %vm580_vm3, %v8337_v35  ;;  %4956 = vrot.lane.b32.xlu2 %v9560_v1, %s6241_s27  ;;  %v3615_v35 = vsel %vm3612_vm8, %v7858_v29, %v7768_v49 }
 0x355   : > { %4972 = vrot.lane.b32.xlu1 %v9553_v37, %s6241_s27  ;;  %6048 = vmatmul.msk.bf16.vlgmr.msrb.gmra.mxu0 %vm580_vm3, %v8433_v60  ;;  %v2791_v43 = vpop.f32.mrf.mxu2  ;;  %v9586_v37 = vld [vmem:[#allocation2_spill] sm:$0xff]  ;;  %v3629_v5 = vsel %vm584_vm2, %v3615_v35, 0 }
 0x356   : > { %3650 = vmatpush.bf16.msra.mxu3 %v3623_v45  ;;  %3663 = vmatpush.bf16.msrb.mxu0 %v3626_v2  ;;  %v3616_v32 = vsel %vm3612_vm8, %v7768_v49, %v9586_v37 }
 0x357   : > { %v8453_v50 = vpop.permute.xlu1 %4643  ;;  %v2802_v1 = vpop.f32.mrf.mxu3  ;;  %v3632_v49 = vsel %vm584_vm2, %v3616_v32, 0  ;;  %v9589_v32 = vld [vmem:[#allocation28_spill] sm:$0xff] }
 0x358   : > { %v8463_v59 = vsel %vm2439_vm15, %v4642_v24, %v8453_v50  ;;  %v2860_v9 = vadd.f32 %v2802_v1, %v8311_v13  ;;  %v2828_v45 = vpop.f32.mrf.mxu1  ;;  %v8475_v24 = vpop.permute.xlu0 %4625 }
 0x359   : > { %9587 = vst [vmem:[#allocation2_spill] sm:$0xff] %v8463_v59  ;;  %v2862_v2 = vadd.f32 %v2828_v45, %v8361_v8  ;;  %6049 = vmatmul.msk.bf16.vlgmr.msrb.gmra.mxu1 %vm580_vm3, %v8433_v60  ;;  %v8483_v43 = vpop.permute.xlu2 %4477  ;;  %v3617_v45 = vsel %vm3612_vm8, %v9586_v37, %v9589_v32 }
 0x35a   : > { %v2817_v29 = vpop.f32.mrf.mxu0  ;;  %6050 = vmatmul.msk.bf16.vlgmr.msrb.gmra.mxu2 %vm580_vm3, %v8433_v60  ;;  %3676 = vmatpush.bf16.msrb.mxu1 %v3629_v5  ;;  %9588 = vst [vmem:[#allocation40_spill] sm:$0xff] %v8483_v43 }
 0x35b   : > { %5121 = vrot.lane.b32.xlu0 %v6327_v11, %s6236_s16  ;;  %3689 = vmatpush.bf16.msrb.mxu2 %v3632_v49  ;;  %v9590_v29 = vld [vmem:[#allocation25_spill] sm:$0xff] }
 0x35c   : > { %5125 = vrot.lane.b32.xlu2 %v6335_v16, %s6236_s16  ;;  %v3618_v5 = vsel %vm3612_vm8, %v9589_v32, %v9590_v29  ;;  %v3641_v4 = vsel %vm584_vm2, %v9590_v29, 0 }
 0x35d   : > { %5123 = vrot.lane.b32.xlu1 %v6329_v12, %s6236_s16  ;;  %v2841_v13 = vpop.f32.mrf.mxu2  ;;  %v3638_v37 = vsel %vm584_vm2, %v3618_v5, 0  ;;  %v9592_v5 = vld [vmem:[#allocation29_spill] sm:$0xff] }
 0x35e   : > { %v8481_v8 = vadd.f32 %v2841_v13, %v2715_v39  ;;  %v3635_v39 = vsel %vm584_vm2, %v3617_v45, 0 }
 0x35f   : > { %v8485_v22 = vpop.permute.xlu1 %4627  ;;  %v2804_v35 = vpop.f32.mrf.mxu3 }
 0x360   : > { %v2830_v1 = vpop.f32.mrf.mxu1  ;;  %v8508_v13 = vpop.permute.xlu0 %4647 }
 0x361   : > { %v4500_v35 = vpop.permute.xlu2 %4499 }
 0x362   : > { %v2924_v49 = vpop.f32.mrf.mxu0  ;;  %v8514_v45 = vsel %vm2291_vm14, %v8363_v31, %v4500_v35  ;;  %v9595_v35 = vld [vmem:[#allocation26_spill] sm:$0xff] }
 0x363   : > { %v8494_v59 = vadd.f32 %v2924_v49, %v8402_v54  ;;  %5107 = vrot.lane.b32.xlu0 %v6344_v21, %s6236_s16  ;;  %v9593_v49 = vld [vmem:[#allocation16_spill] sm:$0xff] }
 0x364   : > { %6051 = vmatmul.msk.bf16.vlgmr.msrb.gmra.mxu3 %vm580_vm3, %v8433_v60  ;;  %5111 = vrot.lane.b32.xlu2 %v9543_v23, %s6236_s16  ;;  %v3758_v47 = vsel %vm3757_vm9, %v9593_v49, %v9592_v5 }
 0x365   : > { %5109 = vrot.lane.b32.xlu1 %v9539_v53, %s6236_s16  ;;  %6052 = vmatmul.msk.bf16.vlgmr.msra.gmra.mxu0 %vm580_vm3, %v8433_v60  ;;  %v2843_v54 = vpop.f32.mrf.mxu2  ;;  %v3768_v31 = vsel %vm584_vm2, %v3758_v47, 0  ;;  %v6055_v47 = vld [vmem:[%s9446_s3 + $0x54] sm:$0xf] }
 0x366   : > { %3702 = vmatpush.bf16.msrb.mxu3 %v3635_v39  ;;  %3715 = vmatpush.bf16.msra.mxu0 %v3638_v37 }
 0x367   : > { %v8510_v1 = vpop.permute.xlu1 %4649  ;;  %v2854_v32 = vpop.f32.mrf.mxu3 }
 0x368   : > { %9591 = vst [vmem:[#allocation28_spill] sm:$0xff] %v8510_v1  ;;  %v8522_v54 = vsel %vm2439_vm15, %v8508_v13, %v8510_v1  ;;  %v2864_v39 = vadd.f32 %v2854_v32, %v8375_v52  ;;  %v2937_v37 = vpop.f32.mrf.mxu1  ;;  %v9596_v32 = vld [vmem:[#allocation11_spill] sm:$0xff] }
 0x369   : > { %9594 = vst [vmem:[#allocation25_spill] sm:$0xff] %v8522_v54  ;;  %v3007_v62 = vadd.f32 %v2937_v37, %v8417_v44  ;;  %6053 = vmatmul.msk.bf16.vlgmr.msra.gmra.mxu1 %vm580_vm3, %v8433_v60  ;;  %v3760_v49 = vsel %vm3757_vm9, %v9595_v35, %v9596_v32 }
 0x36a   : > { %v2926_v43 = vpop.f32.mrf.mxu0  ;;  %6054 = vmatmul.msk.bf16.vlgmr.msra.gmra.mxu2 %vm580_vm3, %v8433_v60  ;;  %3728 = vmatpush.bf16.msra.mxu1 %v3641_v4  ;;  %v3759_v4 = vsel %vm3757_vm9, %v9592_v5, %v9595_v35 }
 0x36b   : > { %5119 = vrot.lane.b32.xlu0 %v9541_v41, %s6236_s16  ;;  %3795 = vmatpush.bf16.msra.mxu2 %v3768_v31  ;;  %v8541_v43 = vpop.permute.xlu2 %4483 }
 0x36c   : > { %5105 = vrot.lane.b32.xlu2 %v9549_v6, %s6236_s16 }
 0x36d   : > { %5127 = vrot.lane.b32.xlu1 %v9546_v56, %s6236_s16  ;;  %v2950_v52 = vpop.f32.mrf.mxu2 }
 0x36e   : > { %v8539_v44 = vadd.f32 %v2950_v52, %v2860_v9  ;;  %v3771_v9 = vsel %vm584_vm2, %v3759_v4, 0  ;;  %v3774_v52 = vsel %vm584_vm2, %v3760_v49, 0 }
 0x36f   : > { %v2856_v29 = vpop.f32.mrf.mxu3 }
 0x370   : > { %v2939_v60 = vpop.f32.mrf.mxu1  ;;  %v9597_v29 = vld [vmem:[#allocation30_spill] sm:$0xff] }
 0x371   : > { %v3761_v60 = vsel %vm3757_vm9, %v9596_v32, %v9597_v29 }
 0x372   : > { %v2976_v37 = vpop.f32.mrf.mxu0 }
 0x373   : > { %v8552_v31 = vadd.f32 %v2976_v37, %v2862_v2  ;;  %5113 = vrot.lane.b32.xlu0 %v9547_v28, %s6236_s16  ;;  %v8564_v2 = vpop.permute.xlu2 %4623  ;;  %v9598_v37 = vld [vmem:[#allocation27_spill] sm:$0xff] }
 0x374   : > { %6056 = vmatmul.msk.bf16.vlgmr.msra.gmra.mxu3 %vm580_vm3, %v6055_v47  ;;  %5131 = vrot.lane.b32.xlu2 %v9555_v27, %s6236_s16  ;;  %v3762_v4 = vsel %vm3757_vm9, %v9597_v29, %v9598_v37 }
 0x375   : > { %5129 = vrot.lane.b32.xlu1 %v9552_v30, %s6236_s16  ;;  %6057 = vmatmul.msk.bf16.vlgmr.msrb.gmra.mxu0 %vm580_vm3, %v6055_v47  ;;  %v2952_v5 = vpop.f32.mrf.mxu2 }
 0x376   : > { %3808 = vmatpush.bf16.msra.mxu3 %v3771_v9  ;;  %3821 = vmatpush.bf16.msrb.mxu0 %v3774_v52  ;;  %v3777_v5 = vsel %vm584_vm2, %v3761_v60, 0  ;;  %v3780_v52 = vsel %vm584_vm2, %v3762_v4, 0  ;;  %v9599_v4 = vld [vmem:[#allocation17_spill] sm:$0xff] }
 0x377   : > { %v2963_v35 = vpop.f32.mrf.mxu3 }
 0x378   : > { %v3009_v49 = vadd.f32 %v2963_v35, %v8436_v18  ;;  %v2989_v1 = vpop.f32.mrf.mxu1 }
 0x379   : > { %v3011_v54 = vadd.f32 %v2989_v1, %v8481_v8  ;;  %6058 = vmatmul.msk.bf16.vlgmr.msrb.gmra.mxu1 %vm580_vm3, %v6055_v47 }
 0x37a   : > { %v2978_v9 = vpop.f32.mrf.mxu0  ;;  %6059 = vmatmul.msk.bf16.vlgmr.msrb.gmra.mxu2 %vm580_vm3, %v6055_v47  ;;  %3834 = vmatpush.bf16.msrb.mxu1 %v3777_v5  ;;  %v3763_v5 = vsel %vm3757_vm9, %v9598_v37, %v9599_v4 }
 0x37b   : > { %5115 = vrot.lane.b32.xlu0 %v9559_v57, %s6236_s16  ;;  %3847 = vmatpush.bf16.msrb.mxu2 %v3780_v52  ;;  %v4646_v1 = vpop.permute.xlu2 %4645 }
 0x37c   : > { %5276 = vrot.lane.b32.xlu2 %v9541_v41, %s6235_s15  ;;  %v8586_v29 = vsel %vm2439_vm15, %v8453_v50, %v4646_v1  ;;  %v8590_v60 = vsel %vm2439_vm15, %v4646_v1, %v8508_v13  ;;  %v3783_v50 = vsel %vm584_vm2, %v3763_v5, 0  ;;  %v3786_v13 = vsel %vm584_vm2, %v9599_v4, 0  ;;  %v9600_v1 = vld [vmem:[#allocation4_spill] sm:$0xff] }
 0x37d   : > { %5117 = vrot.lane.b32.xlu1 %v9562_v0, %s6236_s16  ;;  %v3002_v18 = vpop.f32.mrf.mxu2 }
 0x37e   : > { %v3012_v8 = vadd.f32 %v3002_v18, %v2864_v39  ;;  %v3903_v39 = vsel %vm3902_vm10, %v7999_v42, %v7972_v25  ;;  %v8614_v18 = vld [vmem:[%s9446_s3 + $0x58] sm:$0xf] }
 0x37f   : > { %v2965_v32 = vpop.f32.mrf.mxu3 }
 0x380   : > { %v2991_v35 = vpop.f32.mrf.mxu1  ;;  %v3904_v32 = vsel %vm3902_vm10, %v7972_v25, %v9600_v1 }
 0x381   : > { %v3916_v42 = vsel %vm584_vm2, %v3904_v32, 0 }
 0x382   : > { %v3085_v9 = vpop.f32.mrf.mxu0 }
 0x383   : > { %v8595_v52 = vadd.f32 %v3085_v9, %v3007_v62  ;;  %5278 = vrot.lane.b32.xlu0 %v6327_v11, %s6235_s15  ;;  %v3913_v9 = vsel %vm584_vm2, %v3903_v39, 0 }
 0x384   : > { %6060 = vmatmul.msk.bf16.vlgmr.msrb.gmra.mxu3 %vm580_vm3, %v6055_v47  ;;  %5264 = vrot.lane.b32.xlu2 %v6344_v21, %s6235_s15 }
 0x385   : > { %5262 = vrot.lane.b32.xlu1 %v9549_v6, %s6235_s15  ;;  %6061 = vmatmul.msk.bf16.vlgmr.msra.gmra.mxu0 %vm580_vm3, %v6055_v47  ;;  %v3004_v62 = vpop.f32.mrf.mxu2 }
 0x386   : > { %3860 = vmatpush.bf16.msrb.mxu3 %v3783_v50  ;;  %3873 = vmatpush.bf16.msra.mxu0 %v3786_v13  ;;  %v3905_v13 = vsel %vm3902_vm10, %v9600_v1, %v7993_v20  ;;  %v9601_v62 = vld [vmem:[#allocation31_spill] sm:$0xff] }
 0x387   : > { %v3072_v37 = vpop.f32.mrf.mxu3  ;;  %v3906_v39 = vsel %vm3902_vm10, %v7993_v20, %v9601_v62 }
 0x388   : > { %v3154_v35 = vadd.f32 %v3072_v37, %v8494_v59  ;;  %v3098_v4 = vpop.f32.mrf.mxu1  ;;  %v3922_v1 = vsel %vm584_vm2, %v3906_v39, 0  ;;  %v9602_v39 = vld [vmem:[#allocation32_spill] sm:$0xff] }
 0x389   : > { %v3156_v5 = vadd.f32 %v3098_v4, %v8539_v44  ;;  %6062 = vmatmul.msk.bf16.vlgmr.msra.gmra.mxu1 %vm580_vm3, %v6055_v47 }
 0x38a   : > { %v3087_v50 = vpop.f32.mrf.mxu0  ;;  %6064 = vmatmul.msk.bf16.vlgmr.msra.gmra.mxu2 %vm580_vm3, %v8614_v18  ;;  %3940 = vmatpush.bf16.msra.mxu1 %v3913_v9  ;;  %v3908_v9 = vsel %vm3902_vm10, %v8022_v38, %v8033_v36 }
 0x38b   : > { %5280 = vrot.lane.b32.xlu0 %v6329_v12, %s6235_s15  ;;  %3953 = vmatpush.bf16.msra.mxu2 %v3916_v42 }
 0x38c   : > { %5284 = vrot.lane.b32.xlu2 %v9546_v56, %s6235_s15 }
 0x38d   : > { %5282 = vrot.lane.b32.xlu1 %v6335_v16, %s6235_s15  ;;  %v3111_v25 = vpop.f32.mrf.mxu2 }
 0x38e   : > { %v3157_v59 = vadd.f32 %v3111_v25, %v3009_v49  ;;  %v3919_v49 = vsel %vm584_vm2, %v3905_v13, 0  ;;  %v3928_v13 = vsel %vm584_vm2, %v3908_v9, 0 }
 0x38f   : > { %v3074_v44 = vpop.f32.mrf.mxu3 }
 0x390   : > { %v3100_v47 = vpop.f32.mrf.mxu1 }
 0x392   : > { %v3137_v37 = vpop.f32.mrf.mxu0 }
 0x393   : > { %v8638_v32 = vadd.f32 %v3137_v37, %v3011_v54  ;;  %5266 = vrot.lane.b32.xlu0 %v9539_v53, %s6235_s15  ;;  %v3907_v54 = vsel %vm3902_vm10, %v9601_v62, %v8022_v38  ;;  %v9603_v37 = vld [vmem:[#allocation15_spill] sm:$0xff] }
 0x394   : > { %6065 = vmatmul.msk.bf16.vlgmr.msra.gmra.mxu3 %vm580_vm3, %v8614_v18  ;;  %5270 = vrot.lane.b32.xlu2 %v9547_v28, %s6235_s15  ;;  %v3925_v44 = vsel %vm584_vm2, %v3907_v54, 0 }
 0x395   : > { %5268 = vrot.lane.b32.xlu1 %v9543_v23, %s6235_s15  ;;  %6066 = vmatmul.msk.bf16.vlgmr.msrb.gmra.mxu0 %vm580_vm3, %v8614_v18  ;;  %v3113_v20 = vpop.f32.mrf.mxu2 }
 0x396   : > { %3966 = vmatpush.bf16.msra.mxu3 %v3919_v49  ;;  %3979 = vmatpush.bf16.msrb.mxu0 %v3922_v1  ;;  %v4048_v49 = vsel %vm4047_vm13, %v9603_v37, %v9602_v39 }
 0x397   : > { %v3124_v4 = vpop.f32.mrf.mxu3  ;;  %v4058_v54 = vsel %vm584_vm2, %v4048_v49, 0 }
 0x398   : > { %v3158_v50 = vadd.f32 %v3124_v4, %v8552_v31  ;;  %v3150_v42 = vpop.f32.mrf.mxu1  ;;  %v9604_v4 = vld [vmem:[#allocation33_spill] sm:$0xff] }
 0x399   : > { %v3160_v25 = vadd.f32 %v3150_v42, %v3012_v8  ;;  %6067 = vmatmul.msk.bf16.vlgmr.msrb.gmra.mxu1 %vm580_vm3, %v8614_v18  ;;  %v4049_v9 = vsel %vm4047_vm13, %v9602_v39, %v9604_v4 }
 0x39a   : > { %v3139_v47 = vpop.f32.mrf.mxu0  ;;  %6068 = vmatmul.msk.bf16.vlgmr.msrb.gmra.mxu2 %vm580_vm3, %v8614_v18  ;;  %3992 = vmatpush.bf16.msrb.mxu1 %v3925_v44  ;;  %v9605_v44 = vld [vmem:[#allocation18_spill] sm:$0xff] }
 0x39b   : > { %5286 = vrot.lane.b32.xlu0 %v9552_v30, %s6235_s15  ;;  %4005 = vmatpush.bf16.msrb.mxu2 %v3928_v13  ;;  %v4050_v47 = vsel %vm4047_vm13, %v9604_v4, %v9605_v44  ;;  %v8700_v13 = vpop.permute.xlu2 %4629 }
 0x39c   : > { %5433 = vrot.lane.b32.xlu2 %v9541_v41, %s6233_s13  ;;  %v4064_v39 = vsel %vm584_vm2, %v4050_v47, 0 }
 0x39d   : > { %5272 = vrot.lane.b32.xlu1 %v9559_v57, %s6235_s15  ;;  %v3217_v38 = vpop.f32.mrf.mxu2 }
 0x39e   : > { %v3299_v31 = vadd.f32 %v3217_v38, %v3154_v35  ;;  %v3931_v35 = vsel %vm584_vm2, %v8033_v36, 0  ;;  %v8695_v36 = vld [vmem:[%s9446_s3 + $0x5c] sm:$0xf] }
 0x39f   : > { %v3126_v8 = vpop.f32.mrf.mxu3 }
 0x3a0   : > { %v3152_v62 = vpop.f32.mrf.mxu1 }
 0x3a1   : > { %v4061_v62 = vsel %vm584_vm2, %v4049_v9, 0 }
 0x3a2   : > { %v3243_v1 = vpop.f32.mrf.mxu0 }
 0x3a3   : > { %v8674_v20 = vadd.f32 %v3243_v1, %v3156_v5  ;;  %5435 = vrot.lane.b32.xlu0 %v6327_v11, %s6233_s13  ;;  %v8723_v9 = vpop.permute.xlu2 %4633 }
 0x3a4   : > { %6069 = vmatmul.msk.bf16.vlgmr.msrb.gmra.mxu3 %vm580_vm3, %v8614_v18  ;;  %5419 = vrot.lane.b32.xlu2 %v9549_v6, %s6233_s13 }
 0x3a5   : > { %5288 = vrot.lane.b32.xlu1 %v9555_v27, %s6235_s15  ;;  %6070 = vmatmul.msk.bf16.vlgmr.msra.gmra.mxu0 %vm580_vm3, %v8614_v18  ;;  %v3219_v5 = vpop.f32.mrf.mxu2 }
 0x3a6   : > { %4018 = vmatpush.bf16.msrb.mxu3 %v3931_v35  ;;  %4085 = vmatpush.bf16.msra.mxu0 %v4058_v54  ;;  %v8715_v35 = vpop.permute.xlu0 %4631  ;;  %v9606_v54 = vld [vmem:[#allocation19_spill] sm:$0xff] }
 0x3a7   : > { %v3230_v42 = vpop.f32.mrf.mxu3  ;;  %v4051_v5 = vsel %vm4047_vm13, %v9605_v44, %v9606_v54  ;;  %v4052_v4 = vsel %vm4047_vm13, %v9606_v54, %v8086_v17 }
 0x3a8   : > { %v3300_v18 = vadd.f32 %v3230_v42, %v8595_v52  ;;  %v3256_v38 = vpop.f32.mrf.mxu1  ;;  %v4070_v44 = vsel %vm584_vm2, %v4052_v4, 0 }
 0x3a9   : > { %v3302_v8 = vadd.f32 %v3256_v38, %v3157_v59  ;;  %6072 = vmatmul.msk.bf16.vlgmr.msra.gmra.mxu1 %vm580_vm3, %v8695_v36  ;;  %v4053_v38 = vsel %vm4047_vm13, %v8086_v17, %v8117_v26 }
 0x3aa   : > { %v3245_v37 = vpop.f32.mrf.mxu0  ;;  %6073 = vmatmul.msk.bf16.vlgmr.msra.gmra.mxu2 %vm580_vm3, %v8695_v36  ;;  %4098 = vmatpush.bf16.msra.mxu1 %v4061_v62 }
 0x3ab   : > { %5421 = vrot.lane.b32.xlu0 %v6344_v21, %s6233_s13  ;;  %4111 = vmatpush.bf16.msra.mxu2 %v4064_v39  ;;  %v8742_v37 = vpop.permute.xlu1 %4653 }
 0x3ac   : > { %5437 = vrot.lane.b32.xlu2 %v6329_v12, %s6233_s13 }
 0x3ad   : > { %5274 = vrot.lane.b32.xlu1 %v9562_v0, %s6235_s15  ;;  %v3269_v52 = vpop.f32.mrf.mxu2 }
 0x3ae   : > { %v3303_v59 = vadd.f32 %v3269_v52, %v3158_v50  ;;  %v4067_v50 = vsel %vm584_vm2, %v4051_v5, 0  ;;  %v4076_v5 = vsel %vm584_vm2, %v8117_v26, 0  ;;  %v8752_v17 = vpop.permute.xlu0 %4651 }
 0x3af   : > { %v3232_v49 = vpop.f32.mrf.mxu3 }
 0x3b0   : > { %v3258_v1 = vpop.f32.mrf.mxu1 }
 0x3b1   : > { %v4073_v1 = vsel %vm584_vm2, %v4053_v38, 0 }
 0x3b2   : > { %v3295_v42 = vpop.f32.mrf.mxu0 }
 0x3b3   : > { %v8725_v47 = vadd.f32 %v3295_v42, %v3160_v25  ;;  %5423 = vrot.lane.b32.xlu0 %v9539_v53, %s6233_s13  ;;  %v8762_v26 = vpop.permute.xlu1 %4635 }
 0x3b4   : > { %6074 = vmatmul.msk.bf16.vlgmr.msra.gmra.mxu3 %vm580_vm3, %v8695_v36  ;;  %5441 = vrot.lane.b32.xlu2 %v9546_v56, %s6233_s13 }
 0x3b5   : > { %5439 = vrot.lane.b32.xlu1 %v6335_v16, %s6233_s13  ;;  %6075 = vmatmul.msk.bf16.vlgmr.msrb.gmra.mxu0 %vm580_vm3, %v8695_v36  ;;  %v3271_v25 = vpop.f32.mrf.mxu2 }
 0x3b6   : > { %4124 = vmatpush.bf16.msra.mxu3 %v4067_v50  ;;  %4137 = vmatpush.bf16.msrb.mxu0 %v4070_v44  ;;  %v6079_v25 = vld [vmem:[%s9446_s3 + $0x60] sm:$0xf] }
 0x3b7   : > { %v3282_v62 = vpop.f32.mrf.mxu3 }
 0x3b8   : > { %v3304_v39 = vadd.f32 %v3282_v62, %v8638_v32  ;;  %v3362_v52 = vpop.f32.mrf.mxu1  ;;  %v8756_v32 = vpop.permute.xlu2 %4795  ;;  %v4206_v62 = vsel %vm584_vm2, %v8113_v40, 0 }
 0x3b9   : > { %v3444_v49 = vadd.f32 %v3362_v52, %v3299_v31  ;;  %6076 = vmatmul.msk.bf16.vlgmr.msrb.gmra.mxu1 %vm580_vm3, %v8695_v36  ;;  %v8779_v52 = vpop.permute.xlu0 %4797 }
 0x3ba   : > { %v3297_v54 = vpop.f32.mrf.mxu0  ;;  %6077 = vmatmul.msk.bf16.vlgmr.msrb.gmra.mxu2 %vm580_vm3, %v8695_v36  ;;  %4150 = vmatpush.bf16.msrb.mxu1 %v4073_v1 }
 0x3bb   : > { %5443 = vrot.lane.b32.xlu0 %v9552_v30, %s6233_s13  ;;  %4163 = vmatpush.bf16.msrb.mxu2 %v4076_v5 }
 0x3bc   : > { %5427 = vrot.lane.b32.xlu2 %v9547_v28, %s6233_s13  ;;  %v4360_v28 = vsel %vm584_vm2, %v8244_v48, 0 }
 0x3bd   : > { %5425 = vrot.lane.b32.xlu1 %v9543_v23, %s6233_s13  ;;  %v3375_v31 = vpop.f32.mrf.mxu2 }
 0x3be   : > { %v3445_v4 = vadd.f32 %v3375_v31, %v3300_v18  ;;  %v4203_v18 = vsel %vm584_vm2, %v8110_v58, 0  ;;  %v5813_v58 = vld [vmem:[%s9448_s5 + $0x18] sm:$0xff]  ;;  %v4209_v31 = vsel %vm584_vm2, %v8146_v14, 0 }
 0x3bf   : > { %v3284_v42 = vpop.f32.mrf.mxu3 }
 0x3c0   : > { %v3364_v50 = vpop.f32.mrf.mxu1  ;;  %v8784_v1 = vpop.permute.xlu2 %4637 }
 0x3c1   : > { %v5814_v50 = vld [vmem:[%s9448_s5 + $0x20] sm:$0xff] }
 0x3c2   : > { %v3401_v44 = vpop.f32.mrf.mxu0 }
 0x3c3   : > { %v8767_v38 = vadd.f32 %v3401_v44, %v3302_v8  ;;  %5429 = vrot.lane.b32.xlu0 %v9559_v57, %s6233_s13  ;;  %v9607_v44 = vld [vmem:[#allocation20_spill] sm:$0xff]  ;;  %v9609_v57 = vld [vmem:[#allocation35_spill] sm:$0xff] }
 0x3c4   : > { %6078 = vmatmul.msk.bf16.vlgmr.msrb.gmra.mxu3 %vm580_vm3, %v8695_v36  ;;  %5431 = vrot.lane.b32.xlu2 %v9562_v0, %s6233_s13  ;;  %v8808_v0 = vsel %vm2439_vm15, %v8475_v24, %v8485_v22 }
 0x3c5   : > { %5445 = vrot.lane.b32.xlu1 %v9555_v27, %s6233_s13  ;;  %6080 = vmatmul.msk.bf16.vlgmr.msra.gmra.mxu0 %vm580_vm3, %v6079_v25  ;;  %v3377_v8 = vpop.f32.mrf.mxu2 }
 0x3c6   : > { %4230 = vmatpush.bf16.msrb.mxu3 %v4203_v18  ;;  %4243 = vmatpush.bf16.msra.mxu0 %v4206_v62  ;;  %v8799_v18 = vpop.permute.xlu1 %4781  ;;  %v8801_v62 = vpop.permute.xlu0 %4779 }
 0x3c7   : > { %v3388_v36 = vpop.f32.mrf.mxu3 }
 0x3c8   : > { %v3446_v54 = vadd.f32 %v3388_v36, %v8674_v20  ;;  %v3414_v5 = vpop.f32.mrf.mxu1  ;;  %v4212_v20 = vsel %vm584_vm2, %v9607_v44, 0  ;;  %v8803_v36 = vpop.permute.xlu2 %4799 }
 0x3c9   : > { %v3448_v40 = vadd.f32 %v3414_v5, %v3303_v59  ;;  %6081 = vmatmul.msk.bf16.vlgmr.msra.gmra.mxu1 %vm580_vm3, %v6079_v25 }
 0x3ca   : > { %v3403_v42 = vpop.f32.mrf.mxu0  ;;  %6082 = vmatmul.msk.bf16.vlgmr.msra.gmra.mxu2 %vm580_vm3, %v6079_v25  ;;  %4256 = vmatpush.bf16.msra.mxu1 %v4209_v31  ;;  %v9608_v31 = vld [vmem:[#allocation34_spill] sm:$0xff] }
 0x3cb   : > { %5679 = vperm.xlu0 %6221, %v5813_v58   ;;  %4269 = vmatpush.bf16.msra.mxu2 %v4212_v20  ;;  %v4215_v44 = vsel %vm584_vm2, %v9608_v31, 0  ;;  %v4221_v31 = vsel %vm584_vm2, %v8176_v61, 0  ;;  %v6087_v61 = vld [vmem:[%s9446_s3 + $0x64] sm:$0xf] }
 0x3cd   : > { %5712 = vperm.xlu1 %6222, %v5814_v50   ;;  %v3427_v59 = vpop.f32.mrf.mxu2 }
 0x3ce   : > { %v3449_v14 = vadd.f32 %v3427_v59, %v3304_v39  ;;  %v4218_v39 = vsel %vm584_vm2, %v8182_v33, 0  ;;  %v8818_v20 = vpop.permute.xlu1 %4801  ;;  %v4348_v33 = vsel %vm584_vm2, %v9609_v57, 0 }
 0x3cf   : > { %v3390_v8 = vpop.f32.mrf.mxu3 }
 0x3d0   : > { %v3416_v5 = vpop.f32.mrf.mxu1  ;;  %v8827_v27 = vpop.permute.xlu2 %4803 }
 0x3d1   : > { %v8821_v5 = vpop.permute.xlu0 %4783 }
 0x3d2   : > { %v3507_v42 = vpop.f32.mrf.mxu0 }
 0x3d3   : > { %v8810_v58 = vadd.f32 %v3507_v42, %v3444_v49 }
 0x3d4   : > { %6083 = vmatmul.msk.bf16.vlgmr.msra.gmra.mxu3 %vm580_vm3, %v6079_v25 }
 0x3d5   : > { %6084 = vmatmul.msk.bf16.vlgmr.msrb.gmra.mxu0 %vm580_vm3, %v6079_v25  ;;  %4282 = vmatpush.bf16.msra.mxu3 %v4215_v44  ;;  %v3429_v50 = vpop.f32.mrf.mxu2 }
 0x3d6   : > { %4295 = vmatpush.bf16.msrb.mxu0 %v4218_v39 }
 0x3d7   : > { %v3440_v59 = vpop.f32.mrf.mxu3 }
 0x3d8   : > { %v3450_v8 = vadd.f32 %v3440_v59, %v8725_v47  ;;  %v3520_v49 = vpop.f32.mrf.mxu1  ;;  %v8831_v59 = vpop.permute.xlu1 %4785 }
 0x3d9   : > { %v3590_v42 = vadd.f32 %v3520_v49, %v3445_v4  ;;  %6085 = vmatmul.msk.bf16.vlgmr.msrb.gmra.mxu1 %vm580_vm3, %v6079_v25  ;;  %v8839_v49 = vsel %vm2439_vm15, %v8715_v35, %v8723_v9 }
 0x3da   : > { %v3509_v44 = vpop.f32.mrf.mxu0  ;;  %6086 = vmatmul.msk.bf16.vlgmr.msrb.gmra.mxu2 %vm580_vm3, %v6079_v25  ;;  %4308 = vmatpush.bf16.msrb.mxu1 %v4221_v31  ;;  %v9610_v31 = vld [vmem:[#allocation21_spill] sm:$0xff] }
 0x3db   : > { %4375 = vmatpush.bf16.msrb.mxu2 %v4348_v33  ;;  %v8841_v44 = vpop.permute.xlu0 %4805  ;;  %v8847_v33 = vpop.permute.xlu2 %4787 }
 0x3dd   : > { %v3533_v47 = vpop.f32.mrf.mxu2 }
 0x3de   : > { %v3591_v39 = vadd.f32 %v3533_v47, %v3446_v54  ;;  %v4351_v54 = vsel %vm584_vm2, %v9610_v31, 0  ;;  %v4354_v47 = vsel %vm584_vm2, %v8224_v51, 0  ;;  %v4357_v31 = vsel %vm584_vm2, %v8227_v3, 0 }
 0x3df   : > { %v3442_v50 = vpop.f32.mrf.mxu3 }
 0x3e0   : > { %v3522_v4 = vpop.f32.mrf.mxu1  ;;  %v8858_v23 = vpop.permute.xlu1 %4807 }
 0x3e2   : > { %v3559_v57 = vpop.f32.mrf.mxu0 }
 0x3e3   : > { %v8843_v25 = vadd.f32 %v3559_v57, %v3448_v40  ;;  %v8862_v51 = vpop.permute.xlu0 %4789 }
 0x3e4   : > { %6088 = vmatmul.msk.bf16.vlgmr.msrb.gmra.mxu3 %vm580_vm3, %v6087_v61 }
 0x3e5   : > { %6089 = vmatmul.msk.bf16.vlgmr.msra.gmra.mxu0 %vm580_vm3, %v6087_v61  ;;  %4388 = vmatpush.bf16.msrb.mxu3 %v4351_v54  ;;  %v3535_v50 = vpop.f32.mrf.mxu2  ;;  %v8864_v54 = vpop.permute.xlu2 %4791 }
 0x3e6   : > { %4401 = vmatpush.bf16.msra.mxu0 %v4354_v47 }
 0x3e7   : > { %v3546_v4 = vpop.f32.mrf.mxu3 }
 0x3e8   : > { %v3592_v30 = vadd.f32 %v3546_v4, %v8767_v38  ;;  %v3572_v40 = vpop.f32.mrf.mxu1  ;;  %v8870_v48 = vpop.permute.xlu1 %4960 }
 0x3e9   : > { %v3594_v57 = vadd.f32 %v3572_v40, %v3449_v14  ;;  %6090 = vmatmul.msk.bf16.vlgmr.msra.gmra.mxu1 %vm580_vm3, %v6087_v61  ;;  %v9611_v40 = vld [vmem:[#allocation36_spill] sm:$0xff] }
 0x3ea   : > { %v3561_v56 = vpop.f32.mrf.mxu0  ;;  %6091 = vmatmul.msk.bf16.vlgmr.msra.gmra.mxu2 %vm580_vm3, %v6087_v61  ;;  %4414 = vmatpush.bf16.msra.mxu1 %v4357_v31 }
 0x3eb   : > { %4427 = vmatpush.bf16.msra.mxu2 %v4360_v28  ;;  %v4363_v56 = vsel %vm584_vm2, %v8253_v19, 0  ;;  %v4366_v28 = vsel %vm584_vm2, %v9611_v40, 0 }
 0x3ed   : > { %v3585_v38 = vpop.f32.mrf.mxu2  ;;  %v8881_v19 = vpop.permute.xlu2 %4962 }
 0x3ee   : > { %v3595_v14 = vadd.f32 %v3585_v38, %v3450_v8  ;;  %v8876_v8 = vpop.permute.xlu0 %4958 }
 0x3ef   : > { %v3548_v47 = vpop.f32.mrf.mxu3 }
 0x3f0   : > { %v3574_v3 = vpop.f32.mrf.mxu1  ;;  %v8888_v40 = vpop.permute.xlu1 %4944 }
 0x3f2   : > { %v3665_v50 = vpop.f32.mrf.mxu0 }
 0x3f3   : > { %v8866_v4 = vadd.f32 %v3665_v50, %v3590_v42  ;;  %v6095_v42 = vld [vmem:[%s9446_s3 + $0x68] sm:$0xf] }
 0x3f4   : > { %6092 = vmatmul.msk.bf16.vlgmr.msra.gmra.mxu3 %vm580_vm3, %v6087_v61 }
 0x3f5   : > { %6093 = vmatmul.msk.bf16.vlgmr.msrb.gmra.mxu0 %vm580_vm3, %v6087_v61  ;;  %4440 = vmatpush.bf16.msra.mxu3 %v4363_v56  ;;  %v3587_v31 = vpop.f32.mrf.mxu2 }
 0x3f6   : > { %4453 = vmatpush.bf16.msrb.mxu0 %v4366_v28  ;;  %v4501_v31 = vsel %vm2291_vm14, %v8332_v34, %v8419_v55 }
 0x3f7   : > { %v3652_v38 = vpop.f32.mrf.mxu3 }
 0x3f8   : > { %v3734_v47 = vadd.f32 %v3652_v38, %v8810_v58  ;;  %v3678_v3 = vpop.f32.mrf.mxu1 }
 0x3f9   : > { %v3736_v50 = vadd.f32 %v3678_v3, %v3591_v39  ;;  %6094 = vmatmul.msk.bf16.vlgmr.msrb.gmra.mxu1 %vm580_vm3, %v6087_v61  ;;  %v8896_v61 = vpop.permute.xlu0 %4942 }
 0x3fa   : > { %v3667_v16 = vpop.f32.mrf.mxu0  ;;  %6096 = vmatmul.msk.bf16.vlgmr.msrb.gmra.mxu2 %vm580_vm3, %v6095_v42  ;;  %4538 = vmatpush.bf16.msrb.mxu1 %v8456_v10  ;;  %v8898_v10 = vpop.permute.xlu2 %4946 }
 0x3fb   : > { %4551 = vmatpush.bf16.msrb.mxu2 %v8398_v15  ;;  %v4502_v16 = vsel %vm2291_vm14, %v8419_v55, %v8300_v7  ;;  %v8906_v55 = vpop.permute.xlu1 %4964 }
 0x3fd   : > { %v3691_v56 = vpop.f32.mrf.mxu2 }
 0x3fe   : > { %v3737_v28 = vadd.f32 %v3691_v56, %v3592_v30  ;;  %4539 = vmatpush.bf16.msrb.mxu1 %v4501_v31  ;;  %v9612_v31 = vld [vmem:[#allocation22_spill] sm:$0xff] }
 0x3ff   : > { %4552 = vmatpush.bf16.msrb.mxu2 %v4502_v16  ;;  %v3654_v58 = vpop.f32.mrf.mxu3 }
 0x400   : > { %v3680_v39 = vpop.f32.mrf.mxu1  ;;  %v9613_v58 = vld [vmem:[#allocation40_spill] sm:$0xff] }
 0x401   : > { %v4504_v39 = vsel %vm2291_vm14, %v9612_v31, %v9613_v58 }
 0x402   : > { %v3717_v15 = vpop.f32.mrf.mxu0 }
 0x403   : > { %v8900_v38 = vadd.f32 %v3717_v15, %v3594_v57  ;;  %v4503_v57 = vsel %vm2291_vm14, %v8300_v7, %v9612_v31  ;;  %v8920_v15 = vpop.permute.xlu2 %4793 }
 0x404   : > { %6097 = vmatmul.msk.bf16.vlgmr.msrb.gmra.mxu3 %vm580_vm3, %v6095_v42 }
 0x405   : > { %6098 = vmatmul.msk.bf16.vlgmr.msra.gmra.mxu0 %vm580_vm3, %v6095_v42  ;;  %4564 = vmatpush.bf16.msrb.mxu3 %v8286_v46  ;;  %v3693_v30 = vpop.f32.mrf.mxu2 }
 0x406   : > { %4577 = vmatpush.bf16.msra.mxu0 %v8327_v63  ;;  %v8916_v63 = vpop.permute.xlu0 %4809  ;;  %v9615_v30 = vld [vmem:[#allocation37_spill] sm:$0xff] }
 0x407   : > { %v3704_v34 = vpop.f32.mrf.mxu3 }
 0x408   : > { %v3738_v3 = vadd.f32 %v3704_v34, %v8843_v25  ;;  %v3730_v56 = vpop.f32.mrf.mxu1  ;;  %v9614_v25 = vld [vmem:[#allocation23_spill] sm:$0xff] }
 0x409   : > { %v3740_v16 = vadd.f32 %v3730_v56, %v3595_v14  ;;  %4565 = vmatpush.bf16.msrb.mxu3 %v4503_v57  ;;  %6099 = vmatmul.msk.bf16.vlgmr.msra.gmra.mxu1 %vm580_vm3, %v6095_v42  ;;  %v5815_v14 = vld [vmem:[%s9448_s5 + $0x28] sm:$0xff]  ;;  %v9616_v56 = vld [vmem:[#allocation24_spill] sm:$0xff]  ;;  %v9617_v57 = vld [vmem:[#allocation38_spill] sm:$0xff] }
 0x40a   : > { %4578 = vmatpush.bf16.msra.mxu0 %v4504_v39  ;;  %v3719_v46 = vpop.f32.mrf.mxu0  ;;  %6100 = vmatmul.msk.bf16.vlgmr.msra.gmra.mxu2 %vm580_vm3, %v6095_v42  ;;  %v4505_v31 = vsel %vm2291_vm14, %v9613_v58, %v9616_v56  ;;  %v4506_v39 = vsel %vm2291_vm14, %v9616_v56, %v9617_v57 }
 0x40b   : > { %4590 = vmatpush.bf16.msra.mxu1 %v9614_v25  ;;  %4603 = vmatpush.bf16.msra.mxu2 %v9615_v30  ;;  %v8932_v30 = vpop.permute.xlu1 %4966 }
 0x40c   : > { %5724 = vperm.xlu2 %6223, %v5815_v14   ;;  %v9618_v14 = vld [vmem:[#allocation39_spill] sm:$0xff] }
 0x40d   : > { %v3797_v7 = vpop.f32.mrf.mxu2 }
 0x40e   : > { %v3879_v34 = vadd.f32 %v3797_v7, %v3734_v47  ;;  %v8937_v47 = vpop.permute.xlu0 %4948  ;;  %v8941_v7 = vpop.permute.xlu2 %4968 }
 0x40f   : > { %4591 = vmatpush.bf16.msra.mxu1 %v4505_v31  ;;  %v3706_v46 = vpop.f32.mrf.mxu3  ;;  %4604 = vmatpush.bf16.msra.mxu2 %v4506_v39  ;;  %v6103_v31 = vld [vmem:[%s9447_s4 + $0x4] sm:$0xf]  ;;  %v4507_v39 = vsel %vm2291_vm14, %v9617_v57, %v8541_v43 }
 0x410   : > { %v3732_v25 = vpop.f32.mrf.mxu1 }
 0x411   : > { %v9619_v25 = vld [vmem:[#allocation2_spill] sm:$0xff] }
 0x412   : > { %v3823_v53 = vpop.f32.mrf.mxu0 }
 0x413   : > { %v8934_v21 = vadd.f32 %v3823_v53, %v3736_v50 }
 0x414   : > { %6101 = vmatmul.msk.bf16.vlgmr.msra.gmra.mxu3 %vm580_vm3, %v6095_v42 }
 0x415   : > { %6102 = vmatmul.msk.bf16.vlgmr.msrb.gmra.mxu0 %vm580_vm3, %v6095_v42  ;;  %4616 = vmatpush.bf16.msra.mxu3 %v8514_v45  ;;  %v3799_v58 = vpop.f32.mrf.mxu2  ;;  %v4655_v45 = vsel %vm2439_vm15, %v8564_v2, %v8475_v24  ;;  %v4657_v24 = vsel %vm2439_vm15, %v8485_v22, %v8700_v13 }
 0x416   : > { %4692 = vmatpush.bf16.msrb.mxu0 %v9618_v14  ;;  %v8966_v57 = vpop.permute.xlu2 %4952 }
 0x417   : > { %v3810_v56 = vpop.f32.mrf.mxu3 }
 0x418   : > { %v3880_v53 = vadd.f32 %v3810_v56, %v8866_v4  ;;  %v3836_v50 = vpop.f32.mrf.mxu1  ;;  %v8957_v4 = vpop.permute.xlu1 %4950 }
 0x419   : > { %v3882_v42 = vadd.f32 %v3836_v50, %v3737_v28  ;;  %4617 = vmatpush.bf16.msra.mxu3 %v4507_v39  ;;  %6104 = vmatmul.msk.bf16.vlgmr.msrb.gmra.mxu1 %vm366_vm0, %v6103_v31  ;;  %v8960_v28 = vpop.permute.xlu0 %4970 }
 0x41a   : > { %4693 = vmatpush.bf16.msrb.mxu0 %v4655_v45  ;;  %v3825_v46 = vpop.f32.mrf.mxu0  ;;  %6105 = vmatmul.msk.bf16.vlgmr.msrb.gmra.mxu2 %vm366_vm0, %v6103_v31 }
 0x41b   : > { %4705 = vmatpush.bf16.msrb.mxu1 %v9619_v25  ;;  %4718 = vmatpush.bf16.msrb.mxu2 %v8586_v29 }
 0x41d   : > { %v3849_v58 = vpop.f32.mrf.mxu2 }
 0x41e   : > { %v3883_v43 = vadd.f32 %v3849_v58, %v3738_v3  ;;  %v9620_v3 = vld [vmem:[#allocation25_spill] sm:$0xff]  ;;  %v9621_v58 = vld [vmem:[#allocation28_spill] sm:$0xff] }
 0x41f   : > { %4706 = vmatpush.bf16.msrb.mxu1 %v8808_v0  ;;  %v3812_v2 = vpop.f32.mrf.mxu3  ;;  %4719 = vmatpush.bf16.msrb.mxu2 %v4657_v24  ;;  %v8985_v24 = vpop.permute.xlu2 %4956 }
 0x420   : > { %v3838_v14 = vpop.f32.mrf.mxu1  ;;  %v8973_v0 = vpop.permute.xlu1 %4972 }
 0x421   : > { %v8980_v46 = vpop.permute.xlu0 %4954 }
 0x422   : > { %v3875_v56 = vpop.f32.mrf.mxu0 }
 0x423   : > { %v8968_v50 = vadd.f32 %v3875_v56, %v3740_v16  ;;  %v4658_v16 = vsel %vm2439_vm15, %v8700_v13, %v8715_v35 }
 0x424   : > { %6106 = vmatmul.msk.bf16.vlgmr.msrb.gmra.mxu3 %vm366_vm0, %v6103_v31 }
 0x425   : > { %6107 = vmatmul.msk.bf16.vlgmr.msra.gmra.mxu0 %vm366_vm0, %v6103_v31  ;;  %4731 = vmatpush.bf16.msrb.mxu3 %v8590_v60  ;;  %v3851_v29 = vpop.f32.mrf.mxu2  ;;  %v4667_v60 = vsel %vm2439_vm15, %v9621_v58, %v8752_v17 }
 0x426   : > { %4744 = vmatpush.bf16.msra.mxu0 %v9620_v3 }
 0x427   : > { %v3862_v22 = vpop.f32.mrf.mxu3 }
 0x428   : > { %v3884_v39 = vadd.f32 %v3862_v22, %v8900_v38  ;;  %v3942_v45 = vpop.f32.mrf.mxu1  ;;  %v4668_v38 = vsel %vm2439_vm15, %v8752_v17, %v8742_v37  ;;  %v9001_v56 = vpop.permute.xlu1 %5123 }
 0x429   : > { %v4024_v25 = vadd.f32 %v3942_v45, %v3879_v34  ;;  %4732 = vmatpush.bf16.msrb.mxu3 %v4658_v16  ;;  %6108 = vmatmul.msk.bf16.vlgmr.msra.gmra.mxu1 %vm366_vm0, %v6103_v31  ;;  %v4660_v34 = vsel %vm2439_vm15, %v8723_v9, %v8762_v26  ;;  %v9006_v29 = vpop.permute.xlu0 %5121  ;;  %v4818_v9 = vsel %vm1995_vm12, %v8756_v32, %v8779_v52  ;;  %v9013_v22 = vpop.permute.xlu2 %5125 }
 0x42a   : > { %4745 = vmatpush.bf16.msra.mxu0 %v8839_v49  ;;  %v3877_v2 = vpop.f32.mrf.mxu0  ;;  %6109 = vmatmul.msk.bf16.vlgmr.msra.gmra.mxu2 %vm366_vm0, %v6103_v31  ;;  %v4661_v49 = vsel %vm2439_vm15, %v8762_v26, %v8784_v1  ;;  %v4819_v26 = vsel %vm1995_vm12, %v8779_v52, %v8803_v36  ;;  %v4811_v32 = vsel %vm1995_vm12, %v8801_v62, %v8799_v18 }
 0x42b   : > { %4757 = vmatpush.bf16.msra.mxu1 %v4667_v60  ;;  %4770 = vmatpush.bf16.msra.mxu2 %v4668_v38  ;;  %v4820_v52 = vsel %vm1995_vm12, %v8803_v36, %v8818_v20  ;;  %v4813_v38 = vsel %vm1995_vm12, %v8821_v5, %v8831_v59 }
 0x42d   : > { %v3955_v13 = vpop.f32.mrf.mxu2 }
 0x42e   : > { %v8993_v35 = vadd.f32 %v3955_v13, %v3880_v53  ;;  %v4466_v53 = vld [vmem:[%s9447_s4] sm:$0xf]  ;;  %v4814_v13 = vsel %vm1995_vm12, %v8831_v59, %v8847_v33 }
 0x42f   : > { %4758 = vmatpush.bf16.msra.mxu1 %v4660_v34  ;;  %v3864_v14 = vpop.f32.mrf.mxu3  ;;  %4771 = vmatpush.bf16.msra.mxu2 %v4661_v49 }
 0x430   : > { %v3944_v37 = vpop.f32.mrf.mxu1  ;;  %v9030_v60 = vpop.permute.xlu1 %5109 }
 0x431   : > { %v9037_v62 = vpop.permute.xlu0 %5107  ;;  %v4822_v37 = vsel %vm1995_vm12, %v8827_v27, %v8841_v44 }
 0x432   : > { %v3981_v17 = vpop.f32.mrf.mxu0 }
 0x433   : > { %v9008_v3 = vadd.f32 %v3981_v17, %v3882_v42 }
 0x434   : > { %6110 = vmatmul.msk.bf16.vlgmr.msra.gmra.mxu3 %vm366_vm0, %v6103_v31  ;;  %v4812_v31 = vsel %vm1995_vm12, %v8799_v18, %v8821_v5  ;;  %v4823_v5 = vsel %vm1995_vm12, %v8841_v44, %v8858_v23  ;;  %v4816_v44 = vsel %vm1995_vm12, %v8862_v51, %v8864_v54 }
 0x435   : > { %6111 = vmatmul.msk.bf16.vlgmr.msrb.gmra.mxu0 %vm366_vm0, %v4466_v53  ;;  %4848 = vmatpush.bf16.msra.mxu3 %v4818_v9  ;;  %v3957_v1 = vpop.f32.mrf.mxu2 }
 0x436   : > { %4861 = vmatpush.bf16.msrb.mxu0 %v4819_v26  ;;  %v4815_v1 = vsel %vm1995_vm12, %v8847_v33, %v8862_v51 }
 0x437   : > { %v3968_v45 = vpop.f32.mrf.mxu3 }
 0x438   : > { %v4026_v42 = vadd.f32 %v3968_v45, %v8934_v21  ;;  %v3994_v16 = vpop.f32.mrf.mxu1  ;;  %v4821_v21 = vsel %vm1995_vm12, %v8818_v20, %v8827_v27 }
 0x439   : > { %v4028_v58 = vadd.f32 %v3994_v16, %v3883_v43  ;;  %4849 = vmatpush.bf16.msra.mxu3 %v4811_v32  ;;  %6112 = vmatmul.msk.bf16.vlgmr.msrb.gmra.mxu1 %vm366_vm0, %v4466_v53  ;;  %v9039_v43 = vpop.permute.xlu2 %5111  ;;  %v9059_v17 = vpop.permute.xlu0 %5119  ;;  %v4824_v16 = vsel %vm1995_vm12, %v8858_v23, %v8916_v63  ;;  %v4817_v23 = vsel %vm1995_vm12, %v8864_v54, %v8920_v15 }
 0x43a   : > { %4862 = vmatpush.bf16.msrb.mxu0 %v4812_v31  ;;  %v3983_v2 = vpop.f32.mrf.mxu0  ;;  %6113 = vmatmul.msk.bf16.vlgmr.msrb.gmra.mxu2 %vm366_vm0, %v4466_v53  ;;  %v4974_v63 = vsel %vm1847_vm11, %v8896_v61, %v8888_v40  ;;  %v4982_v54 = vsel %vm1847_vm11, %v8870_v48, %v8881_v19  ;;  %v4983_v61 = vsel %vm1847_vm11, %v8881_v19, %v8906_v55 }
 0x43b   : > { %4874 = vmatpush.bf16.msrb.mxu1 %v4820_v52  ;;  %4887 = vmatpush.bf16.msrb.mxu2 %v4821_v21  ;;  %v6118_v52 = vld [vmem:[%s9447_s4 + $0x8] sm:$0xf]  ;;  %v4976_v19 = vsel %vm1847_vm11, %v8898_v10, %v8937_v47 }
 0x43d   : > { %v4007_v18 = vpop.f32.mrf.mxu2 }
 0x43e   : > { %v4029_v36 = vadd.f32 %v4007_v18, %v3884_v39  ;;  %v9052_v39 = vpop.permute.xlu1 %5127 }
 0x43f   : > { %4875 = vmatpush.bf16.msrb.mxu1 %v4813_v38  ;;  %v3970_v20 = vpop.f32.mrf.mxu3  ;;  %4888 = vmatpush.bf16.msrb.mxu2 %v4814_v13 }
 0x440   : > { %v3996_v34 = vpop.f32.mrf.mxu1 }
 0x441   : > { %v9061_v9 = vpop.permute.xlu2 %5105  ;;  %v4984_v34 = vsel %vm1847_vm11, %v8906_v55, %v8932_v30  ;;  %v4977_v55 = vsel %vm1847_vm11, %v8937_v47, %v8957_v4  ;;  %v4987_v47 = vsel %vm1847_vm11, %v8960_v28, %v8973_v0  ;;  %v9161_v0 = vld [vmem:[%s9447_s4 + $0xc] sm:$0xf] }
 0x442   : > { %v4087_v49 = vpop.f32.mrf.mxu0 }
 0x443   : > { %v9047_v14 = vadd.f32 %v4087_v49, %v4024_v25 }
 0x444   : > { %6114 = vmatmul.msk.bf16.vlgmr.msrb.gmra.mxu3 %vm366_vm0, %v4466_v53 }
 0x445   : > { %6115 = vmatmul.msk.bf16.vlgmr.msra.gmra.mxu0 %vm366_vm0, %v4466_v53  ;;  %4900 = vmatpush.bf16.msrb.mxu3 %v4822_v37  ;;  %v4009_v59 = vpop.f32.mrf.mxu2 }
 0x446   : > { %4913 = vmatpush.bf16.msra.mxu0 %v4823_v5  ;;  %v4978_v59 = vsel %vm1847_vm11, %v8957_v4, %v8966_v57 }
 0x447   : > { %v4020_v25 = vpop.f32.mrf.mxu3 }
 0x448   : > { %v4030_v27 = vadd.f32 %v4020_v25, %v8968_v50  ;;  %v4100_v26 = vpop.f32.mrf.mxu1  ;;  %v4981_v50 = vsel %vm1847_vm11, %v8876_v8, %v8870_v48  ;;  %v4975_v48 = vsel %vm1847_vm11, %v8888_v40, %v8898_v10  ;;  %v4985_v40 = vsel %vm1847_vm11, %v8932_v30, %v8941_v7 }
 0x449   : > { %v4170_v45 = vadd.f32 %v4100_v26, %v8993_v35  ;;  %4901 = vmatpush.bf16.msrb.mxu3 %v4815_v1  ;;  %6116 = vmatmul.msk.bf16.vlgmr.msra.gmra.mxu1 %vm366_vm0, %v4466_v53  ;;  %v9079_v35 = vpop.permute.xlu1 %5129 }
 0x44a   : > { %4914 = vmatpush.bf16.msra.mxu0 %v4816_v44  ;;  %v4089_v32 = vpop.f32.mrf.mxu0  ;;  %6117 = vmatmul.msk.bf16.vlgmr.msra.gmra.mxu2 %vm366_vm0, %v4466_v53  ;;  %v9089_v53 = vpop.permute.xlu0 %5113 }
 0x44b   : > { %4926 = vmatpush.bf16.msra.mxu1 %v4824_v16  ;;  %5011 = vmatpush.bf16.msra.mxu2 %v4981_v50 }
 0x44d   : > { %v4113_v33 = vpop.f32.mrf.mxu2 }
 0x44e   : > { %v9081_v51 = vadd.f32 %v4113_v33, %v4026_v42  ;;  %v9094_v42 = vpop.permute.xlu2 %5131  ;;  %v5140_v33 = vsel %vm1118_vm6, %v9006_v29, %v9001_v56 }
 0x44f   : > { %4927 = vmatpush.bf16.msra.mxu1 %v4817_v23  ;;  %v4022_v31 = vpop.f32.mrf.mxu3  ;;  %5012 = vmatpush.bf16.msra.mxu2 %v4974_v63 }
 0x450   : > { %v4102_v8 = vpop.f32.mrf.mxu1 }
 0x451   : > { %v9106_v38 = vpop.permute.xlu1 %5117 }
 0x452   : > { %v4139_v2 = vpop.f32.mrf.mxu0 }
 0x453   : > { %v9096_v21 = vadd.f32 %v4139_v2, %v4028_v58 }
 0x454   : > { %6119 = vmatmul.msk.bf16.vlgmr.msra.gmra.mxu3 %vm366_vm0, %v6118_v52 }
 0x455   : > { %6120 = vmatmul.msk.bf16.vlgmr.msrb.gmra.mxu0 %vm366_vm0, %v6118_v52  ;;  %5024 = vmatpush.bf16.msra.mxu3 %v4982_v54  ;;  %v4115_v15 = vpop.f32.mrf.mxu2 }
 0x456   : > { %5037 = vmatpush.bf16.msrb.mxu0 %v4983_v61 }
 0x457   : > { %v4126_v18 = vpop.f32.mrf.mxu3 }
 0x458   : > { %v4172_v58 = vadd.f32 %v4126_v18, %v9008_v3  ;;  %v4152_v13 = vpop.f32.mrf.mxu1  ;;  %v9119_v3 = vpop.permute.xlu0 %5115 }
 0x459   : > { %v4174_v20 = vadd.f32 %v4152_v13, %v4029_v36  ;;  %5025 = vmatpush.bf16.msra.mxu3 %v4975_v48  ;;  %6121 = vmatmul.msk.bf16.vlgmr.msrb.gmra.mxu1 %vm366_vm0, %v6118_v52  ;;  %v9125_v36 = vpop.permute.xlu2 %5276  ;;  %v9135_v25 = vpop.permute.xlu1 %5262  ;;  %v5135_v48 = vsel %vm1118_vm6, %v9030_v60, %v9039_v43 }
 0x45a   : > { %5038 = vmatpush.bf16.msrb.mxu0 %v4976_v19  ;;  %v4141_v49 = vpop.f32.mrf.mxu0  ;;  %6122 = vmatmul.msk.bf16.vlgmr.msrb.gmra.mxu2 %vm366_vm0, %v6118_v52  ;;  %v5144_v19 = vsel %vm1118_vm6, %v9079_v35, %v9094_v42 }
 0x45b   : > { %5050 = vmatpush.bf16.msrb.mxu1 %v4984_v34  ;;  %5063 = vmatpush.bf16.msrb.mxu2 %v4985_v40 }
 0x45d   : > { %v4165_v10 = vpop.f32.mrf.mxu2 }
 0x45e   : > { %v9127_v37 = vadd.f32 %v4165_v10, %v4030_v27  ;;  %v4986_v27 = vsel %vm1847_vm11, %v8941_v7, %v8960_v28  ;;  %v5139_v7 = vsel %vm1118_vm6, %v9059_v17, %v9006_v29  ;;  %v4979_v28 = vsel %vm1847_vm11, %v8966_v57, %v8980_v46 }
 0x45f   : > { %5051 = vmatpush.bf16.msrb.mxu1 %v4977_v55  ;;  %v4128_v5 = vpop.f32.mrf.mxu3  ;;  %5064 = vmatpush.bf16.msrb.mxu2 %v4978_v59  ;;  %v5133_v29 = vsel %vm1118_vm6, %v9061_v9, %v9037_v62  ;;  %v5141_v9 = vsel %vm1118_vm6, %v9001_v56, %v9013_v22  ;;  %v5136_v56 = vsel %vm1118_vm6, %v9039_v43, %v9089_v53 }
 0x460   : > { %v4154_v30 = vpop.f32.mrf.mxu1  ;;  %v9146_v44 = vpop.permute.xlu0 %5278 }
 0x461   : > { %v9149_v16 = vpop.permute.xlu2 %5264  ;;  %v9173_v57 = vpop.permute.xlu1 %5282  ;;  %v5296_v59 = vsel %vm973_vm5, %v9125_v36, %v9146_v44 }
 0x462   : > { %v4245_v26 = vpop.f32.mrf.mxu0  ;;  %v5290_v36 = vsel %vm973_vm5, %v9135_v25, %v9149_v16 }
 0x463   : > { %v9137_v1 = vadd.f32 %v4245_v26, %v4170_v45 }
 0x464   : > { %6123 = vmatmul.msk.bf16.vlgmr.msrb.gmra.mxu3 %vm366_vm0, %v6118_v52 }
 0x465   : > { %6124 = vmatmul.msk.bf16.vlgmr.msra.gmra.mxu0 %vm366_vm0, %v6118_v52  ;;  %5076 = vmatpush.bf16.msrb.mxu3 %v4986_v27  ;;  %v4167_v4 = vpop.f32.mrf.mxu2  ;;  %v9242_v27 = vld [vmem:[%s9447_s4 + $0x10] sm:$0xf] }
 0x466   : > { %5089 = vmatpush.bf16.msra.mxu0 %v4987_v47 }
 0x467   : > { %v4232_v45 = vpop.f32.mrf.mxu3 }
 0x468   : > { %v4314_v32 = vadd.f32 %v4232_v45, %v9047_v14  ;;  %v4258_v50 = vpop.f32.mrf.mxu1  ;;  %v4980_v14 = vsel %vm1847_vm11, %v8980_v46, %v8985_v24  ;;  %v5134_v46 = vsel %vm1118_vm6, %v9037_v62, %v9030_v60  ;;  %v5281_v63 = vpop.permute.xlu0 %5280  ;;  %v5142_v62 = vsel %vm1118_vm6, %v9013_v22, %v9052_v39 }
 0x469   : > { %v4316_v23 = vadd.f32 %v4258_v50, %v9081_v51  ;;  %5077 = vmatpush.bf16.msrb.mxu3 %v4979_v28  ;;  %6125 = vmatmul.msk.bf16.vlgmr.msra.gmra.mxu1 %vm366_vm0, %v6118_v52  ;;  %v9181_v8 = vpop.permute.xlu2 %5284  ;;  %v9195_v15 = vpop.permute.xlu1 %5268  ;;  %v5137_v60 = vsel %vm1118_vm6, %v9089_v53, %v9119_v3  ;;  %v5297_v47 = vsel %vm973_vm5, %v9146_v44, %v5281_v63 }
 0x46a   : > { %v4247_v17 = vpop.f32.mrf.mxu0  ;;  %5090 = vmatpush.bf16.msra.mxu0 %v4980_v14  ;;  %6127 = vmatmul.msk.bf16.vlgmr.msra.gmra.mxu2 %vm366_vm0, %v9161_v0  ;;  %v5299_v14 = vsel %vm973_vm5, %v9173_v57, %v9181_v8 }
 0x46b   : > { %5168 = vmatpush.bf16.msra.mxu1 %v5139_v7  ;;  %5181 = vmatpush.bf16.msra.mxu2 %v5140_v33 }
 0x46d   : > { %v4271_v51 = vpop.f32.mrf.mxu2 }
 0x46e   : > { %v4317_v24 = vadd.f32 %v4271_v51, %v4172_v58  ;;  %v5143_v58 = vsel %vm1118_vm6, %v9052_v39, %v9079_v35  ;;  %v5138_v39 = vsel %vm1118_vm6, %v9119_v3, %v9106_v38 }
 0x46f   : > { %v4234_v31 = vpop.f32.mrf.mxu3  ;;  %5169 = vmatpush.bf16.msra.mxu1 %v5133_v29  ;;  %5182 = vmatpush.bf16.msra.mxu2 %v5134_v46 }
 0x470   : > { %v4260_v52 = vpop.f32.mrf.mxu1 }
 0x471   : > { %v9211_v49 = vpop.permute.xlu2 %5270  ;;  %v9225_v10 = vpop.permute.xlu1 %5272 }
 0x472   : > { %v4297_v2 = vpop.f32.mrf.mxu0  ;;  %v5294_v31 = vsel %vm973_vm5, %v9211_v49, %v9225_v10 }
 0x473   : > { %v9183_v54 = vadd.f32 %v4297_v2, %v4174_v20  ;;  %v5267_v20 = vpop.permute.xlu0 %5266 }
 0x474   : > { %6128 = vmatmul.msk.bf16.vlgmr.msra.gmra.mxu3 %vm366_vm0, %v9161_v0  ;;  %v5291_v25 = vsel %vm973_vm5, %v9149_v16, %v5267_v20  ;;  %v5292_v44 = vsel %vm973_vm5, %v5267_v20, %v9195_v15  ;;  %v6142_v20 = vld [vmem:[%s9447_s4 + $0x14] sm:$0xf] }
 0x475   : > { %6129 = vmatmul.msk.bf16.vlgmr.msrb.gmra.mxu0 %vm366_vm0, %v9161_v0  ;;  %5194 = vmatpush.bf16.msra.mxu3 %v5141_v9  ;;  %v4273_v61 = vpop.f32.mrf.mxu2 }
 0x476   : > { %5207 = vmatpush.bf16.msrb.mxu0 %v5142_v62 }
 0x477   : > { %v4284_v18 = vpop.f32.mrf.mxu3 }
 0x478   : > { %v4318_v13 = vadd.f32 %v4284_v18, %v9096_v21  ;;  %v4310_v22 = vpop.f32.mrf.mxu1 }
 0x479   : > { %v4320_v34 = vadd.f32 %v4310_v22, %v9127_v37  ;;  %5195 = vmatpush.bf16.msra.mxu3 %v5135_v48  ;;  %6130 = vmatmul.msk.bf16.vlgmr.msrb.gmra.mxu1 %vm366_vm0, %v9161_v0  ;;  %v9232_v30 = vpop.permute.xlu2 %5433 }
 0x47a   : > { %v4299_v40 = vpop.f32.mrf.mxu0  ;;  %5208 = vmatpush.bf16.msrb.mxu0 %v5136_v56  ;;  %6131 = vmatmul.msk.bf16.vlgmr.msrb.gmra.mxu2 %vm366_vm0, %v9161_v0 }
 0x47b   : > { %5220 = vmatpush.bf16.msrb.mxu1 %v5143_v58  ;;  %5233 = vmatpush.bf16.msrb.mxu2 %v5144_v19  ;;  %v5287_v5 = vpop.permute.xlu0 %5286 }
 0x47c   : > { %v5300_v16 = vsel %vm973_vm5, %v9181_v8, %v5287_v5 }
 0x47d   : > { %v4377_v43 = vpop.f32.mrf.mxu2 }
 0x47e   : > { %v9223_v35 = vadd.f32 %v4377_v43, %v4314_v32  ;;  %v5289_v32 = vpop.permute.xlu1 %5288 }
 0x47f   : > { %v4286_v21 = vpop.f32.mrf.mxu3  ;;  %5221 = vmatpush.bf16.msrb.mxu1 %v5137_v60  ;;  %5234 = vmatpush.bf16.msrb.mxu2 %v5138_v39  ;;  %v5301_v8 = vsel %vm973_vm5, %v5287_v5, %v5289_v32 }
 0x480   : > { %v4312_v37 = vpop.f32.mrf.mxu1 }
 0x481   : > { %v5420_v28 = vpop.permute.xlu2 %5419 }
 0x482   : > { %v4403_v55 = vpop.f32.mrf.mxu0 }
 0x483   : > { %v9230_v53 = vadd.f32 %v4403_v55, %v4316_v23 }
 0x484   : > { %6132 = vmatmul.msk.bf16.vlgmr.msrb.gmra.mxu3 %vm366_vm0, %v9161_v0 }
 0x485   : > { %6133 = vmatmul.msk.bf16.vlgmr.msra.gmra.mxu0 %vm366_vm0, %v9161_v0  ;;  %v4379_v3 = vpop.f32.mrf.mxu2  ;;  %5246 = vmatpush.bf16.msrb.mxu3 %v9094_v42  ;;  %v5298_v42 = vsel %vm973_vm5, %v5281_v63, %v9173_v57 }
 0x486   : > { %5325 = vmatpush.bf16.msra.mxu0 %v5296_v59  ;;  %v5275_v51 = vpop.permute.xlu1 %5274 }
 0x487   : > { %v4390_v26 = vpop.f32.mrf.mxu3  ;;  %v5295_v61 = vsel %vm973_vm5, %v9225_v10, %v5275_v51 }
 0x488   : > { %v9250_v4 = vadd.f32 %v4390_v26, %v9137_v1  ;;  %v4416_v45 = vpop.f32.mrf.mxu1  ;;  %v5436_v1 = vpop.permute.xlu0 %5435 }
 0x489   : > { %v9254_v7 = vadd.f32 %v4416_v45, %v4317_v24  ;;  %5247 = vmatpush.bf16.msrb.mxu3 %v9106_v38  ;;  %6135 = vmatmul.msk.bf16.vlgmr.msra.gmra.mxu1 %vm366_vm0, %v9242_v27  ;;  %v5293_v24 = vsel %vm973_vm5, %v9195_v15, %v9211_v49  ;;  %v5438_v52 = vpop.permute.xlu2 %5437 }
 0x48a   : > { %v4405_v50 = vpop.f32.mrf.mxu0  ;;  %5326 = vmatpush.bf16.msra.mxu0 %v5290_v36  ;;  %6136 = vmatmul.msk.bf16.vlgmr.msra.gmra.mxu2 %vm366_vm0, %v9242_v27  ;;  %v5454_v19 = vsel %vm573_vm1, %v5436_v1, %v5438_v52 }
 0x48b   : > { %5338 = vmatpush.bf16.msra.mxu1 %v5297_v47  ;;  %5351 = vmatpush.bf16.msra.mxu2 %v5298_v42 }
 0x48d   : > { %v4429_v38 = vpop.f32.mrf.mxu2 }
 0x48e   : > { %v9265_v0 = vadd.f32 %v4429_v38, %v4318_v13  ;;  %v5440_v15 = vpop.permute.xlu1 %5439  ;;  %v5453_v13 = vsel %vm573_vm1, %v9232_v30, %v5436_v1 }
 0x48f   : > { %v4392_v33 = vpop.f32.mrf.mxu3  ;;  %5339 = vmatpush.bf16.msra.mxu1 %v5291_v25  ;;  %5352 = vmatpush.bf16.msra.mxu2 %v5292_v44  ;;  %v5455_v39 = vsel %vm573_vm1, %v5438_v52, %v5440_v15 }
 0x490   : > { %v4418_v23 = vpop.f32.mrf.mxu1  ;;  %v5422_v57 = vpop.permute.xlu0 %5421 }
 0x491   : > { %v5442_v22 = vpop.permute.xlu2 %5441  ;;  %v5447_v49 = vsel %vm573_vm1, %v5420_v28, %v5422_v57 }
 0x492   : > { %v4455_v17 = vpop.f32.mrf.mxu0  ;;  %v5456_v10 = vsel %vm573_vm1, %v5440_v15, %v5442_v22  ;;  %v9624_v15 = vld [vmem:[#allocation3_spill] sm:$0xff] }
 0x493   : > { %v9272_v29 = vadd.f32 %v4455_v17, %v4320_v34 }
 0x494   : > { %6137 = vmatmul.msk.bf16.vlgmr.msra.gmra.mxu3 %vm366_vm0, %v9242_v27 }
 0x495   : > { %6138 = vmatmul.msk.bf16.vlgmr.msrb.gmra.mxu0 %vm366_vm0, %v9242_v27  ;;  %5364 = vmatpush.bf16.msra.mxu3 %v5299_v14  ;;  %v4431_v46 = vpop.f32.mrf.mxu2 }
 0x496   : > { %5377 = vmatpush.bf16.msrb.mxu0 %v5300_v16  ;;  %v5426_v43 = vpop.permute.xlu1 %5425 }
 0x497   : > { %v4442_v63 = vpop.f32.mrf.mxu3 }
 0x498   : > { %v9286_v2 = vadd.f32 %v4442_v63, %v9183_v54  ;;  %v4541_v9 = vpop.f32.mrf.mxu1  ;;  %v5424_v58 = vpop.permute.xlu0 %5423 }
 0x499   : > { %5365 = vmatpush.bf16.msra.mxu3 %v5293_v24  ;;  %6139 = vmatmul.msk.bf16.vlgmr.msrb.gmra.mxu1 %vm366_vm0, %v9242_v27  ;;  %v5448_v60 = vsel %vm573_vm1, %v5422_v57, %v5424_v58  ;;  %v5428_v5 = vpop.permute.xlu2 %5427  ;;  %v5449_v59 = vsel %vm573_vm1, %v5424_v58, %v5426_v43  ;;  %v6150_v24 = vld [vmem:[%s9447_s4 + $0x18] sm:$0xf] }
 0x49a   : > { %v4457_v62 = vpop.f32.mrf.mxu0  ;;  %5378 = vmatpush.bf16.msrb.mxu0 %v5294_v31  ;;  %6140 = vmatmul.msk.bf16.vlgmr.msrb.gmra.mxu2 %vm366_vm0, %v9242_v27  ;;  %v5450_v30 = vsel %vm573_vm1, %v5426_v43, %v5428_v5  ;;  %v6158_v43 = vld [vmem:[%s9447_s4 + $0x1c] sm:$0xf] }
 0x49b   : > { %5390 = vmatpush.bf16.msrb.mxu1 %v5301_v8  ;;  %5403 = vmatpush.bf16.msrb.mxu2 %v5289_v32 }
 0x49d   : > { %v4554_v18 = vpop.f32.mrf.mxu2 }
 0x49e   : > { %v5446_v36 = vpop.permute.xlu1 %5445 }
 0x49f   : > { %v4444_v56 = vpop.f32.mrf.mxu3  ;;  %5391 = vmatpush.bf16.msrb.mxu1 %v5295_v61  ;;  %5404 = vmatpush.bf16.msrb.mxu2 %v5275_v51  ;;  %v9623_v61 = vld [vmem:[#allocation6_spill] sm:$0xff] }
 0x4a0   : > { %v4543_v54 = vpop.f32.mrf.mxu1  ;;  %v5444_v55 = vpop.permute.xlu0 %5443 }
 0x4a1   : > { %v5457_v47 = vsel %vm573_vm1, %v5442_v22, %v5444_v55  ;;  %v5458_v42 = vsel %vm573_vm1, %v5444_v55, %v5446_v36  ;;  %v5432_v25 = vpop.permute.xlu2 %5431  ;;  %v9626_v54 = vld [vmem:[#allocation7_spill] sm:$0xff] }
 0x4a2   : > { %v9296_v48 = vpop.f32.mrf.mxu0 }
 0x4a4   : > { %6141 = vmatmul.msk.bf16.vlgmr.msrb.gmra.mxu3 %vm366_vm0, %v9242_v27 }
 0x4a5   : > { %6143 = vmatmul.msk.bf16.vlgmr.msra.gmra.mxu0 %vm366_vm0, %v6142_v20  ;;  %5482 = vmatpush.bf16.msrb.mxu3 %v5453_v13  ;;  %v4556_v34 = vpop.f32.mrf.mxu2  ;;  %v9627_v13 = vld [vmem:[#allocation12_spill] sm:$0xff] }
 0x4a6   : > { %5495 = vmatpush.bf16.msra.mxu0 %v5454_v19  ;;  %v9629_v34 = vld [vmem:[#allocation10_spill] sm:$0xff] }
 0x4a7   : > { %v4567_v40 = vpop.f32.mrf.mxu3 }
 0x4a8   : > { %v4593_v21 = vpop.f32.mrf.mxu1  ;;  %v5430_v50 = vpop.permute.xlu0 %5429 }
 0x4a9   : > { %5483 = vmatpush.bf16.msrb.mxu3 %v5447_v49  ;;  %6144 = vmatmul.msk.bf16.vlgmr.msra.gmra.mxu1 %vm366_vm0, %v6142_v20  ;;  %v5451_v44 = vsel %vm573_vm1, %v5428_v5, %v5430_v50  ;;  %v5452_v38 = vsel %vm573_vm1, %v5430_v50, %v5432_v25 }
 0x4aa   : > { %v4582_v37 = vpop.f32.mrf.mxu0  ;;  %5496 = vmatpush.bf16.msra.mxu0 %v5448_v60  ;;  %6145 = vmatmul.msk.bf16.vlgmr.msra.gmra.mxu2 %vm366_vm0, %v6142_v20 }
 0x4ab   : > { %5508 = vmatpush.bf16.msra.mxu1 %v5455_v39  ;;  %5521 = vmatpush.bf16.msra.mxu2 %v5456_v10  ;;  %v9631_v37 = vld [vmem:[#allocation14_spill] sm:$0xff] }
 0x4ad   : > { %v4606_v3 = vpop.f32.mrf.mxu2 }
 0x4af   : > { %v4569_v26 = vpop.f32.mrf.mxu3  ;;  %5509 = vmatpush.bf16.msra.mxu1 %v5449_v59  ;;  %5522 = vmatpush.bf16.msra.mxu2 %v5450_v30 }
 0x4b0   : > { %v4595_v27 = vpop.f32.mrf.mxu1 }
 0x4b2   : > { %v4695_v45 = vpop.f32.mrf.mxu0 }
 0x4b3   : > { %v4696_v32 = vadd.f32 %v4695_v45, %v4541_v9  ;;  %v9622_v9 = vld [vmem:[#allocation5_spill] sm:$0xff] }
 0x4b4   : > { %6146 = vmatmul.msk.bf16.vlgmr.msra.gmra.mxu3 %vm366_vm0, %v6142_v20 }
 0x4b5   : > { %6147 = vmatmul.msk.bf16.vlgmr.msrb.gmra.mxu0 %vm366_vm0, %v6142_v20  ;;  %5534 = vmatpush.bf16.msra.mxu3 %v5457_v47  ;;  %v4608_v1 = vpop.f32.mrf.mxu2 }
 0x4b6   : > { %5547 = vmatpush.bf16.msrb.mxu0 %v5458_v42 }
 0x4b7   : > { %v4619_v28 = vpop.f32.mrf.mxu3 }
 0x4b8   : > { %v4708_v33 = vpop.f32.mrf.mxu1 }
 0x4b9   : > { %v4709_v23 = vadd.f32 %v4708_v33, %v4554_v18  ;;  %5535 = vmatpush.bf16.msra.mxu3 %v5451_v44  ;;  %6148 = vmatmul.msk.bf16.vlgmr.msrb.gmra.mxu1 %vm366_vm0, %v6142_v20 }
 0x4ba   : > { %v4697_v14 = vpop.f32.mrf.mxu0  ;;  %5548 = vmatpush.bf16.msrb.mxu0 %v5452_v38  ;;  %6149 = vmatmul.msk.bf16.vlgmr.msrb.gmra.mxu2 %vm366_vm0, %v6142_v20  ;;  %v9628_v20 = vld [vmem:[#allocation9_spill] sm:$0xff] }
 0x4bb   : > { %5560 = vmatpush.bf16.msrb.mxu1 %v5446_v36  ;;  %5585 = vmatpush.bf16.msrb.mxu2 %v9541_v41 }
 0x4bd   : > { %v4721_v17 = vpop.f32.mrf.mxu2 }
 0x4be   : > { %v4722_v16 = vadd.f32 %v4721_v17, %v4567_v40 }
 0x4bf   : > { %v4621_v51 = vpop.f32.mrf.mxu3  ;;  %5561 = vmatpush.bf16.msrb.mxu1 %v5432_v25  ;;  %5586 = vmatpush.bf16.msrb.mxu2 %v9549_v6 }
 0x4c0   : > { %v4710_v46 = vpop.f32.mrf.mxu1 }
 0x4c2   : > { %v4747_v57 = vpop.f32.mrf.mxu0 }
 0x4c3   : > { %v4748_v63 = vadd.f32 %v4747_v57, %v4593_v21  ;;  %v9630_v21 = vld [vmem:[#allocation13_spill] sm:$0xff] }
 0x4c4   : > { %6151 = vmatmul.msk.bf16.vlgmr.msrb.gmra.mxu3 %vm366_vm0, %v6150_v24 }
 0x4c5   : > { %6152 = vmatmul.msk.bf16.vlgmr.msra.gmra.mxu0 %vm366_vm0, %v6150_v24  ;;  %5598 = vmatpush.bf16.msrb.mxu3 %v6327_v11  ;;  %v4723_v41 = vpop.f32.mrf.mxu2  ;;  %v9625_v11 = vld [vmem:[#allocation8_spill] sm:$0xff] }
 0x4c6   : > { %5611 = vmatpush.bf16.msra.mxu0 %v6329_v12 }
 0x4c7   : > { %v4734_v31 = vpop.f32.mrf.mxu3 }
 0x4c8   : > { %v4735_v8 = vadd.f32 %v4734_v31, %v9296_v48  ;;  %v4760_v52 = vpop.f32.mrf.mxu1 }
 0x4c9   : > { %v4761_v6 = vadd.f32 %v4760_v52, %v4606_v3  ;;  %5599 = vmatpush.bf16.msrb.mxu3 %v9622_v9  ;;  %6153 = vmatmul.msk.bf16.vlgmr.msra.gmra.mxu1 %vm366_vm0, %v6150_v24 }
 0x4ca   : > { %v4749_v62 = vpop.f32.mrf.mxu0  ;;  %5612 = vmatpush.bf16.msra.mxu0 %v9623_v61  ;;  %6154 = vmatmul.msk.bf16.vlgmr.msra.gmra.mxu2 %vm366_vm0, %v6150_v24 }
 0x4cb   : > { %5624 = vmatpush.bf16.msra.mxu1 %v9624_v15  ;;  %5637 = vmatpush.bf16.msra.mxu2 %v9625_v11 }
 0x4cd   : > { %v4773_v18 = vpop.f32.mrf.mxu2 }
 0x4ce   : > { %v4774_v12 = vadd.f32 %v4773_v18, %v4619_v28 }
 0x4cf   : > { %v4736_v56 = vpop.f32.mrf.mxu3  ;;  %5625 = vmatpush.bf16.msra.mxu1 %v9626_v54  ;;  %5638 = vmatpush.bf16.msra.mxu2 %v9627_v13 }
 0x4d0   : > { %v4762_v58 = vpop.f32.mrf.mxu1 }
 0x4d2   : > { %v4864_v22 = vpop.f32.mrf.mxu0 }
 0x4d3   : > { %v4934_v48 = vadd.f32 %v4864_v22, %v4709_v23 }
 0x4d4   : > { %6155 = vmatmul.msk.bf16.vlgmr.msra.gmra.mxu3 %vm366_vm0, %v6150_v24 }
 0x4d5   : > { %6156 = vmatmul.msk.bf16.vlgmr.msrb.gmra.mxu0 %vm366_vm0, %v6150_v24  ;;  %5650 = vmatpush.bf16.msra.mxu3 %v9628_v20  ;;  %v4775_v19 = vpop.f32.mrf.mxu2 }
 0x4d6   : > { %5663 = vmatpush.bf16.msrb.mxu0 %v9629_v34 }
 0x4d7   : > { %v4851_v49 = vpop.f32.mrf.mxu3 }
 0x4d8   : > { %v4933_v40 = vadd.f32 %v4851_v49, %v4696_v32  ;;  %v4877_v60 = vpop.f32.mrf.mxu1 }
 0x4d9   : > { %v4935_v39 = vadd.f32 %v4877_v60, %v4722_v16  ;;  %5651 = vmatpush.bf16.msra.mxu3 %v9630_v21  ;;  %6157 = vmatmul.msk.bf16.vlgmr.msrb.gmra.mxu1 %vm366_vm0, %v6150_v24 }
 0x4da   : > { %v4866_v10 = vpop.f32.mrf.mxu0  ;;  %5664 = vmatpush.bf16.msrb.mxu0 %v9631_v37  ;;  %6159 = vmatmul.msk.bf16.vlgmr.msrb.gmra.mxu2 %vm366_vm0, %v6158_v43 }
 0x4dd   : > { %v4890_v55 = vpop.f32.mrf.mxu2 }
 0x4de   : > { %v4936_v5 = vadd.f32 %v4890_v55, %v4735_v8 }
 0x4df   : > { %v4853_v59 = vpop.f32.mrf.mxu3 }
 0x4e0   : > { %v4879_v30 = vpop.f32.mrf.mxu1 }
 0x4e2   : > { %v4916_v3 = vpop.f32.mrf.mxu0 }
 0x4e3   : > { %v4938_v26 = vadd.f32 %v4916_v3, %v4761_v6 }
 0x4e4   : > { %6160 = vmatmul.msk.bf16.vlgmr.msrb.gmra.mxu3 %vm366_vm0, %v6158_v43 }
 0x4e5   : > { %6161 = vmatmul.msk.bf16.vlgmr.msra.gmra.mxu0 %vm366_vm0, %v6158_v43  ;;  %v4892_v27 = vpop.f32.mrf.mxu2 }
 0x4e7   : > { %v4903_v36 = vpop.f32.mrf.mxu3 }
 0x4e8   : > { %v4937_v47 = vadd.f32 %v4903_v36, %v4748_v63  ;;  %v4929_v45 = vpop.f32.mrf.mxu1 }
 0x4e9   : > { %v4939_v42 = vadd.f32 %v4929_v45, %v4774_v12  ;;  %6162 = vmatmul.msk.bf16.vlgmr.msra.gmra.mxu1 %vm366_vm0, %v6158_v43 }
 0x4ea   : > { %v4918_v32 = vpop.f32.mrf.mxu0  ;;  %6163 = vmatmul.msk.bf16.vlgmr.msra.gmra.mxu2 %vm366_vm0, %v6158_v43 }
 0x4ed   : > { %v5014_v50 = vpop.f32.mrf.mxu2 }
 0x4ee   : > { %v5096_v25 = vadd.f32 %v5014_v50, %v4933_v40 }
 0x4ef   : > { %v4905_v1 = vpop.f32.mrf.mxu3 }
 0x4f0   : > { %v4931_v44 = vpop.f32.mrf.mxu1 }
 0x4f2   : > { %v5040_v28 = vpop.f32.mrf.mxu0 }
 0x4f3   : > { %v5098_v38 = vadd.f32 %v5040_v28, %v4935_v39 }
 0x4f4   : > { %6164 = vmatmul.msk.bf16.vlgmr.msra.gmra.mxu3 %vm366_vm0, %v6158_v43 }
 0x4f5   : > { %6165 = vmatmul.msk.bf16.vlgmr.msrb.gmra.mxu0 %vm366_vm0, %v6158_v43  ;;  %v5016_v33 = vpop.f32.mrf.mxu2 }
 0x4f7   : > { %v5027_v23 = vpop.f32.mrf.mxu3 }
 0x4f8   : > { %v5097_v14 = vadd.f32 %v5027_v23, %v4934_v48  ;;  %v5053_v17 = vpop.f32.mrf.mxu1 }
 0x4f9   : > { %v5099_v16 = vadd.f32 %v5053_v17, %v4936_v5 }
 0x4fa   : > { %v5042_v51 = vpop.f32.mrf.mxu0 }
 0x4fd   : > { %v5066_v46 = vpop.f32.mrf.mxu2 }
 0x4fe   : > { %v5100_v24 = vadd.f32 %v5066_v46, %v4937_v47 }
 0x4ff   : > { %v5029_v57 = vpop.f32.mrf.mxu3 }
 0x500   : > { %v5055_v63 = vpop.f32.mrf.mxu1 }
 0x502   : > { %v5092_v41 = vpop.f32.mrf.mxu0 }
 0x503   : > { %v5102_v31 = vadd.f32 %v5092_v41, %v4939_v42 }
 0x505   : > { %v5068_v8 = vpop.f32.mrf.mxu2 }
 0x506   : > { %v9386_v8 = vpop.permute.xlu1 %5712 }
 0x507   : > { %v5079_v52 = vpop.f32.mrf.mxu3 }
 0x508   : > { %v5101_v6 = vadd.f32 %v5079_v52, %v4938_v26  ;;  %v5171_v9 = vpop.f32.mrf.mxu1 }
 0x509   : > { %v5253_v62 = vadd.f32 %v5171_v9, %v5096_v25 }
 0x50a   : > { %v5094_v61 = vpop.f32.mrf.mxu0 }
 0x50d   : > { %v5184_v15 = vpop.f32.mrf.mxu2 }
 0x50e   : > { %v9356_v11 = vadd.f32 %v5184_v15, %v5097_v14 }
 0x50f   : > { %v5081_v18 = vpop.f32.mrf.mxu3 }
 0x510   : > { %v5173_v12 = vpop.f32.mrf.mxu1 }
 0x512   : > { %v5210_v56 = vpop.f32.mrf.mxu0 }
 0x513   : > { %v9358_v54 = vadd.f32 %v5210_v56, %v5099_v16 }
 0x515   : > { %v5186_v58 = vpop.f32.mrf.mxu2 }
 0x517   : > { %v5197_v13 = vpop.f32.mrf.mxu3 }
 0x518   : > { %v5255_v22 = vadd.f32 %v5197_v13, %v5098_v38  ;;  %v5223_v48 = vpop.f32.mrf.mxu1  ;;  %v9374_v38 = vpop.permute.xlu0 %5679 }
 0x519   : > { %v9360_v20 = vadd.f32 %v5223_v48, %v5100_v24  ;;  %v5682_v23 = vadd.f32 %v9374_v38, %v9223_v35  ;;  %v5684_v46 = vadd.f32 %v9374_v38, %v9230_v53  ;;  %v5683_v35 = vadd.f32 %v9374_v38, %v9250_v4  ;;  %v9393_v53 = vpop.permute.xlu2 %5724 }
 0x51a   : > { %v5212_v19 = vpop.f32.mrf.mxu0  ;;  %v5685_v52 = vadd.f32 %v9374_v38, %v9254_v7 }
 0x51b   : > { %v5696_v51 = vmul.f32 0.01, %v5682_v23  ;;  %vm5689_vm1 = vcmp.ge.f32.partialorder %v5682_v23, 0.0  ;;  %v5698_v41 = vmul.f32 0.01, %v5684_v46  ;;  %vm5691_vm2 = vcmp.ge.f32.partialorder %v5684_v46, 0.0 }
 0x51c   : > { %v5697_v18 = vmul.f32 0.01, %v5683_v35  ;;  %vm5690_vm3 = vcmp.ge.f32.partialorder %v5683_v35, 0.0  ;;  %v5699_v56 = vmul.f32 0.01, %v5685_v52  ;;  %vm5692_vm5 = vcmp.ge.f32.partialorder %v5685_v52, 0.0 }
 0x51d   : > { %v5236_v34 = vpop.f32.mrf.mxu2  ;;  %v5703_v57 = vsel %vm5689_vm1, %v5682_v23, %v5696_v51  ;;  %v5705_v15 = vsel %vm5691_vm2, %v5684_v46, %v5698_v41 }
 0x51e   : > { %v9362_v49 = vadd.f32 %v5236_v34, %v5101_v6  ;;  %v5715_v9 = vmul.f32 %v9386_v8, %v5703_v57  ;;  %v5717_v7 = vmul.f32 %v9386_v8, %v5705_v15  ;;  %v5686_v34 = vadd.f32 %v9374_v38, %v9265_v0 }
 0x51f   : > { %v5199_v40 = vpop.f32.mrf.mxu3  ;;  %v5688_v0 = vadd.f32 %v9374_v38, %v9272_v29 }
 0x520   : > { %v5225_v60 = vpop.f32.mrf.mxu1  ;;  %v5727_v13 = vadd.f32 %v9393_v53, %v5715_v9  ;;  %v5704_v40 = vsel %vm5690_vm3, %v5683_v35, %v5697_v18  ;;  %vm5693_vm6 = vcmp.ge.f32.partialorder %v5686_v34, 0.0 }
 0x521   : > { %v5702_v23 = vmul.f32 0.01, %v5688_v0  ;;  %vm5695_vm11 = vcmp.ge.f32.partialorder %v5688_v0, 0.0 }
 0x522   : > { %v5328_v43 = vpop.f32.mrf.mxu0 }
 0x523   : > { %v5410_v61 = vadd.f32 %v5328_v43, %v5253_v62 }
 0x525   : > { %v5238_v39 = vpop.f32.mrf.mxu2 }
 0x526   : > { %v5706_v39 = vsel %vm5692_vm5, %v5685_v52, %v5699_v56 }
 0x527   : > { %v5249_v21 = vpop.f32.mrf.mxu3 }
 0x528   : > { %v9364_v10 = vadd.f32 %v5249_v21, %v5102_v31  ;;  %v9366_v37 = vpop.f32.mrf.mxu1 }
 0x52a   : > { %v5330_v55 = vpop.f32.mrf.mxu0 }
 0x52b   : > { %v5729_v55 = vadd.f32 %v9393_v53, %v5717_v7 }
 0x52d   : > { %v5354_v5 = vpop.f32.mrf.mxu2 }
 0x52e   : > { %v5412_v4 = vadd.f32 %v5354_v5, %v5255_v22  ;;  %v5700_v5 = vmul.f32 0.01, %v5686_v34 }
 0x52f   : > { %v5251_v59 = vpop.f32.mrf.mxu3 }
 0x530   : > { %v5343_v30 = vpop.f32.mrf.mxu1  ;;  %v5411_v59 = vadd.f32 %v9366_v37, %v9356_v11 }
 0x531   : > { %v5716_v30 = vmul.f32 %v9386_v8, %v5704_v40 }
 0x532   : > { %v9368_v3 = vpop.f32.mrf.mxu0 }
 0x533   : > { %v5728_v11 = vadd.f32 %v9393_v53, %v5716_v30 }
 0x535   : > { %v5356_v26 = vpop.f32.mrf.mxu2 }
 0x537   : > { %v5367_v27 = vpop.f32.mrf.mxu3 }
 0x538   : > { %v9370_v36 = vpop.f32.mrf.mxu1  ;;  %v5413_v26 = vadd.f32 %v5367_v27, %v9358_v54  ;;  %v5687_v54 = vadd.f32 %v9374_v38, %v9286_v2 }
 0x53a   : > { %v5382_v47 = vpop.f32.mrf.mxu0  ;;  %v5701_v57 = vmul.f32 0.01, %v5687_v54  ;;  %vm5694_vm12 = vcmp.ge.f32.partialorder %v5687_v54, 0.0 }
 0x53c   : > { %v5708_v9 = vsel %vm5694_vm12, %v5687_v54, %v5701_v57 }
 0x53d   : > { %v9372_v45 = vpop.f32.mrf.mxu2 }
 0x53e   : > { %v5416_v38 = vadd.f32 %v9372_v45, %v9364_v10  ;;  %v5415_v10 = vadd.f32 %v9370_v36, %v9362_v49  ;;  %v5720_v45 = vmul.f32 %v9386_v8, %v5708_v9 }
 0x53f   : > { %v5369_v42 = vpop.f32.mrf.mxu3 }
 0x540   : > { %v5395_v32 = vpop.f32.mrf.mxu1  ;;  %v5718_v42 = vmul.f32 %v9386_v8, %v5706_v39 }
 0x542   : > { %v5498_v50 = vpop.f32.mrf.mxu0 }
 0x543   : > { %v5568_v32 = vadd.f32 %v5498_v50, %v5411_v59 }
 0x545   : > { %v5408_v25 = vpop.f32.mrf.mxu2 }
 0x547   : > { %v5485_v1 = vpop.f32.mrf.mxu3 }
 0x548   : > { %v5511_v44 = vpop.f32.mrf.mxu1  ;;  %v5567_v12 = vadd.f32 %v5485_v1, %v5410_v61 }
 0x549   : > { %v5569_v60 = vadd.f32 %v5511_v44, %v5412_v4 }
 0x54a   : > { %v5500_v28 = vpop.f32.mrf.mxu0 }
 0x54b   : > { %v5707_v28 = vsel %vm5693_vm6, %v5686_v34, %v5700_v5 }
 0x54c   : > { %v5719_v46 = vmul.f32 %v9386_v8, %v5707_v28 }
 0x54d   : > { %v5524_v33 = vpop.f32.mrf.mxu2 }
 0x54e   : > { %v5570_v1 = vadd.f32 %v5524_v33, %v5413_v26  ;;  %v5414_v33 = vadd.f32 %v9368_v3, %v9360_v20  ;;  %v5731_v52 = vadd.f32 %v9393_v53, %v5719_v46 }
 0x54f   : > { %v5487_v14 = vpop.f32.mrf.mxu3 }
 0x550   : > { %v5513_v17 = vpop.f32.mrf.mxu1  ;;  %v5730_v14 = vadd.f32 %v9393_v53, %v5718_v42 }
 0x552   : > { %v9378_v16 = vpop.f32.mrf.mxu0 }
 0x555   : > { %v5526_v24 = vpop.f32.mrf.mxu2 }
 0x556   : > { %v5709_v24 = vsel %vm5695_vm11, %v5688_v0, %v5702_v23 }
 0x557   : > { %v9382_v63 = vpop.f32.mrf.mxu3  ;;  %v5721_v3 = vmul.f32 %v9386_v8, %v5709_v24 }
 0x558   : > { %v9384_v31 = vpop.f32.mrf.mxu1  ;;  %v5571_v41 = vadd.f32 %v9382_v63, %v5414_v33 }
 0x559   : > { %v5573_v61 = vadd.f32 %v9384_v31, %v5416_v38 }
 0x55a   : > { %v5552_v6 = vpop.f32.mrf.mxu0 }
 0x55d   : > { %v5588_v58 = vpop.f32.mrf.mxu2 }
 0x55e   : > { %v5670_v48 = vadd.f32 %v5588_v58, %v5567_v12  ;;  %v5733_v12 = vadd.f32 %v9393_v53, %v5721_v3  ;;  %v5572_v58 = vadd.f32 %v9378_v16, %v5415_v10 }
 0x55f   : > { %v5539_v19 = vpop.f32.mrf.mxu3 }
 0x560   : > { %v5565_v62 = vpop.f32.mrf.mxu1  ;;  %v5734_v43 = vadd.f32 %v5727_v13, %v5670_v48  ;;  %v5732_v48 = vadd.f32 %v9393_v53, %v5720_v45 }
 0x562   : > { %v5614_v22 = vpop.f32.mrf.mxu0  ;;  %5741 = vst [vmem:[%s9403_s22] sm:$0xff] %v5734_v43 }
 0x563   : > { %v5672_v21 = vadd.f32 %v5614_v22, %v5569_v60 }
 0x565   : > { %v5736_v47 = vadd.f32 %v5729_v55, %v5672_v21  ;;  %v5590_v25 = vpop.f32.mrf.mxu2 }
 0x567   : > { %5743 = vst [vmem:[%s9403_s22 + $0x10] sm:$0xff] %v5736_v47  ;;  %v5601_v44 = vpop.f32.mrf.mxu3 }
 0x568   : > { %v5671_v29 = vadd.f32 %v5601_v44, %v5568_v32  ;;  %v5627_v37 = vpop.f32.mrf.mxu1 }
 0x569   : > { %v5673_v27 = vadd.f32 %v5627_v37, %v5570_v1 }
 0x56a   : > { %v5735_v50 = vadd.f32 %v5728_v11, %v5671_v29  ;;  %v5616_v17 = vpop.f32.mrf.mxu0 }
 0x56b   : > { %v5737_v51 = vadd.f32 %v5730_v14, %v5673_v27 }
 0x56c   : > { %5742 = vst [vmem:[%s9403_s22 + $0x8] sm:$0xff] %v5735_v50 }
 0x56d   : > { %5744 = vst [vmem:[%s9403_s22 + $0x18] sm:$0xff] %v5737_v51  ;;  %v5640_v2 = vpop.f32.mrf.mxu2 }
 0x56e   : > { %v5674_v35 = vadd.f32 %v5640_v2, %v5571_v41 }
 0x56f   : > { %v5603_v20 = vpop.f32.mrf.mxu3 }
 0x570   : > { %v5629_v6 = vpop.f32.mrf.mxu1  ;;  %v5738_v15 = vadd.f32 %v5731_v52, %v5674_v35 }
 0x572   : > { %v5666_v63 = vpop.f32.mrf.mxu0  ;;  %5745 = vst [vmem:[%s9403_s22 + $0x20] sm:$0xff] %v5738_v15 }
 0x573   : > { %v5676_v18 = vadd.f32 %v5666_v63, %v5573_v61 }
 0x575   : > { %v5740_v56 = vadd.f32 %v5733_v12, %v5676_v18  ;;  %v5642_v13 = vpop.f32.mrf.mxu2 }
 0x577   : > { %5747 = vst.msk [vmem:[%s9403_s22 + $0x30] sm:$0xff] %vm366_vm0, %v5740_v56  ;;  %v5653_v4 = vpop.f32.mrf.mxu3 }
 0x578   : > { %v5675_v31 = vadd.f32 %v5653_v4, %v5572_v58 }
 0x57a   : > { %v5739_v19 = vadd.f32 %v5732_v48, %v5675_v31  ;;  %v5668_v7 = vpop.f32.mrf.mxu0 }
 0x57c   : > { %5746 = vst [vmem:[%s9403_s22 + $0x28] sm:$0xff] %v5739_v19 }
 0x57f   : > { %v5655_v34 = vpop.f32.mrf.mxu3 }
 0x580 PF: > { %s16_s21 = sadd.s32 1, %s6230_s21  }
 0x581   : > { %p13_p4 = scmp.ge.s32.totalorder %s16_s21, 4  }
 0x583   :  { %15 = sbr.rel (!%p13_p4) target bundleno = 1 (0x1), region = 112 }

</bundles_post_ra>
